<compile_context>
chip_gen: v5e
topology: v5e:2x2
jax: 0.10.0
libtpu: 0.0.40
codegen_flags: <defaults>
</compile_context>

<pallas_src>
import math
import jax
import jax.numpy as jnp
from jax import lax
from jax.experimental import pallas as pl
from jax.experimental.pallas import tpu as pltpu


# --------------------- generation-aware sizing constants --------------------

def _vmem_limit_bytes():
    cap = 0
    try:
        info = pltpu.get_tpu_info()
        cap = int(getattr(info, "vmem_capacity_bytes", 0) or 0)
    except Exception:
        cap = 0
    if cap <= 0:
        cap = 64 * 1024 * 1024                 # conservative default (v7x per-TC)
    if cap >= 96 * 1024 * 1024:                # 128 MiB parts (v5e / v6e)
        return cap - 16 * 1024 * 1024
    return (cap * 3) // 4                      # 64 MiB parts (v7x): ~48 MiB


_VMEM_LIMIT = _vmem_limit_bytes()
_ROW_TILE_CAP = 1024 if _VMEM_LIMIT >= 96 * 1024 * 1024 else 512


def _row_tile(m):
    """Row tile: multiple of 8, capped, and >=2 blocks so both v7x TCs get work."""
    if m <= 8 or m % 8 != 0:
        return m                               # single full block (== array dim)
    half = max(8, ((m // 2) + 7) // 8 * 8)
    return min(_ROW_TILE_CAP, half)


# ----------------------------- Pallas kernels ------------------------------

def _linear_pallas(x2, w, b2, activation, out_dtype):
    """x2: [M, K] (cast to bf16 in-kernel), w: [K, Nout] bf16, b2: [1, Nout] f32."""
    M, K = x2.shape
    Nout = w.shape[-1]
    tm = _row_tile(M)

    def kern(x_ref, w_ref, b_ref, o_ref):
        acc = jnp.dot(x_ref[...].astype(jnp.bfloat16), w_ref[...],
                      preferred_element_type=jnp.float32) + b_ref[...]
        if activation == "relu":
            acc = jnp.maximum(acc, 0.0)
        o_ref[...] = acc.astype(o_ref.dtype)

    return pl.pallas_call(
        kern,
        out_shape=jax.ShapeDtypeStruct((M, Nout), out_dtype),
        grid=(pl.cdiv(M, tm),),
        in_specs=[
            pl.BlockSpec((tm, K), lambda i: (i, 0)),
            pl.BlockSpec((K, Nout), lambda i: (0, 0)),
            pl.BlockSpec((1, Nout), lambda i: (0, 0)),
        ],
        out_specs=pl.BlockSpec((tm, Nout), lambda i: (i, 0)),
        compiler_params=pltpu.CompilerParams(
            dimension_semantics=("parallel",),
            vmem_limit_bytes=_VMEM_LIMIT),
    )(x2, w, b2)


def linear(x, w, b, activation=None, out_dtype=jnp.float32):
    lead = x.shape[:-1]
    K = x.shape[-1]
    Nout = w.shape[-1]
    out = _linear_pallas(
        x.reshape(-1, K),
        w.astype(jnp.bfloat16),
        b.reshape(1, Nout).astype(jnp.float32),
        activation, out_dtype)
    return out.reshape(*lead, Nout)


def _ln_core(xv, g, b, eps):
    mu = jnp.mean(xv, axis=-1, keepdims=True)
    var = jnp.mean((xv - mu) ** 2, axis=-1, keepdims=True)
    return (xv - mu) * lax.rsqrt(var + eps) * g + b


def _post_ipa_fused_pallas(s2, ipa2, ipa_g, ipa_b, tl_flat, tr_g, tr_b,
                           bb_w, bb_b, n_tl, eps):
    """Fused:  x = LN(s + ipa);  x = x + MLP_i(x) (i=1..n_tl);  x = LN(x);
               upd = x @ bb_w + bb_b.   Outputs (x, upd)."""
    M, C = s2.shape
    tm = _row_tile(M)
    n_tl_refs = 6 * n_tl

    def kern(*refs):
        s_ref, ipa_ref, ig_ref, ib_ref = refs[:4]
        tl_refs = refs[4:4 + n_tl_refs]
        tg_ref, tb_ref, bw_ref, bbias_ref = refs[4 + n_tl_refs:8 + n_tl_refs]
        s_out_ref, upd_ref = refs[8 + n_tl_refs:]

        x = _ln_core(s_ref[...] + ipa_ref[...], ig_ref[...], ib_ref[...], eps)
        for li in range(n_tl):
            w1, b1, w2, b2, w3, b3 = tl_refs[6 * li:6 * li + 6]
            h = jnp.dot(x.astype(jnp.bfloat16), w1[...],
                        preferred_element_type=jnp.float32) + b1[...]
            h = jnp.maximum(h, 0.0)
            h = jnp.dot(h.astype(jnp.bfloat16), w2[...],
                        preferred_element_type=jnp.float32) + b2[...]
            h = jnp.maximum(h, 0.0)
            h = jnp.dot(h.astype(jnp.bfloat16), w3[...],
                        preferred_element_type=jnp.float32) + b3[...]
            x = x + h
        x = _ln_core(x, tg_ref[...], tb_ref[...], eps)
        s_out_ref[...] = x
        upd_ref[...] = jnp.dot(x.astype(jnp.bfloat16), bw_ref[...],
                               preferred_element_type=jnp.float32) + bbias_ref[...]

    row_spec = pl.BlockSpec((tm, C), lambda i: (i, 0))
    vec_spec = pl.BlockSpec((1, C), lambda i: (0, 0))
    w_spec = pl.BlockSpec((C, C), lambda i: (0, 0))
    in_specs = [row_spec, row_spec, vec_spec, vec_spec]
    for _ in range(n_tl):
        in_specs += [w_spec, vec_spec, w_spec, vec_spec, w_spec, vec_spec]
    in_specs += [vec_spec, vec_spec,
                 pl.BlockSpec((C, 6), lambda i: (0, 0)),
                 pl.BlockSpec((1, 6), lambda i: (0, 0))]
    out_specs = (pl.BlockSpec((tm, C), lambda i: (i, 0)),
                 pl.BlockSpec((tm, 6), lambda i: (i, 0)))
    out_shape = (jax.ShapeDtypeStruct((M, C), jnp.float32),
                 jax.ShapeDtypeStruct((M, 6), jnp.float32))
    args = [s2, ipa2, ipa_g, ipa_b] + list(tl_flat) + [tr_g, tr_b, bb_w, bb_b]
    return pl.pallas_call(
        kern,
        out_shape=out_shape,
        grid=(pl.cdiv(M, tm),),
        in_specs=in_specs,
        out_specs=out_specs,
        compiler_params=pltpu.CompilerParams(
            dimension_semantics=("parallel",),
            vmem_limit_bytes=_VMEM_LIMIT),
    )(*args)


def post_ipa_update(s, ipa_out, lp):
    B, N, C = s.shape
    bf = jnp.bfloat16
    tl_flat = []
    for tl in lp["transition"]["layers"]:
        tl_flat += [tl["w1"].astype(bf), tl["b1"].reshape(1, C),
                    tl["w2"].astype(bf), tl["b2"].reshape(1, C),
                    tl["w3"].astype(bf), tl["b3"].reshape(1, C)]
    s_new, upd = _post_ipa_fused_pallas(
        s.reshape(-1, C).astype(jnp.float32),
        ipa_out.reshape(-1, C).astype(jnp.float32),
        lp["ipa_ln_g"].reshape(1, C), lp["ipa_ln_b"].reshape(1, C),
        tl_flat,
        lp["transition"]["ln_g"].reshape(1, C), lp["transition"]["ln_b"].reshape(1, C),
        lp["bb_w"].astype(bf), lp["bb_b"].reshape(1, 6),
        n_tl=len(lp["transition"]["layers"]), eps=1e-5)
    return s_new.reshape(B, N, C), upd.reshape(B, N, 6)


# ----------------------------- IPA attention --------------------------------

def _pick_ipa_tile(N, H, Kc, Cv, Cp):
    """Largest query tile (multiple of 8, divides N) fitting the VMEM budget."""
    if N % 8 != 0:
        return N
    def est(t):
        bufs = (t * H * Kc * 2            # qc   bf16
                + H * Kc * N * 2          # kT   bf16 (resident per batch)
                + H * N * Cv * 2          # vc   bf16
                + t * N * Cp * 2          # z    bf16
                + H * N * 4 + N * 4       # kn, key-mask f32
                + t * (H * Cv + H * Cp) * 4)   # merged output f32
        interm = t * N * Cp * 4 + 6 * t * N * 4   # f32 z copy + per-head temps
        return 2 * bufs + interm
    for t in (512, 256, 128, 64, 32, 16, 8):
        if t <= N and N % t == 0 and est(t) <= _VMEM_LIMIT // 2:
            return t
    return min(N, 8)


def _make_ipa_attn_kernel(H):
    def kern(qc_ref, kT_ref, vc_ref, kn_ref, mj_ref, z_ref, bw_ref, o_ref):
        # Per (batch, query-tile):
        #   qc [H, ti, Kc] bf16 (scalar part pre-scaled, point part sqrt(gamma)-scaled)
        #   kT [H, Kc, N]  bf16 (pre-transposed; lane-dense on keys)
        #   vc [H, N, Cv]  bf16, kn [H, 1, N] f32 (= -0.5*||k_pts||^2)
        #   mj [1, N] f32 key mask, z [ti, N, Cp] bf16, bw [H, 1, Cp] f32 (pre-scaled)
        zf = z_ref[0].astype(jnp.float32)                       # [ti, N, Cp]
        mask_bias = -1e9 * (1.0 - mj_ref[0])                    # [1, N]
        ov_heads = []
        op_heads = []
        for h in range(H):
            # merged scalar-QK + point-QK matmul (MXU), no in-kernel transposes
            a = jnp.dot(qc_ref[0, h], kT_ref[0, h],
                        preferred_element_type=jnp.float32)     # [ti, N]
            # pair-bias projection fused from the resident z tile (VPU)
            a = a + jnp.sum(zf * bw_ref[h], axis=-1)            # [ti, N]
            a = a + kn_ref[0, h] + mask_bias
            # softmax over keys (f32)
            a = a - jnp.max(a, axis=-1, keepdims=True)
            e = jnp.exp(a)
            p = e / jnp.sum(e, axis=-1, keepdims=True)
            # attn @ [V | V_pts] on the MXU
            ov_heads.append(jnp.dot(p.astype(jnp.bfloat16), vc_ref[0, h],
                                    preferred_element_type=jnp.float32))  # [ti, Cv]
            # attn @ Z pair aggregation on the VPU (avoids ti tiny batched matmuls)
            op_heads.append(jnp.sum(p[:, :, None] * zf, axis=1))          # [ti, Cp]
        # single merged lane-dense store: [ti, H*Cv + H*Cp]
        o_ref[0] = jnp.concatenate(ov_heads + op_heads, axis=-1)
    return kern


def ipa_attention(qc, kT, vc, kn, mask_j, z_bf, bwt):
    B, H, N, Kc = qc.shape
    Cv = vc.shape[-1]
    Cp = z_bf.shape[-1]
    ti = _pick_ipa_tile(N, H, Kc, Cv, Cp)
    Dout = H * Cv + H * Cp
    kern = _make_ipa_attn_kernel(H)

    return pl.pallas_call(
        kern,
        out_shape=jax.ShapeDtypeStruct((B, N, Dout), jnp.float32),
        grid=(B, pl.cdiv(N, ti)),
        in_specs=[
            pl.BlockSpec((1, H, ti, Kc), lambda b, i: (b, 0, i, 0)),   # qc (query tile)
            pl.BlockSpec((1, H, Kc, N), lambda b, i: (b, 0, 0, 0)),    # kT (resident)
            pl.BlockSpec((1, H, N, Cv), lambda b, i: (b, 0, 0, 0)),    # vc (resident)
            pl.BlockSpec((1, H, 1, N), lambda b, i: (b, 0, 0, 0)),     # kn
            pl.BlockSpec((1, 1, N), lambda b, i: (b, 0, 0)),           # key mask
            pl.BlockSpec((1, ti, N, Cp), lambda b, i: (b, i, 0, 0)),   # z tile
            pl.BlockSpec((H, 1, Cp), lambda b, i: (0, 0, 0)),          # bias weight
        ],
        out_specs=pl.BlockSpec((1, ti, Dout), lambda b, i: (b, i, 0)),
        compiler_params=pltpu.CompilerParams(
            dimension_semantics=("parallel", "parallel"),
            vmem_limit_bytes=_VMEM_LIMIT),
    )(qc, kT, vc, kn, mask_j, z_bf, bwt)


# --------------------------- JAX glue (no torch) ----------------------------

def apply_rigid(rot, trans, pts):
    # pts: [B, N, K, 3]  ->  rot @ pts + trans (global frame)
    return jnp.einsum("bnxy,bnky->bnkx", rot, pts) + trans[:, :, None, :]


def invert_apply_rigid(rot, trans, pts):
    # pts: [B, N, H, P, 3] -> R^T (pts - trans) (local frame)
    return jnp.einsum("bnyx,bnhpy->bnhpx", rot, pts - trans[:, :, None, None, :])


def quat_update_to_rot(bcd):
    b, c, d = bcd[..., 0], bcd[..., 1], bcd[..., 2]
    a = jnp.ones_like(b)
    norm = jnp.sqrt(a * a + b * b + c * c + d * d)
    a, b, c, d = a / norm, b / norm, c / norm, d / norm
    row0 = jnp.stack([a * a + b * b - c * c - d * d, 2 * (b * c - a * d), 2 * (b * d + a * c)], -1)
    row1 = jnp.stack([2 * (b * c + a * d), a * a - b * b + c * c - d * d, 2 * (c * d - a * b)], -1)
    row2 = jnp.stack([2 * (b * d - a * c), 2 * (c * d + a * b), a * a - b * b - c * c + d * d], -1)
    return jnp.stack([row0, row1, row2], axis=-2)


def ipa_forward(pp, s, z_bf, rot, trans_c, mask, cfg):
    B, N, _ = s.shape
    H, C = cfg["n_head"], cfg["c_hidden"]
    Pq, Pv, Cp = cfg["n_qk_point"], cfg["n_v_point"], cfg["c_p"]

    d_q, d_kv = H * C, 2 * H * C
    d_qp = H * Pq * 3

    # fused node-feature projection: single matmul for q, kv, q_pts, kv_pts
    # TODO(synk): a weight-column permutation could also make the head-major
    # transposes below cheaper; left as plain XLA transposes (O(N*H*C), not O(N^2)).
    w_cat = jnp.concatenate([pp["q_w"], pp["kv_w"], pp["qp_w"], pp["kvp_w"]], axis=-1)
    b_cat = jnp.concatenate([pp["q_b"], pp["kv_b"], pp["qp_b"], pp["kvp_b"]], axis=-1)
    proj = linear(s, w_cat, b_cat)

    q = proj[..., :d_q].reshape(B, N, H, C)
    kv = proj[..., d_q:d_q + d_kv].reshape(B, N, H, 2 * C)
    k, v = kv[..., :C], kv[..., C:]
    q_pts_flat = proj[..., d_q + d_kv:d_q + d_kv + d_qp]
    kv_pts_flat = proj[..., d_q + d_kv + d_qp:]

    q_pts = jnp.stack(jnp.split(q_pts_flat, 3, axis=-1), axis=-1)     # [B,N,H*Pq,3]
    q_pts = apply_rigid(rot, trans_c, q_pts).reshape(B, N, H, Pq, 3)
    kv_pts = jnp.stack(jnp.split(kv_pts_flat, 3, axis=-1), axis=-1)
    kv_pts = apply_rigid(rot, trans_c, kv_pts).reshape(B, N, H, Pq + Pv, 3)
    k_pts, v_pts = kv_pts[..., :Pq, :], kv_pts[..., Pq:, :]

    gamma = jax.nn.softplus(pp["head_weights"]) * math.sqrt(1.0 / (3.0 * (Pq * 9.0 / 2.0)))
    gsqrt = jnp.sqrt(gamma)[None, None, :, None, None]
    q_pts_s = q_pts * gsqrt
    k_pts_s = k_pts * gsqrt

    scale_qk = 1.0 / math.sqrt(3.0 * C)
    qh = jnp.transpose(q, (0, 2, 1, 3)) * scale_qk                    # scale folded into q
    kh = jnp.transpose(k, (0, 2, 1, 3))
    vh = jnp.transpose(v, (0, 2, 1, 3))
    qph = jnp.transpose(q_pts_s, (0, 2, 1, 3, 4)).reshape(B, H, N, Pq * 3)
    kph = jnp.transpose(k_pts_s, (0, 2, 1, 3, 4)).reshape(B, H, N, Pq * 3)
    vph = jnp.transpose(v_pts, (0, 2, 1, 3, 4)).reshape(B, H, N, Pv * 3)

    bf = jnp.bfloat16
    qc = jnp.concatenate([qh, qph], axis=-1).astype(bf)               # [B,H,N,C+3Pq]
    kc = jnp.concatenate([kh, kph], axis=-1)
    kT = jnp.swapaxes(kc, -1, -2).astype(bf)                          # [B,H,C+3Pq,N]
    vc = jnp.concatenate([vh, vph], axis=-1).astype(bf)               # [B,H,N,C+3Pv]

    # -0.5*||k_pts||^2 precomputed once (query-side norm is softmax-invariant: dropped)
    kn = (-0.5 * jnp.sum(kph * kph, axis=-1))[:, :, None, :]          # [B,H,1,N] f32
    mask_j = mask.reshape(B, 1, N).astype(jnp.float32)
    # pair-bias weight, pre-scaled; bias offset b_b is per-head constant -> dropped
    bwt = (math.sqrt(1.0 / 3.0) * pp["b_w"].T)[:, None, :].astype(jnp.float32)  # [H,1,Cp]

    Cv = C + Pv * 3
    out = ipa_attention(qc, kT, vc, kn, mask_j, z_bf, bwt)            # [B,N,H*Cv+H*Cp]

    ovm = out[..., :H * Cv].reshape(B, N, H, Cv)
    o_s = ovm[..., :C].reshape(B, N, H * C)
    o_pt_g = ovm[..., C:].reshape(B, N, H, Pv, 3)
    o_pt = invert_apply_rigid(rot, trans_c, o_pt_g).reshape(B, N, H * Pv, 3)
    o_pt_norm = jnp.sqrt(jnp.sum(o_pt ** 2, axis=-1) + 1e-8)
    o_pair = out[..., H * Cv:].reshape(B, N, H * Cp)

    cat = jnp.concatenate(
        [o_s, o_pt[..., 0], o_pt[..., 1], o_pt[..., 2], o_pt_norm, o_pair], axis=-1)
    return linear(cat, pp["out_w"], pp["out_b"])


def structure_layer_forward(lp, s, z_bf, rot, trans, mask, cfg):
    # per-batch masked centroid subtraction: exact (attention weights sum to 1),
    # keeps bf16 global-frame point coordinates small (no catastrophic cancellation)
    denom = jnp.maximum(jnp.sum(mask, axis=1, keepdims=True), 1.0)        # [B,1]
    centroid = jnp.sum(trans * mask[..., None], axis=1) / denom           # [B,3]
    trans_c = trans - centroid[:, None, :]

    ipa_out = ipa_forward(lp["ipa"], s, z_bf, rot, trans_c, mask, cfg)
    # dropout layers are identity in eval mode
    s, upd = post_ipa_update(s, ipa_out, lp)   # fused add+LN+transition(s)+LN+bb_update
    r_upd = quat_update_to_rot(upd[..., :3])
    t_upd = upd[..., 3:]
    rot_new = jnp.einsum("bnij,bnjk->bnik", rot, r_upd)
    trans_new = jnp.einsum("bnij,bnj->bni", rot, t_upd) + trans
    return s, rot_new, trans_new


def structure_net_forward(params, s, p, rot, trans, mask, cfg):
    z_bf = p.astype(jnp.bfloat16)      # pair features cast ONCE (loop-invariant)
    for _ in range(cfg["n_structure_block"]):
        for lp in params["layers"]:
            s, rot, trans = structure_layer_forward(lp, s, z_bf, rot, trans, mask, cfg)
    return rot, trans


# ------------------------------ Parameter init ------------------------------

def init_linear_params(key, din, dout):
    w = (1.0 / math.sqrt(din)) * jax.random.normal(key, (din, dout), dtype=jnp.float32)
    b = jnp.zeros((dout,), dtype=jnp.float32)
    return w, b


def init_structure_net_params(key, cfg):
    c_s, c_p = cfg["c_s"], cfg["c_p"]
    H, C = cfg["n_head"], cfg["c_hidden"]
    Pq, Pv = cfg["n_qk_point"], cfg["n_v_point"]
    layers = []
    for _ in range(cfg["n_structure_layer"]):
        keys = jax.random.split(key, 10)
        key = keys[0]
        ipa = {}
        ipa["q_w"], ipa["q_b"] = init_linear_params(keys[1], c_s, H * C)
        ipa["kv_w"], ipa["kv_b"] = init_linear_params(keys[2], c_s, 2 * H * C)
        ipa["qp_w"], ipa["qp_b"] = init_linear_params(keys[3], c_s, H * Pq * 3)
        ipa["kvp_w"], ipa["kvp_b"] = init_linear_params(keys[4], c_s, H * (Pq + Pv) * 3)
        ipa["b_w"], ipa["b_b"] = init_linear_params(keys[5], c_p, H)
        concat_dim = H * C + H * Pv * 4 + H * c_p
        ipa["out_w"], ipa["out_b"] = init_linear_params(keys[6], concat_dim, c_s)
        ipa["head_weights"] = jnp.zeros((H,), dtype=jnp.float32)

        trans_layers = []
        tkeys = jax.random.split(keys[7], 3 * cfg["n_structure_transition_layer"])
        for li in range(cfg["n_structure_transition_layer"]):
            tl = {}
            tl["w1"], tl["b1"] = init_linear_params(tkeys[3 * li + 0], c_s, c_s)
            tl["w2"], tl["b2"] = init_linear_params(tkeys[3 * li + 1], c_s, c_s)
            tl["w3"], tl["b3"] = init_linear_params(tkeys[3 * li + 2], c_s, c_s)
            trans_layers.append(tl)
        transition = {
            "layers": trans_layers,
            "ln_g": jnp.ones((c_s,), jnp.float32),
            "ln_b": jnp.zeros((c_s,), jnp.float32),
        }
        bb_w, bb_b = init_linear_params(keys[8], c_s, 6)
        layers.append({
            "ipa": ipa,
            "ipa_ln_g": jnp.ones((c_s,), jnp.float32),
            "ipa_ln_b": jnp.zeros((c_s,), jnp.float32),
            "transition": transition,
            "bb_w": bb_w,
            "bb_b": bb_b,
        })
    return {"layers": layers}


# ----------------------------------- main -----------------------------------

if __name__ == "__main__":
    cfg = dict(
        c_s=32, c_p=16,
        n_structure_layer=2, n_structure_block=2,
        c_hidden=8, n_head=4, n_qk_point=4, n_v_point=8,
        n_structure_transition_layer=1,
    )
    B, N = 2, 8

    key = jax.random.PRNGKey(0)
    k_param, k_s, k_p, k_t = jax.random.split(key, 4)

    params = init_structure_net_params(k_param, cfg)
    s = jax.random.normal(k_s, (B, N, cfg["c_s"]), dtype=jnp.float32)
    p = jax.random.normal(k_p, (B, N, N, cfg["c_p"]), dtype=jnp.float32)
    rot = jnp.broadcast_to(jnp.eye(3, dtype=jnp.float32), (B, N, 3, 3))
    trans = jax.random.normal(k_t, (B, N, 3), dtype=jnp.float32)
    mask = jnp.ones((B, N), dtype=jnp.float32)

    fwd = jax.jit(lambda prm, s_, p_, r_, t_, m_:
                  structure_net_forward(prm, s_, p_, r_, t_, m_, cfg))

    rot_out, trans_out = fwd(params, s, p, rot, trans, mask)
    jax.block_until_ready((rot_out, trans_out))

    assert rot_out.shape == (B, N, 3, 3) and trans_out.shape == (B, N, 3)
    assert bool(jnp.all(jnp.isfinite(rot_out))) and bool(jnp.all(jnp.isfinite(trans_out)))
    print("KERNEL_OK")
</pallas_src>

<mosaic_0001>
module attributes {stable_mosaic.version = 11 : i64} {
  func.func @kern(%arg0: i32, %arg1: memref<8x32xf32, #tpu.memory_space<vmem>>, %arg2: memref<32x288xbf16, #tpu.memory_space<vmem>>, %arg3: memref<1x288xf32, #tpu.memory_space<vmem>>, %arg4: memref<8x288xf32, #tpu.memory_space<vmem>>) attributes {dimension_semantics = [#tpu.dimension_semantics<parallel>], iteration_bounds = array<i64: 2>, scalar_prefetch = 0 : i64, scratch_operands = 0 : i64, tpu.core_type = #tpu.core_type<tc>, window_params = [{transform_indices = @transform_0, window_bounds = array<i64: 8, 32>}, {pipeline_mode = #tpu.pipeline_mode<synchronous>, transform_indices = @transform_1, window_bounds = array<i64: 32, 288>}, {pipeline_mode = #tpu.pipeline_mode<synchronous>, transform_indices = @transform_2, window_bounds = array<i64: 1, 288>}, {transform_indices = @transform_3, window_bounds = array<i64: 8, 288>}]} {
    %c0 = arith.constant 0 : index
    %c0_0 = arith.constant 0 : index
    %0 = vector.load %arg1[%c0, %c0_0] : memref<8x32xf32, #tpu.memory_space<vmem>>, vector<8x32xf32>
    %1 = arith.truncf %0 : vector<8x32xf32> to vector<8x32xbf16>
    %c0_1 = arith.constant 0 : index
    %c0_2 = arith.constant 0 : index
    %2 = vector.load %arg2[%c0_1, %c0_2] : memref<32x288xbf16, #tpu.memory_space<vmem>>, vector<32x288xbf16>
    %cst = arith.constant dense<0.000000e+00> : vector<8x288xf32>
    %3 = tpu.matmul %1, %2, %cst {dimension_numbers = #tpu.dot_dimension_numbers<[1], [0], [0], [1], [0, 0, 1, 1], [], []>} : vector<8x32xbf16>, vector<32x288xbf16>, vector<8x288xf32> -> vector<8x288xf32>
    %c0_3 = arith.constant 0 : index
    %c0_4 = arith.constant 0 : index
    %4 = vector.load %arg3[%c0_3, %c0_4] : memref<1x288xf32, #tpu.memory_space<vmem>>, vector<1x288xf32>
    %5 = vector.broadcast %4 : vector<1x288xf32> to vector<8x288xf32>
    %6 = arith.addf %3, %5 : vector<8x288xf32>
    %c0_5 = arith.constant 0 : index
    %c0_6 = arith.constant 0 : index
    %7 = vector.load %arg4[%c0_5, %c0_6] : memref<8x288xf32, #tpu.memory_space<vmem>>, vector<8x288xf32>
    tpu.vector_store %arg4[%c0_5, %c0_6], %6 {strides = array<i32>} : memref<8x288xf32, #tpu.memory_space<vmem>>, vector<8x288xf32>,
    return
  }
  func.func @transform_0(%arg0: i32) -> (i32, i32) {
    %c0_i32 = arith.constant 0 : i32
    %c0_i32_0 = arith.constant 0 : i32
    return %arg0, %c0_i32 : i32, i32
  }
  func.func @transform_1(%arg0: i32) -> (i32, i32) {
    %c0_i32 = arith.constant 0 : i32
    %c0_i32_0 = arith.constant 0 : i32
    %c0_i32_1 = arith.constant 0 : i32
    return %c0_i32, %c0_i32_0 : i32, i32
  }
  func.func @transform_2(%arg0: i32) -> (i32, i32) {
    %c0_i32 = arith.constant 0 : i32
    %c0_i32_0 = arith.constant 0 : i32
    %c0_i32_1 = arith.constant 0 : i32
    return %c0_i32, %c0_i32_0 : i32, i32
  }
  func.func @transform_3(%arg0: i32) -> (i32, i32) {
    %c0_i32 = arith.constant 0 : i32
    %c0_i32_0 = arith.constant 0 : i32
    return %arg0, %c0_i32 : i32, i32
  }
}

module attributes {stable_mosaic.version = 11 : i64} {
  func.func @kern(%arg0: i32, %arg1: i32, %arg2: memref<1x4x8x20xbf16, #tpu.memory_space<vmem>>, %arg3: memref<1x4x20x8xbf16, #tpu.memory_space<vmem>>, %arg4: memref<1x4x8x32xbf16, #tpu.memory_space<vmem>>, %arg5: memref<1x4x1x8xf32, #tpu.memory_space<vmem>>, %arg6: memref<1x1x8xf32, #tpu.memory_space<vmem>>, %arg7: memref<1x8x8x16xbf16, #tpu.memory_space<vmem>>, %arg8: memref<4x1x16xf32, #tpu.memory_space<vmem>>, %arg9: memref<1x8x192xf32, #tpu.memory_space<vmem>>) attributes {dimension_semantics = [#tpu.dimension_semantics<parallel>, #tpu.dimension_semantics<parallel>], iteration_bounds = array<i64: 2, 1>, scalar_prefetch = 0 : i64, scratch_operands = 0 : i64, tpu.core_type = #tpu.core_type<tc>, window_params = [{transform_indices = @transform_0, window_bounds = array<i64: 1, 4, 8, 20>}, {transform_indices = @transform_1, window_bounds = array<i64: 1, 4, 20, 8>}, {transform_indices = @transform_2, window_bounds = array<i64: 1, 4, 8, 32>}, {transform_indices = @transform_3, window_bounds = array<i64: 1, 4, 1, 8>}, {transform_indices = @transform_4, window_bounds = array<i64: 1, 1, 8>}, {transform_indices = @transform_5, window_bounds = array<i64: 1, 8, 8, 16>}, {pipeline_mode = #tpu.pipeline_mode<synchronous>, transform_indices = @transform_6, window_bounds = array<i64: 4, 1, 16>}, {transform_indices = @transform_7, window_bounds = array<i64: 1, 8, 192>}]} {
    %c0 = arith.constant 0 : index
    %c0_0 = arith.constant 0 : index
    %c0_1 = arith.constant 0 : index
    %c0_2 = arith.constant 0 : index
    %0 = vector.load %arg7[%c0, %c0_0, %c0_1, %c0_2] : memref<1x8x8x16xbf16, #tpu.memory_space<vmem>>, vector<1x8x8x16xbf16>
    %1 = vector.shape_cast %0 : vector<1x8x8x16xbf16> to vector<8x8x16xbf16>
    %2 = arith.extf %1 : vector<8x8x16xbf16> to vector<8x8x16xf32>
    %c0_3 = arith.constant 0 : index
    %c0_4 = arith.constant 0 : index
    %c0_5 = arith.constant 0 : index
    %3 = vector.load %arg6[%c0_3, %c0_4, %c0_5] : memref<1x1x8xf32, #tpu.memory_space<vmem>>, vector<1x1x8xf32>
    %4 = vector.shape_cast %3 : vector<1x1x8xf32> to vector<1x8xf32>
    %cst = arith.constant 1.000000e+00 : f32
    %5 = vector.broadcast %cst : f32 to vector<1x8xf32>
    %6 = arith.subf %5, %4 : vector<1x8xf32>
    %cst_6 = arith.constant -1.000000e+09 : f32
    %7 = vector.broadcast %cst_6 : f32 to vector<1x8xf32>
    %8 = arith.mulf %7, %6 : vector<1x8xf32>
    %c0_7 = arith.constant 0 : index
    %c0_8 = arith.constant 0 : index
    %c0_9 = arith.constant 0 : index
    %c0_10 = arith.constant 0 : index
    %9 = vector.load %arg2[%c0_7, %c0_8, %c0_9, %c0_10] : memref<1x4x8x20xbf16, #tpu.memory_space<vmem>>, vector<1x1x8x20xbf16>
    %10 = vector.shape_cast %9 : vector<1x1x8x20xbf16> to vector<8x20xbf16>
    %c0_11 = arith.constant 0 : index
    %c0_12 = arith.constant 0 : index
    %c0_13 = arith.constant 0 : index
    %c0_14 = arith.constant 0 : index
    %11 = vector.load %arg3[%c0_11, %c0_12, %c0_13, %c0_14] : memref<1x4x20x8xbf16, #tpu.memory_space<vmem>>, vector<1x1x20x8xbf16>
    %12 = vector.shape_cast %11 : vector<1x1x20x8xbf16> to vector<20x8xbf16>
    %cst_15 = arith.constant dense<0.000000e+00> : vector<8x8xf32>
    %13 = tpu.matmul %10, %12, %cst_15 {dimension_numbers = #tpu.dot_dimension_numbers<[1], [0], [0], [1], [0, 0, 1, 1], [], []>} : vector<8x20xbf16>, vector<20x8xbf16>, vector<8x8xf32> -> vector<8x8xf32>
    %c0_16 = arith.constant 0 : index
    %c0_17 = arith.constant 0 : index
    %c0_18 = arith.constant 0 : index
    %14 = vector.load %arg8[%c0_16, %c0_17, %c0_18] : memref<4x1x16xf32, #tpu.memory_space<vmem>>, vector<1x1x16xf32>
    %15 = vector.shape_cast %14 : vector<1x1x16xf32> to vector<1x16xf32>
    %16 = vector.shape_cast %15 : vector<1x16xf32> to vector<1x1x16xf32>
    %17 = vector.broadcast %16 : vector<1x1x16xf32> to vector<8x8x16xf32>
    %18 = arith.mulf %2, %17 : vector<8x8x16xf32>
    %cst_19 = arith.constant dense<0.000000e+00> : vector<8x8xf32>
    %19 = vector.multi_reduction <add>, %18, %cst_19 [2] : vector<8x8x16xf32> to vector<8x8xf32>
    %20 = arith.addf %13, %19 : vector<8x8xf32>
    %c0_20 = arith.constant 0 : index
    %c0_21 = arith.constant 0 : index
    %c0_22 = arith.constant 0 : index
    %c0_23 = arith.constant 0 : index
    %21 = vector.load %arg5[%c0_20, %c0_21, %c0_22, %c0_23] : memref<1x4x1x8xf32, #tpu.memory_space<vmem>>, vector<1x1x1x8xf32>
    %22 = vector.shape_cast %21 : vector<1x1x1x8xf32> to vector<1x8xf32>
    %23 = vector.broadcast %22 : vector<1x8xf32> to vector<8x8xf32>
    %24 = arith.addf %20, %23 : vector<8x8xf32>
    %25 = vector.broadcast %8 : vector<1x8xf32> to vector<8x8xf32>
    %26 = arith.addf %24, %25 : vector<8x8xf32>
    %cst_24 = arith.constant dense<0xFF800000> : vector<8xf32>
    %27 = vector.multi_reduction <maximumf>, %26, %cst_24 [1] : vector<8x8xf32> to vector<8xf32>
    %28 = vector.shape_cast %27 : vector<8xf32> to vector<8x1xf32>
    %29 = vector.broadcast %28 : vector<8x1xf32> to vector<8x8xf32>
    %30 = arith.subf %26, %29 : vector<8x8xf32>
    %31 = math.exp %30 : vector<8x8xf32>
    %cst_25 = arith.constant dense<0.000000e+00> : vector<8xf32>
    %32 = vector.multi_reduction <add>, %31, %cst_25 [1] : vector<8x8xf32> to vector<8xf32>
    %33 = vector.shape_cast %32 : vector<8xf32> to vector<8x1xf32>
    %34 = vector.broadcast %33 : vector<8x1xf32> to vector<8x8xf32>
    %35 = arith.divf %31, %34 : vector<8x8xf32>
    %36 = arith.truncf %35 : vector<8x8xf32> to vector<8x8xbf16>
    %c0_26 = arith.constant 0 : index
    %c0_27 = arith.constant 0 : index
    %c0_28 = arith.constant 0 : index
    %c0_29 = arith.constant 0 : index
    %37 = vector.load %arg4[%c0_26, %c0_27, %c0_28, %c0_29] : memref<1x4x8x32xbf16, #tpu.memory_space<vmem>>, vector<1x1x8x32xbf16>
    %38 = vector.shape_cast %37 : vector<1x1x8x32xbf16> to vector<8x32xbf16>
    %cst_30 = arith.constant dense<0.000000e+00> : vector<8x32xf32>
    %39 = tpu.matmul %36, %38, %cst_30 {dimension_numbers = #tpu.dot_dimension_numbers<[1], [0], [0], [1], [0, 0, 1, 1], [], []>} : vector<8x8xbf16>, vector<8x32xbf16>, vector<8x32xf32> -> vector<8x32xf32>
    %40 = vector.shape_cast %35 : vector<8x8xf32> to vector<8x8x1xf32>
    %41 = vector.broadcast %40 : vector<8x8x1xf32> to vector<8x8x16xf32>
    %42 = arith.mulf %41, %2 : vector<8x8x16xf32>
    %cst_31 = arith.constant dense<0.000000e+00> : vector<8x16xf32>
    %43 = vector.multi_reduction <add>, %42, %cst_31 [1] : vector<8x8x16xf32> to vector<8x16xf32>
    %c0_32 = arith.constant 0 : index
    %c1 = arith.constant 1 : index
    %c0_33 = arith.constant 0 : index
    %c0_34 = arith.constant 0 : index
    %44 = vector.load %arg2[%c0_32, %c1, %c0_33, %c0_34] : memref<1x4x8x20xbf16, #tpu.memory_space<vmem>>, vector<1x1x8x20xbf16>
    %45 = vector.shape_cast %44 : vector<1x1x8x20xbf16> to vector<8x20xbf16>
    %c0_35 = arith.constant 0 : index
    %c1_36 = arith.constant 1 : index
    %c0_37 = arith.constant 0 : index
    %c0_38 = arith.constant 0 : index
    %46 = vector.load %arg3[%c0_35, %c1_36, %c0_37, %c0_38] : memref<1x4x20x8xbf16, #tpu.memory_space<vmem>>, vector<1x1x20x8xbf16>
    %47 = vector.shape_cast %46 : vector<1x1x20x8xbf16> to vector<20x8xbf16>
    %cst_39 = arith.constant dense<0.000000e+00> : vector<8x8xf32>
    %48 = tpu.matmul %45, %47, %cst_39 {dimension_numbers = #tpu.dot_dimension_numbers<[1], [0], [0], [1], [0, 0, 1, 1], [], []>} : vector<8x20xbf16>, vector<20x8xbf16>, vector<8x8xf32> -> vector<8x8xf32>
    %c1_40 = arith.constant 1 : index
    %c0_41 = arith.constant 0 : index
    %c0_42 = arith.constant 0 : index
    %49 = vector.load %arg8[%c1_40, %c0_41, %c0_42] : memref<4x1x16xf32, #tpu.memory_space<vmem>>, vector<1x1x16xf32>
    %50 = vector.shape_cast %49 : vector<1x1x16xf32> to vector<1x16xf32>
    %51 = vector.shape_cast %50 : vector<1x16xf32> to vector<1x1x16xf32>
    %52 = vector.broadcast %51 : vector<1x1x16xf32> to vector<8x8x16xf32>
    %53 = arith.mulf %2, %52 : vector<8x8x16xf32>
    %cst_43 = arith.constant dense<0.000000e+00> : vector<8x8xf32>
    %54 = vector.multi_reduction <add>, %53, %cst_43 [2] : vector<8x8x16xf32> to vector<8x8xf32>
    %55 = arith.addf %48, %54 : vector<8x8xf32>
    %c0_44 = arith.constant 0 : index
    %c1_45 = arith.constant 1 : index
    %c0_46 = arith.constant 0 : index
    %c0_47 = arith.constant 0 : index
    %56 = vector.load %arg5[%c0_44, %c1_45, %c0_46, %c0_47] : memref<1x4x1x8xf32, #tpu.memory_space<vmem>>, vector<1x1x1x8xf32>
    %57 = vector.shape_cast %56 : vector<1x1x1x8xf32> to vector<1x8xf32>
    %58 = vector.broadcast %57 : vector<1x8xf32> to vector<8x8xf32>
    %59 = arith.addf %55, %58 : vector<8x8xf32>
    %60 = vector.broadcast %8 : vector<1x8xf32> to vector<8x8xf32>
    %61 = arith.addf %59, %60 : vector<8x8xf32>
    %cst_48 = arith.constant dense<0xFF800000> : vector<8xf32>
    %62 = vector.multi_reduction <maximumf>, %61, %cst_48 [1] : vector<8x8xf32> to vector<8xf32>
    %63 = vector.shape_cast %62 : vector<8xf32> to vector<8x1xf32>
    %64 = vector.broadcast %63 : vector<8x1xf32> to vector<8x8xf32>
    %65 = arith.subf %61, %64 : vector<8x8xf32>
    %66 = math.exp %65 : vector<8x8xf32>
    %cst_49 = arith.constant dense<0.000000e+00> : vector<8xf32>
    %67 = vector.multi_reduction <add>, %66, %cst_49 [1] : vector<8x8xf32> to vector<8xf32>
    %68 = vector.shape_cast %67 : vector<8xf32> to vector<8x1xf32>
    %69 = vector.broadcast %68 : vector<8x1xf32> to vector<8x8xf32>
    %70 = arith.divf %66, %69 : vector<8x8xf32>
    %71 = arith.truncf %70 : vector<8x8xf32> to vector<8x8xbf16>
    %c0_50 = arith.constant 0 : index
    %c1_51 = arith.constant 1 : index
    %c0_52 = arith.constant 0 : index
    %c0_53 = arith.constant 0 : index
    %72 = vector.load %arg4[%c0_50, %c1_51, %c0_52, %c0_53] : memref<1x4x8x32xbf16, #tpu.memory_space<vmem>>, vector<1x1x8x32xbf16>
    %73 = vector.shape_cast %72 : vector<1x1x8x32xbf16> to vector<8x32xbf16>
    %cst_54 = arith.constant dense<0.000000e+00> : vector<8x32xf32>
    %74 = tpu.matmul %71, %73, %cst_54 {dimension_numbers = #tpu.dot_dimension_numbers<[1], [0], [0], [1], [0, 0, 1, 1], [], []>} : vector<8x8xbf16>, vector<8x32xbf16>, vector<8x32xf32> -> vector<8x32xf32>
    %75 = vector.shape_cast %70 : vector<8x8xf32> to vector<8x8x1xf32>
    %76 = vector.broadcast %75 : vector<8x8x1xf32> to vector<8x8x16xf32>
    %77 = arith.mulf %76, %2 : vector<8x8x16xf32>
    %cst_55 = arith.constant dense<0.000000e+00> : vector<8x16xf32>
    %78 = vector.multi_reduction <add>, %77, %cst_55 [1] : vector<8x8x16xf32> to vector<8x16xf32>
    %c0_56 = arith.constant 0 : index
    %c2 = arith.constant 2 : index
    %c0_57 = arith.constant 0 : index
    %c0_58 = arith.constant 0 : index
    %79 = vector.load %arg2[%c0_56, %c2, %c0_57, %c0_58] : memref<1x4x8x20xbf16, #tpu.memory_space<vmem>>, vector<1x1x8x20xbf16>
    %80 = vector.shape_cast %79 : vector<1x1x8x20xbf16> to vector<8x20xbf16>
    %c0_59 = arith.constant 0 : index
    %c2_60 = arith.constant 2 : index
    %c0_61 = arith.constant 0 : index
    %c0_62 = arith.constant 0 : index
    %81 = vector.load %arg3[%c0_59, %c2_60, %c0_61, %c0_62] : memref<1x4x20x8xbf16, #tpu.memory_space<vmem>>, vector<1x1x20x8xbf16>
    %82 = vector.shape_cast %81 : vector<1x1x20x8xbf16> to vector<20x8xbf16>
    %cst_63 = arith.constant dense<0.000000e+00> : vector<8x8xf32>
    %83 = tpu.matmul %80, %82, %cst_63 {dimension_numbers = #tpu.dot_dimension_numbers<[1], [0], [0], [1], [0, 0, 1, 1], [], []>} : vector<8x20xbf16>, vector<20x8xbf16>, vector<8x8xf32> -> vector<8x8xf32>
    %c2_64 = arith.constant 2 : index
    %c0_65 = arith.constant 0 : index
    %c0_66 = arith.constant 0 : index
    %84 = vector.load %arg8[%c2_64, %c0_65, %c0_66] : memref<4x1x16xf32, #tpu.memory_space<vmem>>, vector<1x1x16xf32>
    %85 = vector.shape_cast %84 : vector<1x1x16xf32> to vector<1x16xf32>
    %86 = vector.shape_cast %85 : vector<1x16xf32> to vector<1x1x16xf32>
    %87 = vector.broadcast %86 : vector<1x1x16xf32> to vector<8x8x16xf32>
    %88 = arith.mulf %2, %87 : vector<8x8x16xf32>
    %cst_67 = arith.constant dense<0.000000e+00> : vector<8x8xf32>
    %89 = vector.multi_reduction <add>, %88, %cst_67 [2] : vector<8x8x16xf32> to vector<8x8xf32>
    %90 = arith.addf %83, %89 : vector<8x8xf32>
    %c0_68 = arith.constant 0 : index
    %c2_69 = arith.constant 2 : index
    %c0_70 = arith.constant 0 : index
    %c0_71 = arith.constant 0 : index
    %91 = vector.load %arg5[%c0_68, %c2_69, %c0_70, %c0_71] : memref<1x4x1x8xf32, #tpu.memory_space<vmem>>, vector<1x1x1x8xf32>
    %92 = vector.shape_cast %91 : vector<1x1x1x8xf32> to vector<1x8xf32>
    %93 = vector.broadcast %92 : vector<1x8xf32> to vector<8x8xf32>
    %94 = arith.addf %90, %93 : vector<8x8xf32>
    %95 = vector.broadcast %8 : vector<1x8xf32> to vector<8x8xf32>
    %96 = arith.addf %94, %95 : vector<8x8xf32>
    %cst_72 = arith.constant dense<0xFF800000> : vector<8xf32>
    %97 = vector.multi_reduction <maximumf>, %96, %cst_72 [1] : vector<8x8xf32> to vector<8xf32>
    %98 = vector.shape_cast %97 : vector<8xf32> to vector<8x1xf32>
    %99 = vector.broadcast %98 : vector<8x1xf32> to vector<8x8xf32>
    %100 = arith.subf %96, %99 : vector<8x8xf32>
    %101 = math.exp %100 : vector<8x8xf32>
    %cst_73 = arith.constant dense<0.000000e+00> : vector<8xf32>
    %102 = vector.multi_reduction <add>, %101, %cst_73 [1] : vector<8x8xf32> to vector<8xf32>
    %103 = vector.shape_cast %102 : vector<8xf32> to vector<8x1xf32>
    %104 = vector.broadcast %103 : vector<8x1xf32> to vector<8x8xf32>
    %105 = arith.divf %101, %104 : vector<8x8xf32>
    %106 = arith.truncf %105 : vector<8x8xf32> to vector<8x8xbf16>
    %c0_74 = arith.constant 0 : index
    %c2_75 = arith.constant 2 : index
    %c0_76 = arith.constant 0 : index
    %c0_77 = arith.constant 0 : index
    %107 = vector.load %arg4[%c0_74, %c2_75, %c0_76, %c0_77] : memref<1x4x8x32xbf16, #tpu.memory_space<vmem>>, vector<1x1x8x32xbf16>
    %108 = vector.shape_cast %107 : vector<1x1x8x32xbf16> to vector<8x32xbf16>
    %cst_78 = arith.constant dense<0.000000e+00> : vector<8x32xf32>
    %109 = tpu.matmul %106, %108, %cst_78 {dimension_numbers = #tpu.dot_dimension_numbers<[1], [0], [0], [1], [0, 0, 1, 1], [], []>} : vector<8x8xbf16>, vector<8x32xbf16>, vector<8x32xf32> -> vector<8x32xf32>
    %110 = vector.shape_cast %105 : vector<8x8xf32> to vector<8x8x1xf32>
    %111 = vector.broadcast %110 : vector<8x8x1xf32> to vector<8x8x16xf32>
    %112 = arith.mulf %111, %2 : vector<8x8x16xf32>
    %cst_79 = arith.constant dense<0.000000e+00> : vector<8x16xf32>
    %113 = vector.multi_reduction <add>, %112, %cst_79 [1] : vector<8x8x16xf32> to vector<8x16xf32>
    %c0_80 = arith.constant 0 : index
    %c3 = arith.constant 3 : index
    %c0_81 = arith.constant 0 : index
    %c0_82 = arith.constant 0 : index
    %114 = vector.load %arg2[%c0_80, %c3, %c0_81, %c0_82] : memref<1x4x8x20xbf16, #tpu.memory_space<vmem>>, vector<1x1x8x20xbf16>
    %115 = vector.shape_cast %114 : vector<1x1x8x20xbf16> to vector<8x20xbf16>
    %c0_83 = arith.constant 0 : index
    %c3_84 = arith.constant 3 : index
    %c0_85 = arith.constant 0 : index
    %c0_86 = arith.constant 0 : index
    %116 = vector.load %arg3[%c0_83, %c3_84, %c0_85, %c0_86] : memref<1x4x20x8xbf16, #tpu.memory_space<vmem>>, vector<1x1x20x8xbf16>
    %117 = vector.shape_cast %116 : vector<1x1x20x8xbf16> to vector<20x8xbf16>
    %cst_87 = arith.constant dense<0.000000e+00> : vector<8x8xf32>
    %118 = tpu.matmul %115, %117, %cst_87 {dimension_numbers = #tpu.dot_dimension_numbers<[1], [0], [0], [1], [0, 0, 1, 1], [], []>} : vector<8x20xbf16>, vector<20x8xbf16>, vector<8x8xf32> -> vector<8x8xf32>
    %c3_88 = arith.constant 3 : index
    %c0_89 = arith.constant 0 : index
    %c0_90 = arith.constant 0 : index
    %119 = vector.load %arg8[%c3_88, %c0_89, %c0_90] : memref<4x1x16xf32, #tpu.memory_space<vmem>>, vector<1x1x16xf32>
    %120 = vector.shape_cast %119 : vector<1x1x16xf32> to vector<1x16xf32>
    %121 = vector.shape_cast %120 : vector<1x16xf32> to vector<1x1x16xf32>
    %122 = vector.broadcast %121 : vector<1x1x16xf32> to vector<8x8x16xf32>
    %123 = arith.mulf %2, %122 : vector<8x8x16xf32>
    %cst_91 = arith.constant dense<0.000000e+00> : vector<8x8xf32>
    %124 = vector.multi_reduction <add>, %123, %cst_91 [2] : vector<8x8x16xf32> to vector<8x8xf32>
    %125 = arith.addf %118, %124 : vector<8x8xf32>
    %c0_92 = arith.constant 0 : index
    %c3_93 = arith.constant 3 : index
    %c0_94 = arith.constant 0 : index
    %c0_95 = arith.constant 0 : index
    %126 = vector.load %arg5[%c0_92, %c3_93, %c0_94, %c0_95] : memref<1x4x1x8xf32, #tpu.memory_space<vmem>>, vector<1x1x1x8xf32>
    %127 = vector.shape_cast %126 : vector<1x1x1x8xf32> to vector<1x8xf32>
    %128 = vector.broadcast %127 : vector<1x8xf32> to vector<8x8xf32>
    %129 = arith.addf %125, %128 : vector<8x8xf32>
    %130 = vector.broadcast %8 : vector<1x8xf32> to vector<8x8xf32>
    %131 = arith.addf %129, %130 : vector<8x8xf32>
    %cst_96 = arith.constant dense<0xFF800000> : vector<8xf32>
    %132 = vector.multi_reduction <maximumf>, %131, %cst_96 [1] : vector<8x8xf32> to vector<8xf32>
    %133 = vector.shape_cast %132 : vector<8xf32> to vector<8x1xf32>
    %134 = vector.broadcast %133 : vector<8x1xf32> to vector<8x8xf32>
    %135 = arith.subf %131, %134 : vector<8x8xf32>
    %136 = math.exp %135 : vector<8x8xf32>
    %cst_97 = arith.constant dense<0.000000e+00> : vector<8xf32>
    %137 = vector.multi_reduction <add>, %136, %cst_97 [1] : vector<8x8xf32> to vector<8xf32>
    %138 = vector.shape_cast %137 : vector<8xf32> to vector<8x1xf32>
    %139 = vector.broadcast %138 : vector<8x1xf32> to vector<8x8xf32>
    %140 = arith.divf %136, %139 : vector<8x8xf32>
    %141 = arith.truncf %140 : vector<8x8xf32> to vector<8x8xbf16>
    %c0_98 = arith.constant 0 : index
    %c3_99 = arith.constant 3 : index
    %c0_100 = arith.constant 0 : index
    %c0_101 = arith.constant 0 : index
    %142 = vector.load %arg4[%c0_98, %c3_99, %c0_100, %c0_101] : memref<1x4x8x32xbf16, #tpu.memory_space<vmem>>, vector<1x1x8x32xbf16>
    %143 = vector.shape_cast %142 : vector<1x1x8x32xbf16> to vector<8x32xbf16>
    %cst_102 = arith.constant dense<0.000000e+00> : vector<8x32xf32>
    %144 = tpu.matmul %141, %143, %cst_102 {dimension_numbers = #tpu.dot_dimension_numbers<[1], [0], [0], [1], [0, 0, 1, 1], [], []>} : vector<8x8xbf16>, vector<8x32xbf16>, vector<8x32xf32> -> vector<8x32xf32>
    %145 = vector.shape_cast %140 : vector<8x8xf32> to vector<8x8x1xf32>
    %146 = vector.broadcast %145 : vector<8x8x1xf32> to vector<8x8x16xf32>
    %147 = arith.mulf %146, %2 : vector<8x8x16xf32>
    %cst_103 = arith.constant dense<0.000000e+00> : vector<8x16xf32>
    %148 = vector.multi_reduction <add>, %147, %cst_103 [1] : vector<8x8x16xf32> to vector<8x16xf32>
    %149 = tpu.concatenate %39, %74, %109, %144, %43, %78, %113, %148 in 1 : vector<8x32xf32>, vector<8x32xf32>, vector<8x32xf32>, vector<8x32xf32>, vector<8x16xf32>, vector<8x16xf32>, vector<8x16xf32>, vector<8x16xf32> -> vector<8x192xf32>
    %c0_104 = arith.constant 0 : index
    %c0_105 = arith.constant 0 : index
    %c0_106 = arith.constant 0 : index
    %150 = vector.load %arg9[%c0_104, %c0_105, %c0_106] : memref<1x8x192xf32, #tpu.memory_space<vmem>>, vector<1x8x192xf32>
    %151 = vector.shape_cast %150 : vector<1x8x192xf32> to vector<8x192xf32>
    %152 = vector.shape_cast %149 : vector<8x192xf32> to vector<1x8x192xf32>
    tpu.vector_store %arg9[%c0_104, %c0_105, %c0_106], %152 {strides = array<i32>} : memref<1x8x192xf32, #tpu.memory_space<vmem>>, vector<1x8x192xf32>,
    return
  }
  func.func @transform_0(%arg0: i32, %arg1: i32) -> (i32, i32, i32, i32) {
    %c0_i32 = arith.constant 0 : i32
    %c0_i32_0 = arith.constant 0 : i32
    %c0_i32_1 = arith.constant 0 : i32
    return %arg0, %c0_i32, %arg1, %c0_i32_0 : i32, i32, i32, i32
  }
  func.func @transform_1(%arg0: i32, %arg1: i32) -> (i32, i32, i32, i32) {
    %c0_i32 = arith.constant 0 : i32
    %c0_i32_0 = arith.constant 0 : i32
    %c0_i32_1 = arith.constant 0 : i32
    %c0_i32_2 = arith.constant 0 : i32
    return %arg0, %c0_i32, %c0_i32_0, %c0_i32_1 : i32, i32, i32, i32
  }
  func.func @transform_2(%arg0: i32, %arg1: i32) -> (i32, i32, i32, i32) {
    %c0_i32 = arith.constant 0 : i32
    %c0_i32_0 = arith.constant 0 : i32
    %c0_i32_1 = arith.constant 0 : i32
    %c0_i32_2 = arith.constant 0 : i32
    return %arg0, %c0_i32, %c0_i32_0, %c0_i32_1 : i32, i32, i32, i32
  }
  func.func @transform_3(%arg0: i32, %arg1: i32) -> (i32, i32, i32, i32) {
    %c0_i32 = arith.constant 0 : i32
    %c0_i32_0 = arith.constant 0 : i32
    %c0_i32_1 = arith.constant 0 : i32
    %c0_i32_2 = arith.constant 0 : i32
    return %arg0, %c0_i32, %c0_i32_0, %c0_i32_1 : i32, i32, i32, i32
  }
  func.func @transform_4(%arg0: i32, %arg1: i32) -> (i32, i32, i32) {
    %c0_i32 = arith.constant 0 : i32
    %c0_i32_0 = arith.constant 0 : i32
    %c0_i32_1 = arith.constant 0 : i32
    return %arg0, %c0_i32, %c0_i32_0 : i32, i32, i32
  }
  func.func @transform_5(%arg0: i32, %arg1: i32) -> (i32, i32, i32, i32) {
    %c0_i32 = arith.constant 0 : i32
    %c0_i32_0 = arith.constant 0 : i32
    %c0_i32_1 = arith.constant 0 : i32
    return %arg0, %arg1, %c0_i32, %c0_i32_0 : i32, i32, i32, i32
  }
  func.func @transform_6(%arg0: i32, %arg1: i32) -> (i32, i32, i32) {
    %c0_i32 = arith.constant 0 : i32
    %c0_i32_0 = arith.constant 0 : i32
    %c0_i32_1 = arith.constant 0 : i32
    %c0_i32_2 = arith.constant 0 : i32
    return %c0_i32, %c0_i32_0, %c0_i32_1 : i32, i32, i32
  }
  func.func @transform_7(%arg0: i32, %arg1: i32) -> (i32, i32, i32) {
    %c0_i32 = arith.constant 0 : i32
    %c0_i32_0 = arith.constant 0 : i32
    return %arg0, %arg1, %c0_i32 : i32, i32, i32
  }
}

module attributes {stable_mosaic.version = 11 : i64} {
  func.func @kern(%arg0: i32, %arg1: memref<8x224xf32, #tpu.memory_space<vmem>>, %arg2: memref<224x32xbf16, #tpu.memory_space<vmem>>, %arg3: memref<1x32xf32, #tpu.memory_space<vmem>>, %arg4: memref<8x32xf32, #tpu.memory_space<vmem>>) attributes {dimension_semantics = [#tpu.dimension_semantics<parallel>], iteration_bounds = array<i64: 2>, scalar_prefetch = 0 : i64, scratch_operands = 0 : i64, tpu.core_type = #tpu.core_type<tc>, window_params = [{transform_indices = @transform_0, window_bounds = array<i64: 8, 224>}, {pipeline_mode = #tpu.pipeline_mode<synchronous>, transform_indices = @transform_1, window_bounds = array<i64: 224, 32>}, {pipeline_mode = #tpu.pipeline_mode<synchronous>, transform_indices = @transform_2, window_bounds = array<i64: 1, 32>}, {transform_indices = @transform_3, window_bounds = array<i64: 8, 32>}]} {
    %c0 = arith.constant 0 : index
    %c0_0 = arith.constant 0 : index
    %0 = vector.load %arg1[%c0, %c0_0] : memref<8x224xf32, #tpu.memory_space<vmem>>, vector<8x224xf32>
    %1 = arith.truncf %0 : vector<8x224xf32> to vector<8x224xbf16>
    %c0_1 = arith.constant 0 : index
    %c0_2 = arith.constant 0 : index
    %2 = vector.load %arg2[%c0_1, %c0_2] : memref<224x32xbf16, #tpu.memory_space<vmem>>, vector<224x32xbf16>
    %cst = arith.constant dense<0.000000e+00> : vector<8x32xf32>
    %3 = tpu.matmul %1, %2, %cst {dimension_numbers = #tpu.dot_dimension_numbers<[1], [0], [0], [1], [0, 0, 1, 1], [], []>} : vector<8x224xbf16>, vector<224x32xbf16>, vector<8x32xf32> -> vector<8x32xf32>
    %c0_3 = arith.constant 0 : index
    %c0_4 = arith.constant 0 : index
    %4 = vector.load %arg3[%c0_3, %c0_4] : memref<1x32xf32, #tpu.memory_space<vmem>>, vector<1x32xf32>
    %5 = vector.broadcast %4 : vector<1x32xf32> to vector<8x32xf32>
    %6 = arith.addf %3, %5 : vector<8x32xf32>
    %c0_5 = arith.constant 0 : index
    %c0_6 = arith.constant 0 : index
    %7 = vector.load %arg4[%c0_5, %c0_6] : memref<8x32xf32, #tpu.memory_space<vmem>>, vector<8x32xf32>
    tpu.vector_store %arg4[%c0_5, %c0_6], %6 {strides = array<i32>} : memref<8x32xf32, #tpu.memory_space<vmem>>, vector<8x32xf32>,
    return
  }
  func.func @transform_0(%arg0: i32) -> (i32, i32) {
    %c0_i32 = arith.constant 0 : i32
    %c0_i32_0 = arith.constant 0 : i32
    return %arg0, %c0_i32 : i32, i32
  }
  func.func @transform_1(%arg0: i32) -> (i32, i32) {
    %c0_i32 = arith.constant 0 : i32
    %c0_i32_0 = arith.constant 0 : i32
    %c0_i32_1 = arith.constant 0 : i32
    return %c0_i32, %c0_i32_0 : i32, i32
  }
  func.func @transform_2(%arg0: i32) -> (i32, i32) {
    %c0_i32 = arith.constant 0 : i32
    %c0_i32_0 = arith.constant 0 : i32
    %c0_i32_1 = arith.constant 0 : i32
    return %c0_i32, %c0_i32_0 : i32, i32
  }
  func.func @transform_3(%arg0: i32) -> (i32, i32) {
    %c0_i32 = arith.constant 0 : i32
    %c0_i32_0 = arith.constant 0 : i32
    return %arg0, %c0_i32 : i32, i32
  }
}

module attributes {stable_mosaic.version = 11 : i64} {
  func.func @kern(%arg0: i32, %arg1: memref<8x32xf32, #tpu.memory_space<vmem>>, %arg2: memref<8x32xf32, #tpu.memory_space<vmem>>, %arg3: memref<1x32xf32, #tpu.memory_space<vmem>>, %arg4: memref<1x32xf32, #tpu.memory_space<vmem>>, %arg5: memref<32x32xbf16, #tpu.memory_space<vmem>>, %arg6: memref<1x32xf32, #tpu.memory_space<vmem>>, %arg7: memref<32x32xbf16, #tpu.memory_space<vmem>>, %arg8: memref<1x32xf32, #tpu.memory_space<vmem>>, %arg9: memref<32x32xbf16, #tpu.memory_space<vmem>>, %arg10: memref<1x32xf32, #tpu.memory_space<vmem>>, %arg11: memref<1x32xf32, #tpu.memory_space<vmem>>, %arg12: memref<1x32xf32, #tpu.memory_space<vmem>>, %arg13: memref<32x6xbf16, #tpu.memory_space<vmem>>, %arg14: memref<1x6xf32, #tpu.memory_space<vmem>>, %arg15: memref<8x32xf32, #tpu.memory_space<vmem>>, %arg16: memref<8x6xf32, #tpu.memory_space<vmem>>) attributes {dimension_semantics = [#tpu.dimension_semantics<parallel>], iteration_bounds = array<i64: 2>, scalar_prefetch = 0 : i64, scratch_operands = 0 : i64, tpu.core_type = #tpu.core_type<tc>, window_params = [{transform_indices = @transform_0, window_bounds = array<i64: 8, 32>}, {transform_indices = @transform_1, window_bounds = array<i64: 8, 32>}, {pipeline_mode = #tpu.pipeline_mode<synchronous>, transform_indices = @transform_2, window_bounds = array<i64: 1, 32>}, {pipeline_mode = #tpu.pipeline_mode<synchronous>, transform_indices = @transform_3, window_bounds = array<i64: 1, 32>}, {pipeline_mode = #tpu.pipeline_mode<synchronous>, transform_indices = @transform_4, window_bounds = array<i64: 32, 32>}, {pipeline_mode = #tpu.pipeline_mode<synchronous>, transform_indices = @transform_5, window_bounds = array<i64: 1, 32>}, {pipeline_mode = #tpu.pipeline_mode<synchronous>, transform_indices = @transform_6, window_bounds = array<i64: 32, 32>}, {pipeline_mode = #tpu.pipeline_mode<synchronous>, transform_indices = @transform_7, window_bounds = array<i64: 1, 32>}, {pipeline_mode = #tpu.pipeline_mode<synchronous>, transform_indices = @transform_8, window_bounds = array<i64: 32, 32>}, {pipeline_mode = #tpu.pipeline_mode<synchronous>, transform_indices = @transform_9, window_bounds = array<i64: 1, 32>}, {pipeline_mode = #tpu.pipeline_mode<synchronous>, transform_indices = @transform_10, window_bounds = array<i64: 1, 32>}, {pipeline_mode = #tpu.pipeline_mode<synchronous>, transform_indices = @transform_11, window_bounds = array<i64: 1, 32>}, {pipeline_mode = #tpu.pipeline_mode<synchronous>, transform_indices = @transform_12, window_bounds = array<i64: 32, 6>}, {pipeline_mode = #tpu.pipeline_mode<synchronous>, transform_indices = @transform_13, window_bounds = array<i64: 1, 6>}, {transform_indices = @transform_14, window_bounds = array<i64: 8, 32>}, {transform_indices = @transform_15, window_bounds = array<i64: 8, 6>}]} {
    %c0 = arith.constant 0 : index
    %c0_0 = arith.constant 0 : index
    %0 = vector.load %arg1[%c0, %c0_0] : memref<8x32xf32, #tpu.memory_space<vmem>>, vector<8x32xf32>
    %c0_1 = arith.constant 0 : index
    %c0_2 = arith.constant 0 : index
    %1 = vector.load %arg2[%c0_1, %c0_2] : memref<8x32xf32, #tpu.memory_space<vmem>>, vector<8x32xf32>
    %2 = arith.addf %0, %1 : vector<8x32xf32>
    %c0_3 = arith.constant 0 : index
    %c0_4 = arith.constant 0 : index
    %3 = vector.load %arg3[%c0_3, %c0_4] : memref<1x32xf32, #tpu.memory_space<vmem>>, vector<1x32xf32>
    %c0_5 = arith.constant 0 : index
    %c0_6 = arith.constant 0 : index
    %4 = vector.load %arg4[%c0_5, %c0_6] : memref<1x32xf32, #tpu.memory_space<vmem>>, vector<1x32xf32>
    %cst = arith.constant dense<0.000000e+00> : vector<8xf32>
    %5 = vector.multi_reduction <add>, %2, %cst [1] : vector<8x32xf32> to vector<8xf32>
    %6 = vector.shape_cast %5 : vector<8xf32> to vector<8x1xf32>
    %cst_7 = arith.constant 3.200000e+01 : f32
    %7 = vector.broadcast %cst_7 : f32 to vector<8x1xf32>
    %8 = arith.divf %6, %7 : vector<8x1xf32>
    %9 = vector.broadcast %8 : vector<8x1xf32> to vector<8x32xf32>
    %10 = arith.subf %2, %9 : vector<8x32xf32>
    %11 = arith.mulf %10, %10 : vector<8x32xf32>
    %cst_8 = arith.constant dense<0.000000e+00> : vector<8xf32>
    %12 = vector.multi_reduction <add>, %11, %cst_8 [1] : vector<8x32xf32> to vector<8xf32>
    %13 = vector.shape_cast %12 : vector<8xf32> to vector<8x1xf32>
    %cst_9 = arith.constant 3.200000e+01 : f32
    %14 = vector.broadcast %cst_9 : f32 to vector<8x1xf32>
    %15 = arith.divf %13, %14 : vector<8x1xf32>
    %16 = vector.broadcast %8 : vector<8x1xf32> to vector<8x32xf32>
    %17 = arith.subf %2, %16 : vector<8x32xf32>
    %cst_10 = arith.constant 9.99999974E-6 : f32
    %18 = vector.broadcast %cst_10 : f32 to vector<8x1xf32>
    %19 = arith.addf %15, %18 : vector<8x1xf32>
    %20 = math.rsqrt %19 : vector<8x1xf32>
    %21 = vector.broadcast %20 : vector<8x1xf32> to vector<8x32xf32>
    %22 = arith.mulf %17, %21 : vector<8x32xf32>
    %23 = vector.broadcast %3 : vector<1x32xf32> to vector<8x32xf32>
    %24 = arith.mulf %22, %23 : vector<8x32xf32>
    %25 = vector.broadcast %4 : vector<1x32xf32> to vector<8x32xf32>
    %26 = arith.addf %24, %25 : vector<8x32xf32>
    %27 = arith.truncf %26 : vector<8x32xf32> to vector<8x32xbf16>
    %c0_11 = arith.constant 0 : index
    %c0_12 = arith.constant 0 : index
    %28 = vector.load %arg5[%c0_11, %c0_12] : memref<32x32xbf16, #tpu.memory_space<vmem>>, vector<32x32xbf16>
    %cst_13 = arith.constant dense<0.000000e+00> : vector<8x32xf32>
    %29 = tpu.matmul %27, %28, %cst_13 {dimension_numbers = #tpu.dot_dimension_numbers<[1], [0], [0], [1], [0, 0, 1, 1], [], []>} : vector<8x32xbf16>, vector<32x32xbf16>, vector<8x32xf32> -> vector<8x32xf32>
    %c0_14 = arith.constant 0 : index
    %c0_15 = arith.constant 0 : index
    %30 = vector.load %arg6[%c0_14, %c0_15] : memref<1x32xf32, #tpu.memory_space<vmem>>, vector<1x32xf32>
    %31 = vector.broadcast %30 : vector<1x32xf32> to vector<8x32xf32>
    %32 = arith.addf %29, %31 : vector<8x32xf32>
    %cst_16 = arith.constant 0.000000e+00 : f32
    %33 = vector.broadcast %cst_16 : f32 to vector<8x32xf32>
    %34 = arith.maximumf %32, %33 : vector<8x32xf32>
    %35 = arith.truncf %34 : vector<8x32xf32> to vector<8x32xbf16>
    %c0_17 = arith.constant 0 : index
    %c0_18 = arith.constant 0 : index
    %36 = vector.load %arg7[%c0_17, %c0_18] : memref<32x32xbf16, #tpu.memory_space<vmem>>, vector<32x32xbf16>
    %cst_19 = arith.constant dense<0.000000e+00> : vector<8x32xf32>
    %37 = tpu.matmul %35, %36, %cst_19 {dimension_numbers = #tpu.dot_dimension_numbers<[1], [0], [0], [1], [0, 0, 1, 1], [], []>} : vector<8x32xbf16>, vector<32x32xbf16>, vector<8x32xf32> -> vector<8x32xf32>
    %c0_20 = arith.constant 0 : index
    %c0_21 = arith.constant 0 : index
    %38 = vector.load %arg8[%c0_20, %c0_21] : memref<1x32xf32, #tpu.memory_space<vmem>>, vector<1x32xf32>
    %39 = vector.broadcast %38 : vector<1x32xf32> to vector<8x32xf32>
    %40 = arith.addf %37, %39 : vector<8x32xf32>
    %cst_22 = arith.constant 0.000000e+00 : f32
    %41 = vector.broadcast %cst_22 : f32 to vector<8x32xf32>
    %42 = arith.maximumf %40, %41 : vector<8x32xf32>
    %43 = arith.truncf %42 : vector<8x32xf32> to vector<8x32xbf16>
    %c0_23 = arith.constant 0 : index
    %c0_24 = arith.constant 0 : index
    %44 = vector.load %arg9[%c0_23, %c0_24] : memref<32x32xbf16, #tpu.memory_space<vmem>>, vector<32x32xbf16>
    %cst_25 = arith.constant dense<0.000000e+00> : vector<8x32xf32>
    %45 = tpu.matmul %43, %44, %cst_25 {dimension_numbers = #tpu.dot_dimension_numbers<[1], [0], [0], [1], [0, 0, 1, 1], [], []>} : vector<8x32xbf16>, vector<32x32xbf16>, vector<8x32xf32> -> vector<8x32xf32>
    %c0_26 = arith.constant 0 : index
    %c0_27 = arith.constant 0 : index
    %46 = vector.load %arg10[%c0_26, %c0_27] : memref<1x32xf32, #tpu.memory_space<vmem>>, vector<1x32xf32>
    %47 = vector.broadcast %46 : vector<1x32xf32> to vector<8x32xf32>
    %48 = arith.addf %45, %47 : vector<8x32xf32>
    %49 = arith.addf %26, %48 : vector<8x32xf32>
    %c0_28 = arith.constant 0 : index
    %c0_29 = arith.constant 0 : index
    %50 = vector.load %arg11[%c0_28, %c0_29] : memref<1x32xf32, #tpu.memory_space<vmem>>, vector<1x32xf32>
    %c0_30 = arith.constant 0 : index
    %c0_31 = arith.constant 0 : index
    %51 = vector.load %arg12[%c0_30, %c0_31] : memref<1x32xf32, #tpu.memory_space<vmem>>, vector<1x32xf32>
    %cst_32 = arith.constant dense<0.000000e+00> : vector<8xf32>
    %52 = vector.multi_reduction <add>, %49, %cst_32 [1] : vector<8x32xf32> to vector<8xf32>
    %53 = vector.shape_cast %52 : vector<8xf32> to vector<8x1xf32>
    %cst_33 = arith.constant 3.200000e+01 : f32
    %54 = vector.broadcast %cst_33 : f32 to vector<8x1xf32>
    %55 = arith.divf %53, %54 : vector<8x1xf32>
    %56 = vector.broadcast %55 : vector<8x1xf32> to vector<8x32xf32>
    %57 = arith.subf %49, %56 : vector<8x32xf32>
    %58 = arith.mulf %57, %57 : vector<8x32xf32>
    %cst_34 = arith.constant dense<0.000000e+00> : vector<8xf32>
    %59 = vector.multi_reduction <add>, %58, %cst_34 [1] : vector<8x32xf32> to vector<8xf32>
    %60 = vector.shape_cast %59 : vector<8xf32> to vector<8x1xf32>
    %cst_35 = arith.constant 3.200000e+01 : f32
    %61 = vector.broadcast %cst_35 : f32 to vector<8x1xf32>
    %62 = arith.divf %60, %61 : vector<8x1xf32>
    %63 = vector.broadcast %55 : vector<8x1xf32> to vector<8x32xf32>
    %64 = arith.subf %49, %63 : vector<8x32xf32>
    %cst_36 = arith.constant 9.99999974E-6 : f32
    %65 = vector.broadcast %cst_36 : f32 to vector<8x1xf32>
    %66 = arith.addf %62, %65 : vector<8x1xf32>
    %67 = math.rsqrt %66 : vector<8x1xf32>
    %68 = vector.broadcast %67 : vector<8x1xf32> to vector<8x32xf32>
    %69 = arith.mulf %64, %68 : vector<8x32xf32>
    %70 = vector.broadcast %50 : vector<1x32xf32> to vector<8x32xf32>
    %71 = arith.mulf %69, %70 : vector<8x32xf32>
    %72 = vector.broadcast %51 : vector<1x32xf32> to vector<8x32xf32>
    %73 = arith.addf %71, %72 : vector<8x32xf32>
    %c0_37 = arith.constant 0 : index
    %c0_38 = arith.constant 0 : index
    %74 = vector.load %arg15[%c0_37, %c0_38] : memref<8x32xf32, #tpu.memory_space<vmem>>, vector<8x32xf32>
    tpu.vector_store %arg15[%c0_37, %c0_38], %73 {strides = array<i32>} : memref<8x32xf32, #tpu.memory_space<vmem>>, vector<8x32xf32>,
    %75 = arith.truncf %73 : vector<8x32xf32> to vector<8x32xbf16>
    %c0_39 = arith.constant 0 : index
    %c0_40 = arith.constant 0 : index
    %76 = vector.load %arg13[%c0_39, %c0_40] : memref<32x6xbf16, #tpu.memory_space<vmem>>, vector<32x6xbf16>
    %cst_41 = arith.constant dense<0.000000e+00> : vector<8x6xf32>
    %77 = tpu.matmul %75, %76, %cst_41 {dimension_numbers = #tpu.dot_dimension_numbers<[1], [0], [0], [1], [0, 0, 1, 1], [], []>} : vector<8x32xbf16>, vector<32x6xbf16>, vector<8x6xf32> -> vector<8x6xf32>
    %c0_42 = arith.constant 0 : index
    %c0_43 = arith.constant 0 : index
    %78 = vector.load %arg14[%c0_42, %c0_43] : memref<1x6xf32, #tpu.memory_space<vmem>>, vector<1x6xf32>
    %79 = vector.broadcast %78 : vector<1x6xf32> to vector<8x6xf32>
    %80 = arith.addf %77, %79 : vector<8x6xf32>
    %c0_44 = arith.constant 0 : index
    %c0_45 = arith.constant 0 : index
    %81 = vector.load %arg16[%c0_44, %c0_45] : memref<8x6xf32, #tpu.memory_space<vmem>>, vector<8x6xf32>
    tpu.vector_store %arg16[%c0_44, %c0_45], %80 {strides = array<i32>} : memref<8x6xf32, #tpu.memory_space<vmem>>, vector<8x6xf32>,
    return
  }
  func.func @transform_0(%arg0: i32) -> (i32, i32) {
    %c0_i32 = arith.constant 0 : i32
    %c0_i32_0 = arith.constant 0 : i32
    return %arg0, %c0_i32 : i32, i32
  }
  func.func @transform_1(%arg0: i32) -> (i32, i32) {
    %c0_i32 = arith.constant 0 : i32
    %c0_i32_0 = arith.constant 0 : i32
    return %arg0, %c0_i32 : i32, i32
  }
  func.func @transform_2(%arg0: i32) -> (i32, i32) {
    %c0_i32 = arith.constant 0 : i32
    %c0_i32_0 = arith.constant 0 : i32
    %c0_i32_1 = arith.constant 0 : i32
    return %c0_i32, %c0_i32_0 : i32, i32
  }
  func.func @transform_3(%arg0: i32) -> (i32, i32) {
    %c0_i32 = arith.constant 0 : i32
    %c0_i32_0 = arith.constant 0 : i32
    %c0_i32_1 = arith.constant 0 : i32
    return %c0_i32, %c0_i32_0 : i32, i32
  }
  func.func @transform_4(%arg0: i32) -> (i32, i32) {
    %c0_i32 = arith.constant 0 : i32
    %c0_i32_0 = arith.constant 0 : i32
    %c0_i32_1 = arith.constant 0 : i32
    return %c0_i32, %c0_i32_0 : i32, i32
  }
  func.func @transform_5(%arg0: i32) -> (i32, i32) {
    %c0_i32 = arith.constant 0 : i32
    %c0_i32_0 = arith.constant 0 : i32
    %c0_i32_1 = arith.constant 0 : i32
    return %c0_i32, %c0_i32_0 : i32, i32
  }
  func.func @transform_6(%arg0: i32) -> (i32, i32) {
    %c0_i32 = arith.constant 0 : i32
    %c0_i32_0 = arith.constant 0 : i32
    %c0_i32_1 = arith.constant 0 : i32
    return %c0_i32, %c0_i32_0 : i32, i32
  }
  func.func @transform_7(%arg0: i32) -> (i32, i32) {
    %c0_i32 = arith.constant 0 : i32
    %c0_i32_0 = arith.constant 0 : i32
    %c0_i32_1 = arith.constant 0 : i32
    return %c0_i32, %c0_i32_0 : i32, i32
  }
  func.func @transform_8(%arg0: i32) -> (i32, i32) {
    %c0_i32 = arith.constant 0 : i32
    %c0_i32_0 = arith.constant 0 : i32
    %c0_i32_1 = arith.constant 0 : i32
    return %c0_i32, %c0_i32_0 : i32, i32
  }
  func.func @transform_9(%arg0: i32) -> (i32, i32) {
    %c0_i32 = arith.constant 0 : i32
    %c0_i32_0 = arith.constant 0 : i32
    %c0_i32_1 = arith.constant 0 : i32
    return %c0_i32, %c0_i32_0 : i32, i32
  }
  func.func @transform_10(%arg0: i32) -> (i32, i32) {
    %c0_i32 = arith.constant 0 : i32
    %c0_i32_0 = arith.constant 0 : i32
    %c0_i32_1 = arith.constant 0 : i32
    return %c0_i32, %c0_i32_0 : i32, i32
  }
  func.func @transform_11(%arg0: i32) -> (i32, i32) {
    %c0_i32 = arith.constant 0 : i32
    %c0_i32_0 = arith.constant 0 : i32
    %c0_i32_1 = arith.constant 0 : i32
    return %c0_i32, %c0_i32_0 : i32, i32
  }
  func.func @transform_12(%arg0: i32) -> (i32, i32) {
    %c0_i32 = arith.constant 0 : i32
    %c0_i32_0 = arith.constant 0 : i32
    %c0_i32_1 = arith.constant 0 : i32
    return %c0_i32, %c0_i32_0 : i32, i32
  }
  func.func @transform_13(%arg0: i32) -> (i32, i32) {
    %c0_i32 = arith.constant 0 : i32
    %c0_i32_0 = arith.constant 0 : i32
    %c0_i32_1 = arith.constant 0 : i32
    return %c0_i32, %c0_i32_0 : i32, i32
  }
  func.func @transform_14(%arg0: i32) -> (i32, i32) {
    %c0_i32 = arith.constant 0 : i32
    %c0_i32_0 = arith.constant 0 : i32
    return %arg0, %c0_i32 : i32, i32
  }
  func.func @transform_15(%arg0: i32) -> (i32, i32) {
    %c0_i32 = arith.constant 0 : i32
    %c0_i32_0 = arith.constant 0 : i32
    return %arg0, %c0_i32 : i32, i32
  }
}

module attributes {stable_mosaic.version = 11 : i64} {
  func.func @kern(%arg0: i32, %arg1: memref<8x32xf32, #tpu.memory_space<vmem>>, %arg2: memref<8x32xf32, #tpu.memory_space<vmem>>, %arg3: memref<1x32xf32, #tpu.memory_space<vmem>>, %arg4: memref<1x32xf32, #tpu.memory_space<vmem>>, %arg5: memref<32x32xbf16, #tpu.memory_space<vmem>>, %arg6: memref<1x32xf32, #tpu.memory_space<vmem>>, %arg7: memref<32x32xbf16, #tpu.memory_space<vmem>>, %arg8: memref<1x32xf32, #tpu.memory_space<vmem>>, %arg9: memref<32x32xbf16, #tpu.memory_space<vmem>>, %arg10: memref<1x32xf32, #tpu.memory_space<vmem>>, %arg11: memref<1x32xf32, #tpu.memory_space<vmem>>, %arg12: memref<1x32xf32, #tpu.memory_space<vmem>>, %arg13: memref<32x6xbf16, #tpu.memory_space<vmem>>, %arg14: memref<1x6xf32, #tpu.memory_space<vmem>>, %arg15: memref<8x32xf32, #tpu.memory_space<vmem>>, %arg16: memref<8x6xf32, #tpu.memory_space<vmem>>) attributes {dimension_semantics = [#tpu.dimension_semantics<parallel>], iteration_bounds = array<i64: 2>, scalar_prefetch = 0 : i64, scratch_operands = 0 : i64, tpu.core_type = #tpu.core_type<tc>, window_params = [{transform_indices = @transform_0, window_bounds = array<i64: 8, 32>}, {transform_indices = @transform_1, window_bounds = array<i64: 8, 32>}, {pipeline_mode = #tpu.pipeline_mode<synchronous>, transform_indices = @transform_2, window_bounds = array<i64: 1, 32>}, {pipeline_mode = #tpu.pipeline_mode<synchronous>, transform_indices = @transform_3, window_bounds = array<i64: 1, 32>}, {pipeline_mode = #tpu.pipeline_mode<synchronous>, transform_indices = @transform_4, window_bounds = array<i64: 32, 32>}, {pipeline_mode = #tpu.pipeline_mode<synchronous>, transform_indices = @transform_5, window_bounds = array<i64: 1, 32>}, {pipeline_mode = #tpu.pipeline_mode<synchronous>, transform_indices = @transform_6, window_bounds = array<i64: 32, 32>}, {pipeline_mode = #tpu.pipeline_mode<synchronous>, transform_indices = @transform_7, window_bounds = array<i64: 1, 32>}, {pipeline_mode = #tpu.pipeline_mode<synchronous>, transform_indices = @transform_8, window_bounds = array<i64: 32, 32>}, {pipeline_mode = #tpu.pipeline_mode<synchronous>, transform_indices = @transform_9, window_bounds = array<i64: 1, 32>}, {pipeline_mode = #tpu.pipeline_mode<synchronous>, transform_indices = @transform_10, window_bounds = array<i64: 1, 32>}, {pipeline_mode = #tpu.pipeline_mode<synchronous>, transform_indices = @transform_11, window_bounds = array<i64: 1, 32>}, {pipeline_mode = #tpu.pipeline_mode<synchronous>, transform_indices = @transform_12, window_bounds = array<i64: 32, 6>}, {pipeline_mode = #tpu.pipeline_mode<synchronous>, transform_indices = @transform_13, window_bounds = array<i64: 1, 6>}, {transform_indices = @transform_14, window_bounds = array<i64: 8, 32>}, {transform_indices = @transform_15, window_bounds = array<i64: 8, 6>}]} {
    %c0 = arith.constant 0 : index
    %c0_0 = arith.constant 0 : index
    %0 = vector.load %arg1[%c0, %c0_0] : memref<8x32xf32, #tpu.memory_space<vmem>>, vector<8x32xf32>
    %c0_1 = arith.constant 0 : index
    %c0_2 = arith.constant 0 : index
    %1 = vector.load %arg2[%c0_1, %c0_2] : memref<8x32xf32, #tpu.memory_space<vmem>>, vector<8x32xf32>
    %2 = arith.addf %0, %1 : vector<8x32xf32>
    %c0_3 = arith.constant 0 : index
    %c0_4 = arith.constant 0 : index
    %3 = vector.load %arg3[%c0_3, %c0_4] : memref<1x32xf32, #tpu.memory_space<vmem>>, vector<1x32xf32>
    %c0_5 = arith.constant 0 : index
    %c0_6 = arith.constant 0 : index
    %4 = vector.load %arg4[%c0_5, %c0_6] : memref<1x32xf32, #tpu.memory_space<vmem>>, vector<1x32xf32>
    %cst = arith.constant dense<0.000000e+00> : vector<8xf32>
    %5 = vector.multi_reduction <add>, %2, %cst [1] : vector<8x32xf32> to vector<8xf32>
    %6 = vector.shape_cast %5 : vector<8xf32> to vector<8x1xf32>
    %cst_7 = arith.constant 3.200000e+01 : f32
    %7 = vector.broadcast %cst_7 : f32 to vector<8x1xf32>
    %8 = arith.divf %6, %7 : vector<8x1xf32>
    %9 = vector.broadcast %8 : vector<8x1xf32> to vector<8x32xf32>
    %10 = arith.subf %2, %9 : vector<8x32xf32>
    %11 = arith.mulf %10, %10 : vector<8x32xf32>
    %cst_8 = arith.constant dense<0.000000e+00> : vector<8xf32>
    %12 = vector.multi_reduction <add>, %11, %cst_8 [1] : vector<8x32xf32> to vector<8xf32>
    %13 = vector.shape_cast %12 : vector<8xf32> to vector<8x1xf32>
    %cst_9 = arith.constant 3.200000e+01 : f32
    %14 = vector.broadcast %cst_9 : f32 to vector<8x1xf32>
    %15 = arith.divf %13, %14 : vector<8x1xf32>
    %16 = vector.broadcast %8 : vector<8x1xf32> to vector<8x32xf32>
    %17 = arith.subf %2, %16 : vector<8x32xf32>
    %cst_10 = arith.constant 9.99999974E-6 : f32
    %18 = vector.broadcast %cst_10 : f32 to vector<8x1xf32>
    %19 = arith.addf %15, %18 : vector<8x1xf32>
    %20 = math.rsqrt %19 : vector<8x1xf32>
    %21 = vector.broadcast %20 : vector<8x1xf32> to vector<8x32xf32>
    %22 = arith.mulf %17, %21 : vector<8x32xf32>
    %23 = vector.broadcast %3 : vector<1x32xf32> to vector<8x32xf32>
    %24 = arith.mulf %22, %23 : vector<8x32xf32>
    %25 = vector.broadcast %4 : vector<1x32xf32> to vector<8x32xf32>
    %26 = arith.addf %24, %25 : vector<8x32xf32>
    %27 = arith.truncf %26 : vector<8x32xf32> to vector<8x32xbf16>
    %c0_11 = arith.constant 0 : index
    %c0_12 = arith.constant 0 : index
    %28 = vector.load %arg5[%c0_11, %c0_12] : memref<32x32xbf16, #tpu.memory_space<vmem>>, vector<32x32xbf16>
    %cst_13 = arith.constant dense<0.000000e+00> : vector<8x32xf32>
    %29 = tpu.matmul %27, %28, %cst_13 {dimension_numbers = #tpu.dot_dimension_numbers<[1], [0], [0], [1], [0, 0, 1, 1], [], []>} : vector<8x32xbf16>, vector<32x32xbf16>, vector<8x32xf32> -> vector<8x32xf32>
    %c0_14 = arith.constant 0 : index
    %c0_15 = arith.constant 0 : index
    %30 = vector.load %arg6[%c0_14, %c0_15] : memref<1x32xf32, #tpu.memory_space<vmem>>, vector<1x32xf32>
    %31 = vector.broadcast %30 : vector<1x32xf32> to vector<8x32xf32>
    %32 = arith.addf %29, %31 : vector<8x32xf32>
    %cst_16 = arith.constant 0.000000e+00 : f32
    %33 = vector.broadcast %cst_16 : f32 to vector<8x32xf32>
    %34 = arith.maximumf %32, %33 : vector<8x32xf32>
    %35 = arith.truncf %34 : vector<8x32xf32> to vector<8x32xbf16>
    %c0_17 = arith.constant 0 : index
    %c0_18 = arith.constant 0 : index
    %36 = vector.load %arg7[%c0_17, %c0_18] : memref<32x32xbf16, #tpu.memory_space<vmem>>, vector<32x32xbf16>
    %cst_19 = arith.constant dense<0.000000e+00> : vector<8x32xf32>
    %37 = tpu.matmul %35, %36, %cst_19 {dimension_numbers = #tpu.dot_dimension_numbers<[1], [0], [0], [1], [0, 0, 1, 1], [], []>} : vector<8x32xbf16>, vector<32x32xbf16>, vector<8x32xf32> -> vector<8x32xf32>
    %c0_20 = arith.constant 0 : index
    %c0_21 = arith.constant 0 : index
    %38 = vector.load %arg8[%c0_20, %c0_21] : memref<1x32xf32, #tpu.memory_space<vmem>>, vector<1x32xf32>
    %39 = vector.broadcast %38 : vector<1x32xf32> to vector<8x32xf32>
    %40 = arith.addf %37, %39 : vector<8x32xf32>
    %cst_22 = arith.constant 0.000000e+00 : f32
    %41 = vector.broadcast %cst_22 : f32 to vector<8x32xf32>
    %42 = arith.maximumf %40, %41 : vector<8x32xf32>
    %43 = arith.truncf %42 : vector<8x32xf32> to vector<8x32xbf16>
    %c0_23 = arith.constant 0 : index
    %c0_24 = arith.constant 0 : index
    %44 = vector.load %arg9[%c0_23, %c0_24] : memref<32x32xbf16, #tpu.memory_space<vmem>>, vector<32x32xbf16>
    %cst_25 = arith.constant dense<0.000000e+00> : vector<8x32xf32>
    %45 = tpu.matmul %43, %44, %cst_25 {dimension_numbers = #tpu.dot_dimension_numbers<[1], [0], [0], [1], [0, 0, 1, 1], [], []>} : vector<8x32xbf16>, vector<32x32xbf16>, vector<8x32xf32> -> vector<8x32xf32>
    %c0_26 = arith.constant 0 : index
    %c0_27 = arith.constant 0 : index
    %46 = vector.load %arg10[%c0_26, %c0_27] : memref<1x32xf32, #tpu.memory_space<vmem>>, vector<1x32xf32>
    %47 = vector.broadcast %46 : vector<1x32xf32> to vector<8x32xf32>
    %48 = arith.addf %45, %47 : vector<8x32xf32>
    %49 = arith.addf %26, %48 : vector<8x32xf32>
    %c0_28 = arith.constant 0 : index
    %c0_29 = arith.constant 0 : index
    %50 = vector.load %arg11[%c0_28, %c0_29] : memref<1x32xf32, #tpu.memory_space<vmem>>, vector<1x32xf32>
    %c0_30 = arith.constant 0 : index
    %c0_31 = arith.constant 0 : index
    %51 = vector.load %arg12[%c0_30, %c0_31] : memref<1x32xf32, #tpu.memory_space<vmem>>, vector<1x32xf32>
    %cst_32 = arith.constant dense<0.000000e+00> : vector<8xf32>
    %52 = vector.multi_reduction <add>, %49, %cst_32 [1] : vector<8x32xf32> to vector<8xf32>
    %53 = vector.shape_cast %52 : vector<8xf32> to vector<8x1xf32>
    %cst_33 = arith.constant 3.200000e+01 : f32
    %54 = vector.broadcast %cst_33 : f32 to vector<8x1xf32>
    %55 = arith.divf %53, %54 : vector<8x1xf32>
    %56 = vector.broadcast %55 : vector<8x1xf32> to vector<8x32xf32>
    %57 = arith.subf %49, %56 : vector<8x32xf32>
    %58 = arith.mulf %57, %57 : vector<8x32xf32>
    %cst_34 = arith.constant dense<0.000000e+00> : vector<8xf32>
    %59 = vector.multi_reduction <add>, %58, %cst_34 [1] : vector<8x32xf32> to vector<8xf32>
    %60 = vector.shape_cast %59 : vector<8xf32> to vector<8x1xf32>
    %cst_35 = arith.constant 3.200000e+01 : f32
    %61 = vector.broadcast %cst_35 : f32 to vector<8x1xf32>
    %62 = arith.divf %60, %61 : vector<8x1xf32>
    %63 = vector.broadcast %55 : vector<8x1xf32> to vector<8x32xf32>
    %64 = arith.subf %49, %63 : vector<8x32xf32>
    %cst_36 = arith.constant 9.99999974E-6 : f32
    %65 = vector.broadcast %cst_36 : f32 to vector<8x1xf32>
    %66 = arith.addf %62, %65 : vector<8x1xf32>
    %67 = math.rsqrt %66 : vector<8x1xf32>
    %68 = vector.broadcast %67 : vector<8x1xf32> to vector<8x32xf32>
    %69 = arith.mulf %64, %68 : vector<8x32xf32>
    %70 = vector.broadcast %50 : vector<1x32xf32> to vector<8x32xf32>
    %71 = arith.mulf %69, %70 : vector<8x32xf32>
    %72 = vector.broadcast %51 : vector<1x32xf32> to vector<8x32xf32>
    %73 = arith.addf %71, %72 : vector<8x32xf32>
    %c0_37 = arith.constant 0 : index
    %c0_38 = arith.constant 0 : index
    %74 = vector.load %arg15[%c0_37, %c0_38] : memref<8x32xf32, #tpu.memory_space<vmem>>, vector<8x32xf32>
    tpu.vector_store %arg15[%c0_37, %c0_38], %73 {strides = array<i32>} : memref<8x32xf32, #tpu.memory_space<vmem>>, vector<8x32xf32>,
    %75 = arith.truncf %73 : vector<8x32xf32> to vector<8x32xbf16>
    %c0_39 = arith.constant 0 : index
    %c0_40 = arith.constant 0 : index
    %76 = vector.load %arg13[%c0_39, %c0_40] : memref<32x6xbf16, #tpu.memory_space<vmem>>, vector<32x6xbf16>
    %cst_41 = arith.constant dense<0.000000e+00> : vector<8x6xf32>
    %77 = tpu.matmul %75, %76, %cst_41 {dimension_numbers = #tpu.dot_dimension_numbers<[1], [0], [0], [1], [0, 0, 1, 1], [], []>} : vector<8x32xbf16>, vector<32x6xbf16>, vector<8x6xf32> -> vector<8x6xf32>
    %c0_42 = arith.constant 0 : index
    %c0_43 = arith.constant 0 : index
    %78 = vector.load %arg14[%c0_42, %c0_43] : memref<1x6xf32, #tpu.memory_space<vmem>>, vector<1x6xf32>
    %79 = vector.broadcast %78 : vector<1x6xf32> to vector<8x6xf32>
    %80 = arith.addf %77, %79 : vector<8x6xf32>
    %c0_44 = arith.constant 0 : index
    %c0_45 = arith.constant 0 : index
    %81 = vector.load %arg16[%c0_44, %c0_45] : memref<8x6xf32, #tpu.memory_space<vmem>>, vector<8x6xf32>
    tpu.vector_store %arg16[%c0_44, %c0_45], %80 {strides = array<i32>} : memref<8x6xf32, #tpu.memory_space<vmem>>, vector<8x6xf32>,
    return
  }
  func.func @transform_0(%arg0: i32) -> (i32, i32) {
    %c0_i32 = arith.constant 0 : i32
    %c0_i32_0 = arith.constant 0 : i32
    return %arg0, %c0_i32 : i32, i32
  }
  func.func @transform_1(%arg0: i32) -> (i32, i32) {
    %c0_i32 = arith.constant 0 : i32
    %c0_i32_0 = arith.constant 0 : i32
    return %arg0, %c0_i32 : i32, i32
  }
  func.func @transform_2(%arg0: i32) -> (i32, i32) {
    %c0_i32 = arith.constant 0 : i32
    %c0_i32_0 = arith.constant 0 : i32
    %c0_i32_1 = arith.constant 0 : i32
    return %c0_i32, %c0_i32_0 : i32, i32
  }
  func.func @transform_3(%arg0: i32) -> (i32, i32) {
    %c0_i32 = arith.constant 0 : i32
    %c0_i32_0 = arith.constant 0 : i32
    %c0_i32_1 = arith.constant 0 : i32
    return %c0_i32, %c0_i32_0 : i32, i32
  }
  func.func @transform_4(%arg0: i32) -> (i32, i32) {
    %c0_i32 = arith.constant 0 : i32
    %c0_i32_0 = arith.constant 0 : i32
    %c0_i32_1 = arith.constant 0 : i32
    return %c0_i32, %c0_i32_0 : i32, i32
  }
  func.func @transform_5(%arg0: i32) -> (i32, i32) {
    %c0_i32 = arith.constant 0 : i32
    %c0_i32_0 = arith.constant 0 : i32
    %c0_i32_1 = arith.constant 0 : i32
    return %c0_i32, %c0_i32_0 : i32, i32
  }
  func.func @transform_6(%arg0: i32) -> (i32, i32) {
    %c0_i32 = arith.constant 0 : i32
    %c0_i32_0 = arith.constant 0 : i32
    %c0_i32_1 = arith.constant 0 : i32
    return %c0_i32, %c0_i32_0 : i32, i32
  }
  func.func @transform_7(%arg0: i32) -> (i32, i32) {
    %c0_i32 = arith.constant 0 : i32
    %c0_i32_0 = arith.constant 0 : i32
    %c0_i32_1 = arith.constant 0 : i32
    return %c0_i32, %c0_i32_0 : i32, i32
  }
  func.func @transform_8(%arg0: i32) -> (i32, i32) {
    %c0_i32 = arith.constant 0 : i32
    %c0_i32_0 = arith.constant 0 : i32
    %c0_i32_1 = arith.constant 0 : i32
    return %c0_i32, %c0_i32_0 : i32, i32
  }
  func.func @transform_9(%arg0: i32) -> (i32, i32) {
    %c0_i32 = arith.constant 0 : i32
    %c0_i32_0 = arith.constant 0 : i32
    %c0_i32_1 = arith.constant 0 : i32
    return %c0_i32, %c0_i32_0 : i32, i32
  }
  func.func @transform_10(%arg0: i32) -> (i32, i32) {
    %c0_i32 = arith.constant 0 : i32
    %c0_i32_0 = arith.constant 0 : i32
    %c0_i32_1 = arith.constant 0 : i32
    return %c0_i32, %c0_i32_0 : i32, i32
  }
  func.func @transform_11(%arg0: i32) -> (i32, i32) {
    %c0_i32 = arith.constant 0 : i32
    %c0_i32_0 = arith.constant 0 : i32
    %c0_i32_1 = arith.constant 0 : i32
    return %c0_i32, %c0_i32_0 : i32, i32
  }
  func.func @transform_12(%arg0: i32) -> (i32, i32) {
    %c0_i32 = arith.constant 0 : i32
    %c0_i32_0 = arith.constant 0 : i32
    %c0_i32_1 = arith.constant 0 : i32
    return %c0_i32, %c0_i32_0 : i32, i32
  }
  func.func @transform_13(%arg0: i32) -> (i32, i32) {
    %c0_i32 = arith.constant 0 : i32
    %c0_i32_0 = arith.constant 0 : i32
    %c0_i32_1 = arith.constant 0 : i32
    return %c0_i32, %c0_i32_0 : i32, i32
  }
  func.func @transform_14(%arg0: i32) -> (i32, i32) {
    %c0_i32 = arith.constant 0 : i32
    %c0_i32_0 = arith.constant 0 : i32
    return %arg0, %c0_i32 : i32, i32
  }
  func.func @transform_15(%arg0: i32) -> (i32, i32) {
    %c0_i32 = arith.constant 0 : i32
    %c0_i32_0 = arith.constant 0 : i32
    return %arg0, %c0_i32 : i32, i32
  }
}

</mosaic_0001>

<bundles_post_ra>
// kernel: _lambda_.16
= control target key start
LH: loop header
LB: loop body
LE: loop exit
PB: predicated region body
PF: predicated region fallthrough
CT: control target
= control target key end

     0   :  { %s399_s12 = smov 0   ;;  %s459_s0 = inlined_call_operand.vmem [shape: f32[16,32], index: 0, kind: input, shape index: {}]   ;;  %s460_s1 = inlined_call_operand.vmem [shape: bf16[32,288], index: 1, kind: input, shape index: {}]   ;;  %s461_s2 = inlined_call_operand.vmem [shape: f32[1,288], index: 2, kind: input, shape index: {}]   ;;  %s462_s3 = inlined_call_operand.vmem [shape: f32[16,288], index: 3, kind: output, shape index: {}]  }
   0x1 LB: > { %s320_s13 = sadd.s32 4294967295, %s377_s12   ;;  %p324_p0 = scmp.ge.s32.totalorder %s377_s12, 1  ;;  %s377_s12 = sphi %s399_s12, %s13_s12  }
   0x2   : > { %p136_p1 = scmp.lt.s32.totalorder %s377_s12, 3 }
   0x4   : > { %p137_p2 = pnand %p324_p0, %p136_p1 }
   0x5   : > { %p159_p3 = scmp.lt.s32.totalorder (!%p137_p2), %s320_s13, 1 }
   0x6   : > { %140 = sbr.rel (%p137_p2) target bundleno = 162 (0xa2), region = 32 }
   0xb   : > { %v341_v0 = vld [vmem:[%s460_s1 + $0x18] sm:$0xf]  ;;  %v360_v1 = vld [vmem:[%s460_s1 + $0x20] sm:$0xf0]  ;;  %v359_v2 = vld [vmem:[%s460_s1 + $0x1c] sm:$0xf] }
   0xc   : > { %v342_v3 = vor.u32 %v360_v1, %v341_v0  ;;  %v343_v4 = vld [vmem:[%s460_s1 + $0x24] sm:$0xf0]  ;;  %v349_v5 = vld [vmem:[%s460_s1 + $0x20] sm:$0xf]  ;;  %v361_v6 = vld [vmem:[%s460_s1 + $0x28] sm:$0xf0] }
   0xd   : > { %v346_v7 = vor.u32 %v359_v2, %v343_v4  ;;  %v350_v8 = vor.u32 %v361_v6, %v349_v5  ;;  %v329_v9 = vld [vmem:[%s460_s1] sm:$0xf]  ;;  %v357_v10 = vld [vmem:[%s460_s1 + $0x8] sm:$0xf0]  ;;  %v356_v11 = vld [vmem:[%s460_s1 + $0x4] sm:$0xf] }
   0xe   : > { %229 = vmatpush.bf16.msra.mxu0 %v342_v3  ;;  %v330_v12 = vor.u32 %v357_v10, %v329_v9  ;;  %v331_v13 = vld [vmem:[%s460_s1 + $0xc] sm:$0xf0]  ;;  %v337_v14 = vld [vmem:[%s460_s1 + $0x8] sm:$0xf]  ;;  %v358_v15 = vld [vmem:[%s460_s1 + $0x10] sm:$0xf0] }
   0xf   : > { %242 = vmatpush.bf16.msra.mxu1 %v346_v7  ;;  %255 = vmatpush.bf16.msra.mxu2 %v350_v8  ;;  %v334_v16 = vor.u32 %v356_v11, %v331_v13  ;;  %v338_v17 = vor.u32 %v358_v15, %v337_v14  ;;  %s464_s13 = smov (!%p159_p3, %s320_s13), 1  ;;  %vm219_vm0 = vcmask 261120   ;;  %v179_v20 = vld [vmem:[%s461_s2] sm:$0x7] }
  0x10   : > { %s325_s11 = sshll.u32 %s464_s13, 3  ;;  %s362_s19 = smul.u32 24, %s464_s13  ;;  %v181_v21 = vperm.slane %v179_v20, 0  ;;  %v182_v22 = vperm.slane %v179_v20, 1  ;;  %v183_v27 = vperm.slane %v179_v20, 2 }
  0x11   : > { %s162_s16 = scalar_lea.vmem %s459_s0, %s325_s11 }
  0x12   : > { %230 = vmatpush.bf16.msra.mxu0 %v330_v12  ;;  %v169_v18 = vld [vmem:[%s162_s16] sm:$0xff]  ;;  %s167_s22 = scalar_lea.vmem %s462_s3, %s362_s19 }
  0x13   : > { %243 = vmatpush.bf16.msra.mxu1 %v334_v16  ;;  %256 = vmatpush.bf16.msra.mxu2 %v338_v17  ;;  %v170_v19 = vpack.c.bf16 %v169_v18, %v169_v18 }
  0x15   : > { %351 = vmatmul.msk.bf16.vlgmr.msra.gmra.mxu0 %vm219_vm0, %v170_v19 }
  0x16   : > { %352 = vmatmul.msk.bf16.vlgmr.msra.gmra.mxu1 %vm219_vm0, %v170_v19  ;;  %353 = vmatmul.msk.bf16.vlgmr.msra.gmra.mxu2 %vm219_vm0, %v170_v19 }
  0x92   : > { %v232_v23 = vpop.f32.mrf.mxu0 }
  0x93   : > { %v245_v24 = vpop.f32.mrf.mxu1  ;;  %v233_v25 = vadd.f32 %v232_v23, %v181_v21 }
  0x94   : > { %v246_v26 = vadd.f32 %v245_v24, %v182_v22 }
  0x95   : > { %262 = vst [vmem:[%s167_s22] sm:$0xff] %v233_v25 }
  0x96   : > { %263 = vst [vmem:[%s167_s22 + $0x8] sm:$0xff] %v246_v26 }
  0x99   : > { %v258_v28 = vpop.f32.mrf.mxu2 }
  0x9a   : > { %v259_v29 = vadd.f32 %v258_v28, %v183_v27  ;;  %v234_v30 = vpop.f32.mrf.mxu0 }
  0x9b   : > { %v247_v31 = vpop.f32.mrf.mxu1 }
  0x9c   : > { %264 = vst.msk [vmem:[%s167_s22 + $0x10] sm:$0xff] %vm219_vm0, %v259_v29 }
  0xa1   : > { %v260_v32 = vpop.f32.mrf.mxu2 }
  0xa2 PF: > { %s13_s12 = sadd.s32 1, %s377_s12  }
  0xa3   : > { %p10_p4 = scmp.ge.s32.totalorder %s13_s12, 4  }
  0xa5   :  { %12 = sbr.rel (!%p10_p4) target bundleno = 1 (0x1), region = 62 }

// kernel: _lambda_.18
= control target key start
LH: loop header
LB: loop body
LE: loop exit
PB: predicated region body
PF: predicated region fallthrough
CT: control target
= control target key end

     0   :  { %s494_s12 = smov 0   ;;  %s560_s0 = inlined_call_operand.vmem [shape: f32[16,224], index: 0, kind: input, shape index: {}]   ;;  %s561_s1 = inlined_call_operand.vmem [shape: bf16[224,32], index: 1, kind: input, shape index: {}]   ;;  %s562_s2 = inlined_call_operand.vmem [shape: f32[1,32], index: 2, kind: input, shape index: {}]   ;;  %s563_s3 = inlined_call_operand.vmem [shape: f32[16,32], index: 3, kind: output, shape index: {}]  }
   0x1 LB: > { %s375_s13 = sadd.s32 4294967295, %s472_s12   ;;  %p379_p0 = scmp.ge.s32.totalorder %s472_s12, 1  ;;  %s472_s12 = sphi %s494_s12, %s13_s12  }
   0x2   : > { %p137_p1 = scmp.lt.s32.totalorder %s472_s12, 3 }
   0x4   : > { %p138_p2 = pnand %p379_p0, %p137_p1 }
   0x5   : > { %p160_p3 = scmp.lt.s32.totalorder (!%p138_p2), %s375_s13, 1 }
   0x6   : > { %141 = sbr.rel (%p138_p2) target bundleno = 177 (0xb1), region = 32 }
   0xb   : > { %v450_v0 = vld [vmem:[%s561_s1 + $0x38] sm:$0xff]  ;;  %v456_v1 = vld [vmem:[%s561_s1 + $0x68] sm:$0xff]  ;;  %v449_v2 = vld [vmem:[%s561_s1 + $0x30] sm:$0xff]  ;;  %s565_s13 = smov (!%p160_p3, %s375_s13), 1  ;;  %vm290_vm0 = vcmask 785408   ;;  %vm320_vm1 = vcmask 261120  }
   0xc   : > { %294 = vmatpush.bf16.msra.mxu0 %v450_v0  ;;  %309 = vmatpush.bf16.msra.mxu1 %v456_v1  ;;  %v455_v3 = vld [vmem:[%s561_s1 + $0x60] sm:$0xff]  ;;  %v448_v4 = vld [vmem:[%s561_s1 + $0x28] sm:$0xff]  ;;  %v454_v5 = vld [vmem:[%s561_s1 + $0x58] sm:$0xff]  ;;  %s442_s30 = sshll.u32 %s565_s13, 4  ;;  %s382_s23 = sshll.u32 %s565_s13, 3 }
   0xd   : > { %v447_v6 = vld [vmem:[%s561_s1 + $0x20] sm:$0xff]  ;;  %v453_v7 = vld [vmem:[%s561_s1 + $0x50] sm:$0xff]  ;;  %v446_v8 = vld [vmem:[%s561_s1 + $0x18] sm:$0xff]  ;;  %s164_s10 = scalar_lea.vmem %s560_s0, %s442_s30  ;;  %s168_s26 = scalar_lea.vmem %s563_s3, %s382_s23 }
   0xe   : > { %v452_v9 = vld [vmem:[%s561_s1 + $0x48] sm:$0xff]  ;;  %v445_v10 = vld [vmem:[%s561_s1 + $0x10] sm:$0xff]  ;;  %v451_v11 = vld [vmem:[%s561_s1 + $0x40] sm:$0xff] }
   0xf   : > { %v171_v12 = vld [vmem:[%s164_s10 + $0x8] sm:$0xff]  ;;  %v443_v15 = vld [vmem:[%s561_s1] sm:$0xff] }
  0x10   : > { %295 = vmatpush.bf16.msra.mxu0 %v449_v2  ;;  %310 = vmatpush.bf16.msra.mxu1 %v455_v3  ;;  %v173_v13 = vpack.c.bf16 %v171_v12, %v171_v12  ;;  %v444_v14 = vld [vmem:[%s561_s1 + $0x8] sm:$0xff]  ;;  %v170_v16 = vld [vmem:[%s164_s10] sm:$0xff] }
  0x11   : > { %v172_v17 = vpack.c.bf16 %v170_v16, %v170_v16  ;;  %v465_v19 = vld [vmem:[%s562_s2] ss:$0 sm:$0xff] }
  0x14   : > { %296 = vmatpush.bf16.msra.mxu0 %v448_v4  ;;  %311 = vmatpush.bf16.msra.mxu1 %v454_v5 }
  0x18   : > { %297 = vmatpush.bf16.msra.mxu0 %v447_v6  ;;  %312 = vmatpush.bf16.msra.mxu1 %v453_v7 }
  0x1c   : > { %298 = vmatpush.bf16.msra.mxu0 %v446_v8  ;;  %313 = vmatpush.bf16.msra.mxu1 %v452_v9 }
  0x20   : > { %299 = vmatpush.bf16.msra.mxu0 %v445_v10  ;;  %314 = vmatpush.bf16.msra.mxu1 %v451_v11 }
  0x23   : > { %439 = vmatmul.msk.bf16.vlgmr.msra.gmra.mxu1 %vm290_vm0, %v173_v13 }
  0x24   : > { %300 = vmatpush.bf16.msra.mxu0 %v444_v14 }
  0x28   : > { %301 = vmatpush.bf16.msra.mxu0 %v443_v15 }
  0x2b   : > { %302 = vmatmul.bf16.vlgmr.msra.gmra.mxu0 %v172_v17 }
  0xa0   : > { %v316_v18 = vpop.f32.mrf.mxu1 }
  0xa8   : > { %v303_v20 = vpop.f32.mrf.mxu0  ;;  %v318_v21 = vpop.f32.mrf.mxu1 }
  0xa9   : > { %v304_v22 = vadd.f32 %v465_v19, %v303_v20 }
  0xab   : > { %v317_v23 = vadd.f32 %v316_v18, %v304_v22 }
  0xad   : > { %321 = vst.msk [vmem:[%s168_s26] sm:$0xff] %vm320_vm1, %v317_v23 }
  0xb0   : > { %v305_v24 = vpop.f32.mrf.mxu0 }
  0xb1 PF: > { %s13_s12 = sadd.s32 1, %s472_s12  }
  0xb2   : > { %p10_p4 = scmp.ge.s32.totalorder %s13_s12, 4  }
  0xb4   :  { %12 = sbr.rel (!%p10_p4) target bundleno = 1 (0x1), region = 62 }

// kernel: _lambda_.17
= control target key start
LH: loop header
LB: loop body
LE: loop exit
PB: predicated region body
PF: predicated region fallthrough
CT: control target
= control target key end

     0   :  { %s1984_s24 = smov 0   ;;  %s1986_s25 = smov 0   ;;  %s2444_s0 = inlined_call_operand.vmem [shape: bf16[2,4,8,20], index: 0, kind: input, shape index: {}]   ;;  %s2445_s1 = inlined_call_operand.vmem [shape: bf16[2,4,20,8], index: 1, kind: input, shape index: {}]   ;;  %s2446_s2 = inlined_call_operand.vmem [shape: bf16[2,4,8,32], index: 2, kind: input, shape index: {}]   ;;  %s2447_s3 = inlined_call_operand.vmem [shape: f32[2,4,1,8], index: 3, kind: input, shape index: {}]   ;;  %s2448_s4 = inlined_call_operand.vmem [shape: f32[2,1,8], index: 4, kind: input, shape index: {}]   ;;  %s2449_s5 = inlined_call_operand.vmem [shape: bf16[2,8,8,16], index: 5, kind: input, shape index: {}]   ;;  %s2450_s6 = inlined_call_operand.vmem [shape: f32[4,1,16], index: 6, kind: input, shape index: {}]   ;;  %s2451_s7 = inlined_call_operand.vmem [shape: f32[2,8,192], index: 7, kind: output, shape index: {}]  }
   0x1   :  { %s1988_s26 = smov 0  }
   0x2 LB: > { %s29_s27 = sadd.s32 1, %s1933_s25  ;;  %p1773_p0 = scmp.ge.s32.totalorder %s1937_s26, 1  ;;  %s1937_s26 = sphi %s1988_s26, %s17_s26   ;;  %s1933_s25 = sphi %s1986_s25, %s2453_s25   ;;  %s1929_s24 = sphi %s1984_s24, %s2452_s24  }
   0x3   : > { %p31_p1 = scmp.ge.s32.totalorder %s29_s27, 2  ;;  %p310_p2 = scmp.lt.s32.totalorder %s1937_s26, 3 }
   0x5   : > { %s2455_s27 = smov (%p31_p1, %s29_s27), 0  ;;  %p311_p3 = pnand %p1773_p0, %p310_p2 }
   0x6   : > { %p375_p4 = scmp.lt.s32.totalorder (!%p311_p3), %s1929_s24, 1  ;;  %s1940_s17 = smov (!%p311_p3), 16  }
   0x7   : > { %314 = sbr.rel (%p311_p3) target bundleno = 1109 (0x455), region = 48  ;;  %s1943_s20 = smov (!%p311_p3), 48  }
   0xc   : > { %s2457_s24 = smov (!%p375_p4, %s1929_s24), 1  ;;  %v1891_v0 = vld [vmem:[%s2450_s6] ss:$0 sm:$0xff]  ;;  %vm455_vm0 = vcmask 130048   ;;  %vm526_vm1 = vcmask 1041408   ;;  %vm522_vm2 = vcmask 162816   ;;  %v497_v37 = vlaneseq }
   0xd   : > { %s1833_s28 = sshll.u32 %s2457_s24, 5  ;;  %s1858_s29 = smul.u32 48, %s2457_s24  ;;  %vm507_vm3 = vcmask 1041409   ;;  %vm509_vm4 = vcmask 1042434   ;;  %vm511_vm5 = vcmask 1043459   ;;  %vm513_vm6 = vcmask 1044484  }
   0xe   : > { %s2009_s9 = scalar_lea.vmem %s2449_s5, %s1833_s28  ;;  %s2042_s15 = sshll.u32 %s2457_s24, 4  ;;  %v2076_v39 = vand.u32 127, %v497_v37  ;;  %vm515_vm7 = vcmask 1045509   ;;  %vm517_vm8 = vcmask 1046534   ;;  %vm519_vm9 = vcmask 1047559  }
   0xf   : > { %v1840_v1 = vld [vmem:[%s2009_s9] sm:$0xff]   ;;  %v1855_v2 = vld [vmem:[%s2009_s9 + $0x8] sm:$0xff]   ;;  %s2019_s14 = scalar_lea.vmem %s2445_s1, %s1858_s29  ;;  %v1856_v3 = vld [vmem:[%s2009_s9 + $0x10] sm:$0xff]   ;;  %s2051_s18 = scalar_lea.vmem %s2444_s0, %s2042_s15  ;;  %vm552_vm10 = vcmask 64512   ;;  %vm582_vm11 = vcmask 1043456  }
  0x10   : > { %v2022_v4 = vunpack.c.l.bf16 %v1840_v1  ;;  %v2024_v5 = vunpack.c.l.bf16 %v1855_v2  ;;  %v442_v6 = vld [vmem:[%s2019_s14 + $0x8] sm:$0x3]  ;;  %v2027_v7 = vunpack.c.l.bf16 %v1856_v3  ;;  %v2032_v12 = vunpack.c.h.bf16 %v1840_v1  ;;  %v1835_v20 = vld [vmem:[%s2019_s14] sm:$0xff]  ;;  %v1857_v24 = vld [vmem:[%s2009_s9 + $0x18] sm:$0xff]   ;;  %s1779_s19 = sshll.u32 %s2457_s24, 2  ;;  %s399_s29 = scalar_lea.vmem %s2448_s4, %s2457_s24 }
  0x11   : > { %v485_v8 = vunpack.c.l.b16 %v442_v6  ;;  %v2034_v14 = vunpack.c.h.bf16 %v1855_v2  ;;  %v2036_v15 = vunpack.c.h.bf16 %v1856_v3  ;;  %v439_v26 = vld [vmem:[%s2051_s18] sm:$0xf]  ;;  %v2058_v27 = vunpack.c.l.bf16 %v1857_v24  ;;  %s2068_s22 = scalar_lea.vmem %s2447_s3, %s1779_s19  ;;  %s2187_s16 = scalar_lea.vmem %s2446_s2, %s2042_s15 }
  0x12   : > { %v447_v9 = vmul.f32 %v1891_v0, %v2022_v4  ;;  %v449_v10 = vmul.f32 %v1891_v0, %v2024_v5  ;;  %v451_v11 = vmul.f32 %v1891_v0, %v2027_v7  ;;  %v448_v21 = vmul.f32 %v1891_v0, %v2032_v12  ;;  %v436_v46 = vld [vmem:[%s399_s29] sm:$0x1]  ;;  %s1942_s19 = smov 64   ;;  %s418_s23 = scalar_lea.vmem %s2451_s7, %s2042_s15 }
  0x13   : > { %v487_v13 = vpack.c.b16 %v485_v8, %v485_v8  ;;  %v450_v22 = vmul.f32 %v1891_v0, %v2034_v14  ;;  %v452_v23 = vmul.f32 %v1891_v0, %v2036_v15  ;;  %v2063_v30 = vunpack.c.h.bf16 %v1857_v24  ;;  %v1892_v63 = vld [vmem:[%s2068_s22] ss:$0 sm:$0xff] }
  0x14   : > { %v456_v16 = vsel %vm455_vm0, %v447_v9, 0.0  ;;  %v462_v17 = vsel %vm455_vm0, %v449_v10, 0.0  ;;  %v468_v18 = vsel %vm455_vm0, %v451_v11, 0.0  ;;  %v459_v25 = vsel %vm455_vm0, %v448_v21, 0.0  ;;  %v1893_v10 = vld [vmem:[%s2450_s6 + $0x1] ss:$0 sm:$0xff] }
  0x15   : > { %457 = vadd.xlane.f32.xlu0 %v456_v16  ;;  %463 = vadd.xlane.f32.xlu1 %v462_v17  ;;  %v528_v19 = vsel %vm526_vm1, %v487_v13, 0  ;;  %v465_v28 = vsel %vm455_vm0, %v450_v22, 0.0  ;;  %v471_v29 = vsel %vm455_vm0, %v452_v23, 0.0  ;;  %v453_v31 = vmul.f32 %v1891_v0, %v2058_v27  ;;  %v1793_v16 = vld [vmem:[%s2019_s14 + $0x14] sm:$0x3]  ;;  %v1836_v22 = vld [vmem:[%s2019_s14 + $0xc] sm:$0xff] }
  0x16   : > { %536 = vmatpush.bf16.msra.mxu0 %v528_v19  ;;  %469 = vadd.xlane.f32.xlu2 %v468_v18  ;;  %v454_v32 = vmul.f32 %v1891_v0, %v2063_v30  ;;  %v437_v52 = vsub.f32 1.0, %v436_v46  ;;  %v730_v11 = vmul.f32 %v1893_v10, %v2022_v4  ;;  %v767_v17 = vunpack.c.l.b16 %v1793_v16  ;;  %v1790_v23 = vld [vmem:[%s2051_s18 + $0x4] sm:$0xf] }
  0x17   : > { %v474_v33 = vsel %vm455_vm0, %v453_v31, 0.0  ;;  %v734_v24 = vmul.f32 %v1893_v10, %v2027_v7  ;;  %v736_v31 = vmul.f32 %v1893_v10, %v2058_v27 }
  0x18   : > { %v477_v34 = vsel %vm455_vm0, %v454_v32, 0.0  ;;  %v438_v58 = vmul.f32 -1e+09, %v437_v52  ;;  %v738_v13 = vsel %vm455_vm0, %v730_v11, 0.0  ;;  %v769_v18 = vpack.c.b16 %v767_v17, %v767_v17 }
  0x19   : > { %v737_v32 = vmul.f32 %v1893_v10, %v2063_v30 }
  0x1a   : > { %537 = vmatpush.bf16.msra.mxu0 %v1835_v20  ;;  %v2098_v2 = vperm.slane %v438_v58, 0  ;;  %v799_v19 = vsel %vm526_vm1, %v769_v18, 0  ;;  %v732_v20 = vmul.f32 %v1893_v10, %v2024_v5 }
  0x1b   : > { %807 = vmatpush.bf16.msra.mxu2 %v799_v19 }
  0x1c   : > { %v744_v21 = vsel %vm455_vm0, %v732_v20, 0.0 }
  0x1d   : > { %460 = vadd.xlane.f32.xlu0 %v459_v25  ;;  %1788 = vmatmul.msk.bf16.vlgmr.msra.gmra.mxu0 %vm522_vm2, %v439_v26  ;;  %v750_v25 = vsel %vm455_vm0, %v734_v24, 0.0 }
  0x1e   : > { %466 = vadd.xlane.f32.xlu1 %v465_v28  ;;  %472 = vadd.xlane.f32.xlu2 %v471_v29 }
  0x1f   : > { %808 = vmatpush.bf16.msra.mxu2 %v1836_v22 }
  0x22   : > { %1799 = vmatmul.msk.bf16.vlgmr.msra.gmra.mxu2 %vm522_vm2, %v1790_v23 }
  0x25   : > { %475 = vadd.xlane.f32.xlu0 %v474_v33  ;;  %v756_v33 = vsel %vm455_vm0, %v736_v31, 0.0 }
  0x26   : > { %478 = vadd.xlane.f32.xlu1 %v477_v34  ;;  %v759_v34 = vsel %vm455_vm0, %v737_v32, 0.0 }
  0x2e   : > { %760 = vadd.xlane.f32.xlu1 %v759_v34 }
  0x88   : > { %v458_v35 = vpop.xlane.xlu0 %457  ;;  %v464_v36 = vpop.xlane.xlu1 %463 }
  0x89   : > { %v470_v38 = vpop.xlane.xlu2 %469  ;;  %v499_v41 = vperm.slane %v458_v35, %v2076_v39  ;;  %v501_v44 = vperm.slane %v464_v36, %v2076_v39  ;;  %v2123_v35 = vld [vmem:[%s2450_s6 + $0x2] ss:$0 sm:$0xff] }
  0x8a   : > { %v503_v50 = vperm.slane %v470_v38, %v2076_v39  ;;  %v999_v38 = vmul.f32 %v2123_v35, %v2032_v12  ;;  %v1003_v58 = vmul.f32 %v2123_v35, %v2036_v15  ;;  %v1005_v18 = vmul.f32 %v2123_v35, %v2063_v30 }
  0x8b   : > { %v1004_v24 = vmul.f32 %v2123_v35, %v2058_v27 }
  0x8c   : > { %v1027_v20 = vsel %vm455_vm0, %v1005_v18, 0.0 }
  0x90   : > { %v461_v40 = vpop.xlane.xlu0 %460 }
  0x91   : > { %v500_v42 = vperm.slane %v461_v40, %v2076_v39  ;;  %v467_v43 = vpop.xlane.xlu1 %466  ;;  %v473_v48 = vpop.xlane.xlu2 %472 }
  0x92   : > { %v502_v45 = vperm.slane %v467_v43, %v2076_v39  ;;  %v504_v53 = vperm.slane %v473_v48, %v2076_v39  ;;  %v1895_v43 = vld [vmem:[%s2450_s6 + $0x3] ss:$0 sm:$0xff] }
  0x93   : > { %v508_v47 = vsel %vm507_vm3, %v500_v42, %v499_v41  ;;  %v1009_v41 = vsel %vm455_vm0, %v999_v38, 0.0  ;;  %v731_v42 = vmul.f32 %v1893_v10, %v2032_v12  ;;  %v1273_v16 = vmul.f32 %v1895_v43, %v2063_v30 }
  0x94   : > { %v510_v49 = vsel %vm509_vm4, %v501_v44, %v508_v47  ;;  %v733_v47 = vmul.f32 %v1893_v10, %v2034_v14  ;;  %v1268_v19 = vmul.f32 %v1895_v43, %v2024_v5  ;;  %v1269_v22 = vmul.f32 %v1895_v43, %v2034_v14 }
  0x95   : > { %v512_v51 = vsel %vm511_vm5, %v502_v45, %v510_v49  ;;  %v741_v44 = vsel %vm455_vm0, %v731_v42, 0.0  ;;  %v1266_v45 = vmul.f32 %v1895_v43, %v2022_v4  ;;  %v1001_v49 = vmul.f32 %v2123_v35, %v2034_v14 }
  0x96   : > { %v514_v54 = vsel %vm513_vm6, %v503_v50, %v512_v51  ;;  %v747_v48 = vsel %vm455_vm0, %v733_v47, 0.0  ;;  %v735_v51 = vmul.f32 %v1893_v10, %v2036_v15  ;;  %v1267_v10 = vmul.f32 %v1895_v43, %v2032_v12 }
  0x97   : > { %v516_v59 = vsel %vm515_vm7, %v504_v53, %v514_v54  ;;  %v1274_v46 = vsel %vm455_vm0, %v1266_v45, 0.0  ;;  %v1015_v50 = vsel %vm455_vm0, %v1001_v49, 0.0  ;;  %v1002_v53 = vmul.f32 %v2123_v35, %v2027_v7  ;;  %v1837_v45 = vld [vmem:[%s2019_s14 + $0x18] sm:$0xff] }
  0x98   : > { %v476_v55 = vpop.xlane.xlu0 %475  ;;  %v753_v52 = vsel %vm455_vm0, %v735_v51, 0.0  ;;  %v1295_v17 = vsel %vm455_vm0, %v1273_v16, 0.0  ;;  %v1283_v23 = vsel %vm455_vm0, %v1269_v22, 0.0  ;;  %v1896_v22 = vld [vmem:[%s2068_s22 + $0x1] ss:$0 sm:$0xff] }
  0x99   : > { %v505_v56 = vperm.slane %v476_v55, %v2076_v39  ;;  %v479_v57 = vpop.xlane.xlu1 %478  ;;  %v1018_v54 = vsel %vm455_vm0, %v1002_v53, 0.0  ;;  %v998_v55 = vmul.f32 %v2123_v35, %v2022_v4 }
  0x9a   : > { %v506_v60 = vperm.slane %v479_v57, %v2076_v39  ;;  %v539_v61 = vpop.f32.mrf.mxu0  ;;  %v1819_v57 = vld [vmem:[%s2019_s14 + $0x2c] sm:$0x3] }
  0x9b   : > { %v518_v62 = vsel %vm517_vm8, %v505_v56, %v516_v59  ;;  %v1006_v56 = vsel %vm455_vm0, %v998_v55, 0.0  ;;  %v1303_v59 = vunpack.c.l.b16 %v1819_v57 }
  0x9c   : > { %v520_v0 = vsel %vm519_vm9, %v506_v60, %v518_v62  ;;  %v1021_v60 = vsel %vm455_vm0, %v1003_v58, 0.0  ;;  %v1000_v62 = vmul.f32 %v2123_v35, %v2024_v5  ;;  %v1806_v35 = vld [vmem:[%s2019_s14 + $0x20] sm:$0x3] }
  0x9d   : > { %v540_v1 = vadd.f32 %v539_v61, %v520_v0  ;;  %v1305_v61 = vpack.c.b16 %v1303_v59, %v1303_v59  ;;  %v1838_v0 = vld [vmem:[%s2019_s14 + $0x24] sm:$0xff]  ;;  %v1035_v38 = vunpack.c.l.b16 %v1806_v35  ;;  %s1939_s14 = smov 32  }
  0x9f   : > { %v547_v3 = vadd.f32 %v1892_v63, %v540_v1  ;;  %v1335_v63 = vsel %vm526_vm1, %v1305_v61, 0  ;;  %v1012_v1 = vsel %vm455_vm0, %v1000_v62, 0.0 }
  0xa0   : > { %1343 = vmatpush.bf16.msrb.mxu0 %v1335_v63 }
  0xa1   : > { %v551_v6 = vadd.f32 %v2098_v2, %v547_v3  ;;  %v1271_v3 = vmul.f32 %v1895_v43, %v2036_v15  ;;  %v761_v16 = vpop.xlane.xlu1 %760 }
  0xa2   : > { %v541_v8 = vpop.f32.mrf.mxu0 }
  0xa3   : > { %v553_v9 = vsel %vm552_vm10, %v551_v6, -inf  ;;  %v1816_v8 = vld [vmem:[%s2051_s18 + $0xc] sm:$0xf] }
  0xa4   : > { %554 = vmax.xlane.f32.xlu2 %v553_v9  ;;  %1344 = vmatpush.bf16.msrb.mxu0 %v1838_v0  ;;  %v1270_v9 = vmul.f32 %v1895_v43, %v2027_v7 }
  0xa6   : > { %v1286_v11 = vsel %vm455_vm0, %v1270_v9, 0.0 }
  0xa7   : > { %1825 = vmatmul.msk.bf16.vlgmr.msrb.gmra.mxu0 %vm522_vm2, %v1816_v8  ;;  %1287 = vadd.xlane.f32.xlu1 %v1286_v11  ;;  %v601_v8 = vshrl.u32 %v497_v37, 7 }
  0xa9   : > { %1888 = vset.pattern.permute.xlu1 %v601_v8  ;;  %1890 = vset.pattern.permute.xlu0 %v601_v8 }
  0xaa   : > { %1889 = vset.pattern.permute.xlu2 %v601_v8 }
  0xac   : > { %739 = vadd.xlane.f32.xlu2 %v738_v13  ;;  %v1277_v13 = vsel %vm455_vm0, %v1267_v10, 0.0 }
  0xaf   : > { %1028 = vadd.xlane.f32.xlu1 %v1027_v20 }
  0xb4   : > { %745 = vadd.xlane.f32.xlu2 %v744_v21  ;;  %v1280_v21 = vsel %vm455_vm0, %v1268_v19, 0.0  ;;  %v786_v19 = vperm.slane %v761_v16, %v2076_v39 }
  0xbc   : > { %751 = vadd.xlane.f32.xlu2 %v750_v25  ;;  %v1024_v25 = vsel %vm455_vm0, %v1004_v24, 0.0 }
  0xc4   : > { %757 = vadd.xlane.f32.xlu2 %v756_v33  ;;  %v578_v33 = vld [vmem:[%s2187_s16] sm:$0xf] }
  0xc5   : > { %v584_v34 = vsel %vm582_vm11, %v578_v33, 0 }
  0xc6   : > { %593 = vmatpush.bf16.msra.mxu1 %v584_v34  ;;  %v1803_v34 = vld [vmem:[%s2051_s18 + $0x8] sm:$0xf]  ;;  %s1941_s18 = smov 96  }
  0xcc   : > { %1010 = vadd.xlane.f32.xlu2 %v1009_v41 }
  0xd4   : > { %1275 = vadd.xlane.f32.xlu2 %v1274_v46 }
  0xdc   : > { %1016 = vadd.xlane.f32.xlu2 %v1015_v50 }
  0xe4   : > { %1019 = vadd.xlane.f32.xlu2 %v1018_v54 }
  0xec   : > { %1022 = vadd.xlane.f32.xlu2 %v1021_v60 }
 0x117   : > { %v555_v26 = vpop.xlane.xlu2 %554 }
 0x118   : > { %v556_v28 = vsub.f32 %v551_v6, %v555_v26  ;;  %v1289_v6 = vsel %vm455_vm0, %v1271_v3, 0.0  ;;  %v1272_v26 = vmul.f32 %v1895_v43, %v2058_v27  ;;  %v810_v43 = vpop.f32.mrf.mxu2 }
 0x119   : > { %1290 = vadd.xlane.f32.xlu2 %v1289_v6 }
 0x11a   : > { %v557_v29 = vmul.f32 1.442695, %v556_v28  ;;  %v1292_v28 = vsel %vm455_vm0, %v1272_v26, 0.0 }
 0x11c   : > { %1899 = vpow2.f32 %v557_v29 }
 0x11f   : > { %v740_v29 = vpop.xlane.xlu2 %739 }
 0x120   : > { %v812_v47 = vpop.f32.mrf.mxu2  ;;  %v779_v53 = vperm.slane %v740_v29, %v2076_v39 }
 0x121   : > { %1296 = vadd.xlane.f32.xlu2 %v1295_v17 }
 0x122   : > { %v2125_v36 = vpop.eup %1899 }
 0x123   : > { %v559_v40 = vsel %vm552_vm10, %v2125_v36, 0.0 }
 0x124   : > { %560 = vadd.xlane.f32.xlu0 %v559_v40  ;;  %v1037_v40 = vpack.c.b16 %v1035_v38, %v1035_v38 }
 0x126   : > { %v1067_v42 = vsel %vm526_vm1, %v1037_v40, 0 }
 0x127   : > { %v746_v31 = vpop.xlane.xlu2 %745  ;;  %1075 = vmatpush.bf16.msrb.mxu1 %v1067_v42 }
 0x128   : > { %v781_v59 = vperm.slane %v746_v31, %v2076_v39 }
 0x12b   : > { %1076 = vmatpush.bf16.msrb.mxu1 %v1837_v45 }
 0x12c   : > { %742 = vadd.xlane.f32.xlu0 %v741_v44 }
 0x12f   : > { %v752_v32 = vpop.xlane.xlu2 %751 }
 0x130   : > { %v783_v9 = vperm.slane %v752_v32, %v2076_v39 }
 0x134   : > { %748 = vadd.xlane.f32.xlu0 %v747_v48 }
 0x137   : > { %v758_v41 = vpop.xlane.xlu2 %757 }
 0x138   : > { %v785_v37 = vperm.slane %v758_v41, %v2076_v39 }
 0x13c   : > { %754 = vadd.xlane.f32.xlu0 %v753_v52 }
 0x13f   : > { %v1011_v46 = vpop.xlane.xlu2 %1010 }
 0x144   : > { %1007 = vadd.xlane.f32.xlu0 %v1006_v56 }
 0x147   : > { %v2196_v55 = vpop.xlane.xlu2 %1275 }
 0x14c   : > { %1013 = vadd.xlane.f32.xlu0 %v1012_v1 }
 0x154   : > { %1278 = vadd.xlane.f32.xlu0 %v1277_v13  ;;  %v1017_v13 = vpop.xlane.xlu2 %1016 }
 0x155   : > { %v1050_v40 = vperm.slane %v1017_v13, %v2076_v39 }
 0x15c   : > { %1281 = vadd.xlane.f32.xlu0 %v1280_v21  ;;  %v1020_v26 = vpop.xlane.xlu2 %1019 }
 0x15d   : > { %v1051_v42 = vperm.slane %v1020_v26, %v2076_v39 }
 0x164   : > { %1284 = vadd.xlane.f32.xlu0 %v1283_v23 }
 0x16c   : > { %1025 = vadd.xlane.f32.xlu0 %v1024_v25  ;;  %v1048_v25 = vperm.slane %v1011_v46, %v2076_v39 }
 0x174   : > { %1293 = vadd.xlane.f32.xlu0 %v1292_v28 }
 0x197   : > { %v561_v44 = vpop.xlane.xlu0 %560 }
 0x198   : > { %1901 = vrcp.f32 %v561_v44  ;;  %v573_v52 = vand.u32 2147483648, %v561_v44  ;;  %v571_v57 = vand.u32 2147483647, %v561_v44  ;;  %vm567_vm13 = vweird.f32 %v561_v44 }
 0x19a   : > { %v574_v60 = vor.u32 1.1754944e-38, %v573_v52  ;;  %vm572_vm15 = vcmp.eq.f32.partialorder %v571_v57, 8.507059e+37 }
 0x19e   : > { %v1902_v48 = vpop.eup %1901 }
 0x19f   : > { %v563_v49 = vmul.f32 %v1902_v48, %v561_v44  ;;  %v743_v50 = vpop.xlane.xlu0 %742  ;;  %vm568_vm12 = vweird.f32 %v1902_v48 }
 0x1a0   : > { %v780_v54 = vperm.slane %v743_v50, %v2076_v39  ;;  %vm569_vm14 = vmor %vm567_vm13, %vm568_vm12  ;;  %v1346_v50 = vpop.f32.mrf.mxu0 }
 0x1a1   : > { %v564_v51 = vsub.f32 1.0, %v563_v49 }
 0x1a2   : > { %v787_v61 = vsel %vm507_vm3, %v780_v54, %v779_v53  ;;  %v1315_v54 = vperm.slane %v2196_v55, %v2076_v39 }
 0x1a3   : > { %v565_v56 = vmul.f32 %v1902_v48, %v564_v51  ;;  %v788_v6 = vsel %vm509_vm4, %v781_v59, %v787_v61 }
 0x1a5   : > { %v566_v58 = vadd.f32 %v1902_v48, %v565_v56 }
 0x1a7   : > { %v570_v62 = vsel %vm569_vm14, %v1902_v48, %v566_v58  ;;  %v749_v63 = vpop.xlane.xlu0 %748 }
 0x1a8   : > { %v575_v0 = vsel %vm572_vm15, %v574_v60, %v570_v62  ;;  %v782_v1 = vperm.slane %v749_v63, %v2076_v39  ;;  %v1348_v53 = vpop.f32.mrf.mxu0  ;;  %v1288_v63 = vpop.xlane.xlu1 %1287 }
 0x1a9   : > { %v2202_v3 = vmul.f32 %v2125_v36, %v575_v0 }
 0x1aa   : > { %v789_v11 = vsel %vm511_vm5, %v782_v1, %v788_v6  ;;  %v1319_v6 = vperm.slane %v1288_v63, %v2076_v39 }
 0x1ab   : > { %v577_v10 = vpack.c.bf16 %v2202_v3, %v2202_v3  ;;  %v790_v36 = vsel %vm513_vm6, %v783_v9, %v789_v11  ;;  %v599_v52 = vperm.slane %v2202_v3, 0  ;;  %v606_v61 = vperm.slane %v2202_v3, 1 }
 0x1ac   : > { %v627_v11 = vperm.slane %v2202_v3, 4 }
 0x1ad   : > { %1789 = vmatmul.msk.bf16.vlgmr.msra.gmra.mxu1 %vm552_vm10, %v577_v10 }
 0x1af   : > { %v755_v17 = vpop.xlane.xlu0 %754 }
 0x1b0   : > { %v784_v18 = vperm.slane %v755_v17, %v2076_v39 }
 0x1b2   : > { %v791_v20 = vsel %vm515_vm7, %v784_v18, %v790_v36 }
 0x1b3   : > { %v792_v21 = vsel %vm517_vm8, %v785_v37, %v791_v20  ;;  %v1897_v20 = vld [vmem:[%s2068_s22 + $0x3] ss:$0 sm:$0xff] }
 0x1b4   : > { %v793_v23 = vsel %vm519_vm9, %v786_v19, %v792_v21 }
 0x1b5   : > { %v811_v24 = vadd.f32 %v810_v43, %v793_v23  ;;  %v1023_v43 = vpop.xlane.xlu2 %1022 }
 0x1b6   : > { %v1052_v44 = vperm.slane %v1023_v43, %v2076_v39 }
 0x1b7   : > { %v819_v28 = vadd.f32 %v1896_v22, %v811_v24  ;;  %v1008_v29 = vpop.xlane.xlu0 %1007  ;;  %v634_v22 = vperm.slane %v2202_v3, 5 }
 0x1b8   : > { %v1047_v31 = vperm.slane %v1008_v29, %v2076_v39 }
 0x1b9   : > { %v2222_v32 = vadd.f32 %v819_v28, %v2098_v2  ;;  %v648_v28 = vperm.slane %v2202_v3, 7 }
 0x1ba   : > { %v1055_v33 = vsel %vm507_vm3, %v1048_v25, %v1047_v31  ;;  %v1029_v31 = vpop.xlane.xlu1 %1028 }
 0x1bb   : > { %v821_v35 = vsel %vm552_vm10, %v2222_v32, -inf }
 0x1bc   : > { %822 = vmax.xlane.f32.xlu1 %v821_v35  ;;  %v1054_v35 = vperm.slane %v1029_v31, %v2076_v39 }
 0x1bd   : > { %1812 = vmatmul.msk.bf16.vlgmr.msrb.gmra.mxu1 %vm522_vm2, %v1803_v34  ;;  %v1291_v59 = vpop.xlane.xlu2 %1290 }
 0x1be   : > { %v1320_v10 = vperm.slane %v1291_v59, %v2076_v39 }
 0x1bf   : > { %v1014_v38 = vpop.xlane.xlu0 %1013 }
 0x1c0   : > { %v1049_v41 = vperm.slane %v1014_v38, %v2076_v39 }
 0x1c2   : > { %v1056_v45 = vsel %vm509_vm4, %v1049_v41, %v1055_v33 }
 0x1c3   : > { %v1057_v46 = vsel %vm511_vm5, %v1050_v40, %v1056_v45  ;;  %v1898_v40 = vld [vmem:[%s2068_s22 + $0x2] ss:$0 sm:$0xff] }
 0x1c4   : > { %v1058_v47 = vsel %vm513_vm6, %v1051_v42, %v1057_v46 }
 0x1c5   : > { %v1059_v48 = vsel %vm515_vm7, %v1052_v44, %v1058_v47  ;;  %v1297_v16 = vpop.xlane.xlu2 %1296 }
 0x1c6   : > { %v1322_v17 = vperm.slane %v1297_v16, %v2076_v39  ;;  %v620_v16 = vperm.slane %v2202_v3, 3 }
 0x1c7   : > { %v1279_v49 = vpop.xlane.xlu0 %1278 }
 0x1c8   : > { %v1316_v56 = vperm.slane %v1279_v49, %v2076_v39 }
 0x1ca   : > { %v1323_v60 = vsel %vm507_vm3, %v1316_v56, %v1315_v54 }
 0x1cf   : > { %v1282_v51 = vpop.xlane.xlu0 %1281 }
 0x1d0   : > { %v1317_v58 = vperm.slane %v1282_v51, %v2076_v39 }
 0x1d2   : > { %v1324_v0 = vsel %vm509_vm4, %v1317_v58, %v1323_v60 }
 0x1d5   : > { %604 = vperm.xlu1 %1888, %v599_v52  }
 0x1d7   : > { %v1285_v57 = vpop.xlane.xlu0 %1284 }
 0x1d8   : > { %v1318_v62 = vperm.slane %v1285_v57, %v2076_v39 }
 0x1da   : > { %v1325_v8 = vsel %vm511_vm5, %v1318_v62, %v1324_v0 }
 0x1db   : > { %v1326_v13 = vsel %vm513_vm6, %v1319_v6, %v1325_v8 }
 0x1dc   : > { %v1327_v37 = vsel %vm515_vm7, %v1320_v10, %v1326_v13 }
 0x1dd   : > { %611 = vperm.xlu1 %1888, %v606_v61  }
 0x1df   : > { %v1026_v1 = vpop.xlane.xlu0 %1025 }
 0x1e0   : > { %v1053_v55 = vperm.slane %v1026_v1, %v2076_v39 }
 0x1e2   : > { %v1060_v9 = vsel %vm517_vm8, %v1053_v55, %v1059_v48 }
 0x1e3   : > { %v1061_v41 = vsel %vm519_vm9, %v1054_v35, %v1060_v9 }
 0x1e5   : > { %632 = vperm.xlu1 %1888, %v627_v11  }
 0x1e7   : > { %v1294_v36 = vpop.xlane.xlu0 %1293 }
 0x1e8   : > { %v1321_v18 = vperm.slane %v1294_v36, %v2076_v39  ;;  %v1801_v36 = vld [vmem:[%s2187_s16 + $0x4] sm:$0xf] }
 0x1ea   : > { %v1328_v19 = vsel %vm517_vm8, %v1321_v18, %v1327_v37 }
 0x1eb   : > { %v1329_v21 = vsel %vm519_vm9, %v1322_v17, %v1328_v19  ;;  %v852_v17 = vsel %vm582_vm11, %v1801_v36, 0 }
 0x1ec   : > { %v1347_v23 = vadd.f32 %v1346_v50, %v1329_v21  ;;  %861 = vmatpush.bf16.msra.mxu3 %v852_v17 }
 0x1ed   : > { %639 = vperm.xlu1 %1888, %v634_v22  }
 0x1ee   : > { %v1355_v24 = vadd.f32 %v1897_v20, %v1347_v23 }
 0x1f0   : > { %v1356_v25 = vadd.f32 %v1355_v24, %v2098_v2 }
 0x1f2   : > { %v1357_v26 = vsel %vm552_vm10, %v1356_v25, -inf }
 0x1f3   : > { %1358 = vmax.xlane.f32.xlu2 %v1357_v26 }
 0x1f5   : > { %653 = vperm.xlu1 %1888, %v648_v28  }
 0x22a   : > { %v2263_v29 = vpop.f32.mrf.mxu1 }
 0x22f   : > { %v823_v34 = vpop.xlane.xlu1 %822 }
 0x230   : > { %v824_v38 = vsub.f32 %v2222_v32, %v823_v34 }
 0x232   : > { %v597_v33 = vpop.f32.mrf.mxu1  ;;  %v825_v44 = vmul.f32 1.442695, %v824_v38 }
 0x234   : > { %1903 = vpow2.f32 %v825_v44  ;;  %v613_v44 = vperm.slane %v2202_v3, 2 }
 0x23a   : > { %v1078_v42 = vpop.f32.mrf.mxu1  ;;  %v1904_v49 = vpop.eup %1903 }
 0x23b   : > { %v1079_v43 = vadd.f32 %v1078_v42, %v1061_v41  ;;  %v827_v32 = vsel %vm552_vm10, %v1904_v49, 0.0 }
 0x23d   : > { %v1087_v45 = vadd.f32 %v1898_v40, %v1079_v43 }
 0x23f   : > { %v1088_v46 = vadd.f32 %v1087_v45, %v2098_v2  ;;  %v1827_v45 = vld [vmem:[%s2187_s16 + $0xc] sm:$0xf] }
 0x241   : > { %v1089_v47 = vsel %vm552_vm10, %v1088_v46, -inf }
 0x242   : > { %v1080_v48 = vpop.f32.mrf.mxu1  ;;  %1090 = vmax.xlane.f32.xlu0 %v1089_v47  ;;  %v1388_v47 = vsel %vm582_vm11, %v1827_v45, 0 }
 0x243   : > { %1397 = vmatpush.bf16.msrb.mxu2 %v1388_v47 }
 0x247   : > { %v605_v50 = vpop.permute.xlu1 %604 }
 0x248   : > { %v655_v39 = vmul.f32 %v2022_v4, %v605_v50 }
 0x24a   : > { %v663_v51 = vsel %vm455_vm0, %v655_v39, 0.0  ;;  %828 = vadd.xlane.f32.xlu0 %v827_v32 }
 0x24b   : > { %v664_v52 = vrot.slane %v663_v51, 4 }
 0x24d   : > { %v665_v53 = vadd.f32 %v664_v52, %v663_v51 }
 0x24f   : > { %v612_v54 = vpop.permute.xlu1 %611  ;;  %v666_v2 = vrot.slane %v665_v53, 2 }
 0x250   : > { %v656_v56 = vmul.f32 %v2032_v12, %v612_v54 }
 0x251   : > { %v667_v59 = vadd.f32 %v666_v2, %v665_v53 }
 0x252   : > { %v670_v57 = vsel %vm455_vm0, %v656_v56, 0.0 }
 0x253   : > { %v671_v58 = vrot.slane %v670_v57, 4  ;;  %v668_v62 = vrot.slane %v667_v59, 1 }
 0x255   : > { %v672_v60 = vadd.f32 %v671_v58, %v670_v57  ;;  %v669_v1 = vadd.f32 %v668_v62, %v667_v59 }
 0x257   : > { %v673_v61 = vrot.slane %v672_v60, 2 }
 0x259   : > { %v674_v63 = vadd.f32 %v673_v61, %v672_v60 }
 0x25b   : > { %v675_v0 = vrot.slane %v674_v63, 1 }
 0x25d   : > { %v676_v55 = vadd.f32 %v675_v0, %v674_v63 }
 0x25f   : > { %v2277_v6 = vsel %vm507_vm3, %v676_v55, %v669_v1 }
 0x266   : > { %v1359_v8 = vpop.xlane.xlu2 %1358 }
 0x267   : > { %v1360_v9 = vsub.f32 %v1356_v25, %v1359_v8 }
 0x269   : > { %v1361_v10 = vmul.f32 1.442695, %v1360_v9 }
 0x26b   : > { %1905 = vpow2.f32 %v1361_v10 }
 0x271   : > { %v2279_v11 = vpop.eup %1905 }
 0x272   : > { %v1363_v13 = vsel %vm552_vm10, %v2279_v11, 0.0 }
 0x273   : > { %1364 = vadd.xlane.f32.xlu0 %v1363_v13  ;;  %v1814_v13 = vld [vmem:[%s2187_s16 + $0x8] sm:$0xf] }
 0x287   : > { %625 = vperm.xlu0 %1890, %v620_v16   ;;  %v1120_v16 = vsel %vm582_vm11, %v1814_v13, 0 }
 0x288   : > { %1129 = vmatpush.bf16.msrb.mxu3 %v1120_v16 }
 0x2b5   : > { %v1091_v37 = vpop.xlane.xlu0 %1090 }
 0x2b6   : > { %v1092_v18 = vsub.f32 %v1088_v46, %v1091_v37 }
 0x2b8   : > { %v1093_v19 = vmul.f32 1.442695, %v1092_v18 }
 0x2ba   : > { %1907 = vpow2.f32 %v1093_v19 }
 0x2bd   : > { %v829_v20 = vpop.xlane.xlu0 %828 }
 0x2be   : > { %1909 = vrcp.f32 %v829_v20  ;;  %v841_v26 = vand.u32 2147483648, %v829_v20  ;;  %v839_v31 = vand.u32 2147483647, %v829_v20  ;;  %vm835_vm2 = vweird.f32 %v829_v20 }
 0x2c0   : > { %v2286_v21 = vpop.eup %1907  ;;  %v842_v34 = vor.u32 1.1754944e-38, %v841_v26  ;;  %vm840_vm13 = vcmp.eq.f32.partialorder %v839_v31, 8.507059e+37 }
 0x2c1   : > { %v1095_v22 = vsel %vm552_vm10, %v2286_v21, 0.0 }
 0x2c2   : > { %1096 = vadd.xlane.f32.xlu2 %v1095_v22 }
 0x2c4   : > { %v1910_v23 = vpop.eup %1909 }
 0x2c5   : > { %v831_v24 = vmul.f32 %v1910_v23, %v829_v20  ;;  %vm836_vm1 = vweird.f32 %v1910_v23 }
 0x2c6   : > { %vm837_vm12 = vmor %vm835_vm2, %vm836_vm1 }
 0x2c7   : > { %v832_v25 = vsub.f32 1.0, %v831_v24 }
 0x2c9   : > { %v833_v28 = vmul.f32 %v1910_v23, %v832_v25 }
 0x2cb   : > { %v834_v33 = vadd.f32 %v1910_v23, %v833_v28 }
 0x2cd   : > { %v838_v35 = vsel %vm837_vm12, %v1910_v23, %v834_v33 }
 0x2ce   : > { %v843_v38 = vsel %vm840_vm13, %v842_v34, %v838_v35 }
 0x2cf   : > { %v844_v40 = vmul.f32 %v1904_v49, %v843_v38  ;;  %v641_v49 = vperm.slane %v2202_v3, 6 }
 0x2d1   : > { %v874_v41 = vperm.slane %v844_v40, 1  ;;  %v845_v42 = vpack.c.bf16 %v844_v40, %v844_v40  ;;  %v895_v43 = vperm.slane %v844_v40, 4  ;;  %v888_v46 = vperm.slane %v844_v40, 3 }
 0x2d2   : > { %v916_v48 = vperm.slane %v844_v40, 7  ;;  %v909_v50 = vperm.slane %v844_v40, 6  ;;  %v867_v32 = vperm.slane %v844_v40, 0  ;;  %v881_v54 = vperm.slane %v844_v40, 2 }
 0x2d3   : > { %879 = vperm.xlu1 %1888, %v874_v41   ;;  %1802 = vmatmul.msk.bf16.vlgmr.msra.gmra.mxu3 %vm552_vm10, %v845_v42  ;;  %v902_v62 = vperm.slane %v844_v40, 5 }
 0x2d4   : > { %900 = vperm.xlu0 %1890, %v895_v43  }
 0x2da   : > { %618 = vperm.xlu2 %1889, %v613_v44  }
 0x2db   : > { %893 = vperm.xlu1 %1888, %v888_v46  }
 0x2dc   : > { %921 = vperm.xlu0 %1890, %v916_v48  }
 0x2e2   : > { %646 = vperm.xlu2 %1889, %v641_v49  }
 0x2e3   : > { %914 = vperm.xlu1 %1888, %v909_v50  }
 0x2e6   : > { %v1365_v39 = vpop.xlane.xlu0 %1364 }
 0x2e7   : > { %1911 = vrcp.f32 %v1365_v39  ;;  %v1377_v56 = vand.u32 2147483648, %v1365_v39  ;;  %v1375_v57 = vand.u32 2147483647, %v1365_v39  ;;  %vm1371_vm15 = vweird.f32 %v1365_v39 }
 0x2e9   : > { %v1378_v3 = vor.u32 1.1754944e-38, %v1377_v56  ;;  %vm1376_vm2 = vcmp.eq.f32.partialorder %v1375_v57, 8.507059e+37 }
 0x2ea   : > { %872 = vperm.xlu2 %1889, %v867_v32  }
 0x2ed   : > { %v1912_v51 = vpop.eup %1911 }
 0x2ee   : > { %v1367_v52 = vmul.f32 %v1912_v51, %v1365_v39  ;;  %vm1372_vm14 = vweird.f32 %v1912_v51 }
 0x2ef   : > { %vm1373_vm1 = vmor %vm1371_vm15, %vm1372_vm14 }
 0x2f0   : > { %v1368_v53 = vsub.f32 1.0, %v1367_v52 }
 0x2f2   : > { %v1369_v2 = vmul.f32 %v1912_v51, %v1368_v53  ;;  %886 = vperm.xlu2 %1889, %v881_v54  }
 0x2f4   : > { %v1370_v58 = vadd.f32 %v1912_v51, %v1369_v2 }
 0x2f6   : > { %v1374_v59 = vsel %vm1373_vm1, %v1912_v51, %v1370_v58 }
 0x2f7   : > { %v1379_v60 = vsel %vm1376_vm2, %v1378_v3, %v1374_v59 }
 0x2f8   : > { %v2296_v61 = vmul.f32 %v2279_v11, %v1379_v60  ;;  %v633_v11 = vpop.permute.xlu1 %632 }
 0x2f9   : > { %v626_v36 = vpop.permute.xlu0 %625  ;;  %v659_v18 = vmul.f32 %v2027_v7, %v633_v11 }
 0x2fa   : > { %907 = vperm.xlu2 %1889, %v902_v62   ;;  %v1417_v63 = vperm.slane %v2296_v61, 2  ;;  %v1410_v0 = vperm.slane %v2296_v61, 1  ;;  %v1381_v1 = vpack.c.bf16 %v2296_v61, %v2296_v61  ;;  %v1403_v55 = vperm.slane %v2296_v61, 0 }
 0x2fb   : > { %v1431_v8 = vperm.slane %v2296_v61, 4  ;;  %v1424_v9 = vperm.slane %v2296_v61, 3  ;;  %v1438_v10 = vperm.slane %v2296_v61, 5  ;;  %v658_v17 = vmul.f32 %v2034_v14, %v626_v36 }
 0x2fc   : > { %1422 = vperm.xlu0 %1890, %v1417_v63   ;;  %1415 = vperm.xlu1 %1888, %v1410_v0   ;;  %v691_v23 = vsel %vm455_vm0, %v659_v18, 0.0 }
 0x2fd   : > { %1828 = vmatmul.msk.bf16.vlgmr.msrb.gmra.mxu2 %vm552_vm10, %v1381_v1  ;;  %v684_v20 = vsel %vm455_vm0, %v658_v17, 0.0  ;;  %v692_v26 = vrot.slane %v691_v23, 4 }
 0x2fe   : > { %v685_v24 = vrot.slane %v684_v20, 4 }
 0x2ff   : > { %v693_v40 = vadd.f32 %v692_v26, %v691_v23 }
 0x300   : > { %v640_v37 = vpop.permute.xlu1 %639  ;;  %v686_v33 = vadd.f32 %v685_v24, %v684_v20 }
 0x301   : > { %v660_v19 = vmul.f32 %v2036_v15, %v640_v37  ;;  %v694_v50 = vrot.slane %v693_v40, 2 }
 0x302   : > { %1408 = vperm.xlu2 %1889, %v1403_v55   ;;  %v687_v44 = vrot.slane %v686_v33, 2 }
 0x303   : > { %v698_v25 = vsel %vm455_vm0, %v660_v19, 0.0  ;;  %v695_v58 = vadd.f32 %v694_v50, %v693_v40 }
 0x304   : > { %1436 = vperm.xlu1 %1888, %v1431_v8   ;;  %v699_v31 = vrot.slane %v698_v25, 4  ;;  %v688_v53 = vadd.f32 %v687_v44, %v686_v33 }
 0x305   : > { %v696_v11 = vrot.slane %v695_v58, 1 }
 0x306   : > { %v700_v43 = vadd.f32 %v699_v31, %v698_v25  ;;  %v689_v8 = vrot.slane %v688_v53, 1 }
 0x308   : > { %v2315_v34 = vpop.permute.xlu1 %653  ;;  %v701_v51 = vrot.slane %v700_v43, 2  ;;  %v690_v20 = vadd.f32 %v689_v8, %v688_v53 }
 0x30a   : > { %1429 = vperm.xlu2 %1889, %v1424_v9   ;;  %v702_v0 = vadd.f32 %v701_v51, %v700_v43 }
 0x30c   : > { %v703_v18 = vrot.slane %v702_v0, 1 }
 0x312   : > { %1443 = vperm.xlu2 %1889, %v1438_v10  }
 0x335   : > { %v1097_v22 = vpop.xlane.xlu2 %1096 }
 0x336   : > { %1913 = vrcp.f32 %v1097_v22  ;;  %v1109_v45 = vand.u32 2147483648, %v1097_v22  ;;  %v1107_v48 = vand.u32 2147483647, %v1097_v22  ;;  %vm1103_vm12 = vweird.f32 %v1097_v22 }
 0x338   : > { %v1110_v52 = vor.u32 1.1754944e-38, %v1109_v45  ;;  %vm1108_vm14 = vcmp.eq.f32.partialorder %v1107_v48, 8.507059e+37 }
 0x33c   : > { %v1914_v28 = vpop.eup %1913 }
 0x33d   : > { %v1099_v35 = vmul.f32 %v1914_v28, %v1097_v22  ;;  %v619_v38 = vpop.permute.xlu2 %618  ;;  %vm1104_vm11 = vweird.f32 %v1914_v28 }
 0x33e   : > { %v657_v41 = vmul.f32 %v2024_v5, %v619_v38  ;;  %vm1105_vm13 = vmor %vm1103_vm12, %vm1104_vm11 }
 0x33f   : > { %v1100_v42 = vsub.f32 1.0, %v1099_v35 }
 0x340   : > { %v677_v46 = vsel %vm455_vm0, %v657_v41, 0.0 }
 0x341   : > { %v1101_v47 = vmul.f32 %v1914_v28, %v1100_v42  ;;  %v678_v49 = vrot.slane %v677_v46, 4  ;;  %v704_v42 = vadd.f32 %v703_v18, %v702_v0 }
 0x343   : > { %v1102_v39 = vadd.f32 %v1914_v28, %v1101_v47  ;;  %v679_v32 = vadd.f32 %v678_v49, %v677_v46 }
 0x345   : > { %v1106_v54 = vsel %vm1105_vm13, %v1914_v28, %v1102_v39  ;;  %v680_v56 = vrot.slane %v679_v32, 2  ;;  %v880_v2 = vpop.permute.xlu1 %879  ;;  %v647_v57 = vpop.permute.xlu2 %646  ;;  %v697_v28 = vadd.f32 %v696_v11, %v695_v58 }
 0x346   : > { %v1111_v3 = vsel %vm1108_vm14, %v1110_v52, %v1106_v54  ;;  %v901_v59 = vpop.permute.xlu0 %900  ;;  %v661_v60 = vmul.f32 %v2058_v27, %v647_v57  ;;  %v924_v1 = vmul.f32 %v2032_v12, %v880_v2 }
 0x347   : > { %v2321_v62 = vmul.f32 %v2286_v21, %v1111_v3  ;;  %v681_v63 = vadd.f32 %v680_v56, %v679_v32  ;;  %v927_v23 = vmul.f32 %v2027_v7, %v901_v59 }
 0x348   : > { %v705_v55 = vsel %vm455_vm0, %v661_v60, 0.0  ;;  %v938_v19 = vsel %vm455_vm0, %v924_v1, 0.0 }
 0x349   : > { %v682_v9 = vrot.slane %v681_v63, 1  ;;  %v706_v10 = vrot.slane %v705_v55, 4  ;;  %v1149_v13 = vperm.slane %v2321_v62, 2  ;;  %v1142_v16 = vperm.slane %v2321_v62, 1 }
 0x34a   : > { %v1135_v36 = vperm.slane %v2321_v62, 0  ;;  %v1113_v21 = vpack.c.bf16 %v2321_v62, %v2321_v62  ;;  %v939_v35 = vrot.slane %v938_v19, 4  ;;  %v959_v45 = vsel %vm455_vm0, %v927_v23, 0.0 }
 0x34b   : > { %v683_v17 = vadd.f32 %v682_v9, %v681_v63  ;;  %v707_v37 = vadd.f32 %v706_v10, %v705_v55  ;;  %1154 = vperm.xlu0 %1890, %v1149_v13   ;;  %1147 = vperm.xlu1 %1888, %v1142_v16   ;;  %v1170_v47 = vperm.slane %v2321_v62, 5  ;;  %v1163_v50 = vperm.slane %v2321_v62, 4 }
 0x34c   : > { %1140 = vperm.xlu2 %1889, %v1135_v36   ;;  %1815 = vmatmul.msk.bf16.vlgmr.msrb.gmra.mxu3 %vm552_vm10, %v1113_v21  ;;  %v940_v32 = vadd.f32 %v939_v35, %v938_v19  ;;  %v1156_v53 = vperm.slane %v2321_v62, 3  ;;  %v960_v56 = vrot.slane %v959_v45, 4 }
 0x34d   : > { %v1544_v22 = vsel %vm509_vm4, %v683_v17, %v2277_v6  ;;  %v708_v24 = vrot.slane %v707_v37, 2  ;;  %v894_v25 = vpop.permute.xlu1 %893  ;;  %v873_v26 = vpop.permute.xlu2 %872  ;;  %v1177_v17 = vperm.slane %v2321_v62, 6 }
 0x34e   : > { %v926_v31 = vmul.f32 %v2034_v14, %v894_v25  ;;  %v923_v33 = vmul.f32 %v2022_v4, %v873_v26  ;;  %v922_v40 = vpop.permute.xlu0 %921  ;;  %v1545_v41 = vsel %vm511_vm5, %v690_v20, %v1544_v22  ;;  %v941_v1 = vrot.slane %v940_v32, 2 }
 0x34f   : > { %v709_v38 = vadd.f32 %v708_v24, %v707_v37  ;;  %v1546_v44 = vsel %vm513_vm6, %v697_v28, %v1545_v41  ;;  %v930_v48 = vmul.f32 %v2063_v30, %v922_v40  ;;  %v961_v36 = vadd.f32 %v960_v56, %v959_v45 }
 0x350   : > { %v952_v6 = vsel %vm455_vm0, %v926_v31, 0.0  ;;  %v931_v43 = vsel %vm455_vm0, %v923_v33, 0.0  ;;  %v1547_v39 = vsel %vm515_vm7, %v704_v42, %v1546_v44  ;;  %v1184_v37 = vperm.slane %v2321_v62, 7 }
 0x351   : > { %v710_v46 = vrot.slane %v709_v38, 1  ;;  %v932_v49 = vrot.slane %v931_v43, 4  ;;  %v953_v52 = vrot.slane %v952_v6, 4  ;;  %v980_v3 = vsel %vm455_vm0, %v930_v48, 0.0 }
 0x352   : > { %v981_v10 = vrot.slane %v980_v3, 4  ;;  %v942_v21 = vadd.f32 %v941_v1, %v940_v32  ;;  %v1452_v20 = vperm.slane %v2296_v61, 7  ;;  %v962_v28 = vrot.slane %v961_v36, 2 }
 0x353   : > { %v711_v51 = vadd.f32 %v710_v46, %v709_v38  ;;  %v933_v54 = vadd.f32 %v932_v49, %v931_v43  ;;  %1175 = vperm.xlu0 %1890, %v1170_v47   ;;  %1168 = vperm.xlu1 %1888, %v1163_v50   ;;  %v954_v55 = vadd.f32 %v953_v52, %v952_v6  ;;  %v1445_v46 = vperm.slane %v2296_v61, 6 }
 0x354   : > { %1161 = vperm.xlu2 %1889, %v1156_v53   ;;  %v982_v23 = vadd.f32 %v981_v10, %v980_v3  ;;  %v943_v35 = vrot.slane %v942_v21, 1  ;;  %v963_v45 = vadd.f32 %v962_v28, %v961_v36 }
 0x355   : > { %v915_v2 = vpop.permute.xlu1 %914  ;;  %v887_v57 = vpop.permute.xlu2 %886  ;;  %v2348_v58 = vsel %vm517_vm8, %v711_v51, %v1547_v39  ;;  %v934_v59 = vrot.slane %v933_v54, 2  ;;  %v955_v18 = vrot.slane %v954_v55, 2 }
 0x356   : > { %v929_v60 = vmul.f32 %v2058_v27, %v915_v2  ;;  %v925_v63 = vmul.f32 %v2024_v5, %v887_v57  ;;  %v863_v0 = vpop.f32.mrf.mxu3  ;;  %v983_v42 = vrot.slane %v982_v23, 2  ;;  %v944_v47 = vadd.f32 %v943_v35, %v942_v21 }
 0x357   : > { %v935_v11 = vadd.f32 %v934_v59, %v933_v54  ;;  %v956_v38 = vadd.f32 %v955_v18, %v954_v55  ;;  %v964_v53 = vrot.slane %v963_v45, 1 }
 0x358   : > { %v973_v8 = vsel %vm455_vm0, %v929_v60, 0.0  ;;  %v945_v9 = vsel %vm455_vm0, %v925_v63, 0.0  ;;  %v984_v32 = vadd.f32 %v983_v42, %v982_v23 }
 0x359   : > { %v974_v13 = vrot.slane %v973_v8, 4  ;;  %v946_v16 = vrot.slane %v945_v9, 4  ;;  %v936_v24 = vrot.slane %v935_v11, 1  ;;  %v957_v48 = vrot.slane %v956_v38, 1 }
 0x35a   : > { %v985_v61 = vrot.slane %v984_v32, 1  ;;  %v965_v60 = vadd.f32 %v964_v53, %v963_v45 }
 0x35b   : > { %v947_v19 = vadd.f32 %v946_v16, %v945_v9  ;;  %v975_v22 = vadd.f32 %v974_v13, %v973_v8  ;;  %1182 = vperm.xlu0 %1890, %v1177_v17   ;;  %1189 = vperm.xlu1 %1888, %v1184_v37   ;;  %v937_v6 = vadd.f32 %v936_v24, %v935_v11 }
 0x35c   : > { %1457 = vperm.xlu2 %1889, %v1452_v20   ;;  %v958_v56 = vadd.f32 %v957_v48, %v956_v38 }
 0x35d   : > { %v948_v25 = vrot.slane %v947_v19, 2  ;;  %v908_v26 = vpop.permute.xlu2 %907  ;;  %v976_v40 = vrot.slane %v975_v22, 2  ;;  %v1559_v51 = vsel %vm507_vm3, %v944_v47, %v937_v6 }
 0x35e   : > { %v928_v31 = vmul.f32 %v2036_v15, %v908_v26  ;;  %v865_v33 = vpop.f32.mrf.mxu3 }
 0x35f   : > { %v949_v62 = vadd.f32 %v948_v25, %v947_v19  ;;  %v977_v39 = vadd.f32 %v976_v40, %v975_v22 }
 0x360   : > { %v966_v41 = vsel %vm455_vm0, %v928_v31, 0.0 }
 0x361   : > { %v950_v43 = vrot.slane %v949_v62, 1  ;;  %v967_v44 = vrot.slane %v966_v41, 4  ;;  %v978_v57 = vrot.slane %v977_v39, 1 }
 0x363   : > { %v951_v49 = vadd.f32 %v950_v43, %v949_v62  ;;  %v968_v50 = vadd.f32 %v967_v44, %v966_v41  ;;  %1450 = vperm.xlu0 %1890, %v1445_v46   ;;  %1524 = vrot.lane.b32.xlu1 %v863_v0, %s1939_s14  ;;  %v979_v1 = vadd.f32 %v978_v57, %v977_v39 }
 0x364   : > { %v986_v0 = vadd.f32 %v985_v61, %v984_v32 }
 0x365   : > { %v969_v52 = vrot.slane %v968_v50, 2  ;;  %v1560_v54 = vsel %vm509_vm4, %v951_v49, %v1559_v51  ;;  %v1409_v16 = vpop.permute.xlu2 %1408 }
 0x366   : > { %v1561_v59 = vsel %vm511_vm5, %v958_v56, %v1560_v54  ;;  %v1459_v18 = vmul.f32 %v2022_v4, %v1409_v16 }
 0x367   : > { %v970_v2 = vadd.f32 %v969_v52, %v968_v50  ;;  %v1562_v55 = vsel %vm513_vm6, %v965_v60, %v1561_v59 }
 0x368   : > { %v1467_v23 = vsel %vm455_vm0, %v1459_v18, 0.0 }
 0x369   : > { %v971_v3 = vrot.slane %v970_v2, 1  ;;  %v1468_v26 = vrot.slane %v1467_v23, 4 }
 0x36b   : > { %v972_v63 = vadd.f32 %v971_v3, %v970_v2  ;;  %v1469_v62 = vadd.f32 %v1468_v26, %v1467_v23 }
 0x36d   : > { %v1563_v8 = vsel %vm515_vm7, %v972_v63, %v1562_v55  ;;  %v1430_v36 = vpop.permute.xlu2 %1429  ;;  %v1470_v50 = vrot.slane %v1469_v62, 2 }
 0x36e   : > { %v1564_v9 = vsel %vm517_vm8, %v979_v1, %v1563_v8  ;;  %v1416_v37 = vpop.permute.xlu1 %1415  ;;  %v1423_v20 = vpop.permute.xlu0 %1422  ;;  %v1462_v31 = vmul.f32 %v2034_v14, %v1430_v36 }
 0x36f   : > { %v1565_v10 = vsel %vm519_vm9, %v986_v0, %v1564_v9  ;;  %v1460_v28 = vmul.f32 %v2032_v12, %v1416_v37  ;;  %v1461_v33 = vmul.f32 %v2024_v5, %v1423_v20  ;;  %v2388_v61 = vadd.f32 %v1470_v50, %v1469_v62 }
 0x370   : > { %1566 = vrot.lane.b32.xlu0 %v1565_v10, %s1940_s17  ;;  %v1488_v43 = vsel %vm455_vm0, %v1462_v31, 0.0 }
 0x371   : > { %v1481_v44 = vsel %vm455_vm0, %v1461_v33, 0.0  ;;  %v1472_v31 = vrot.slane %v2388_v61, 1 }
 0x375   : > { %v1444_v17 = vpop.permute.xlu2 %1443 }
 0x376   : > { %v1437_v22 = vpop.permute.xlu1 %1436  ;;  %v1464_v2 = vmul.f32 %v2036_v15, %v1444_v17 }
 0x377   : > { %v1463_v48 = vmul.f32 %v2027_v7, %v1437_v22 }
 0x378   : > { %v1502_v17 = vsel %vm455_vm0, %v1464_v2, 0.0 }
 0x379   : > { %v1495_v57 = vsel %vm455_vm0, %v1463_v48, 0.0 }
 0x380   : > { %v1399_v11 = vpop.f32.mrf.mxu2 }
 0x381   : > { %1532 = vrot.lane.b32.xlu0 %v1399_v11, %s1941_s18  ;;  %v1496_v11 = vrot.slane %v1495_v57, 4 }
 0x388   : > { %v1401_v13 = vpop.f32.mrf.mxu2 }
 0x3a6   : > { %v1141_v21 = vpop.permute.xlu2 %1140 }
 0x3a7   : > { %v1191_v19 = vmul.f32 %v2022_v4, %v1141_v21  ;;  %v1474_v4 = vsel %vm455_vm0, %v1460_v28, 0.0 }
 0x3a8   : > { %v1475_v47 = vrot.slane %v1474_v4, 4 }
 0x3a9   : > { %v1199_v24 = vsel %vm455_vm0, %v1191_v19, 0.0 }
 0x3aa   : > { %v1200_v35 = vrot.slane %v1199_v24, 4  ;;  %v1476_v56 = vadd.f32 %v1475_v47, %v1474_v4 }
 0x3ac   : > { %v1201_v45 = vadd.f32 %v1200_v35, %v1199_v24  ;;  %v1477_v36 = vrot.slane %v1476_v56, 2 }
 0x3ae   : > { %v1162_v25 = vpop.permute.xlu2 %1161  ;;  %v1202_v52 = vrot.slane %v1201_v45, 2  ;;  %v1478_v35 = vadd.f32 %v1477_v36, %v1476_v56 }
 0x3af   : > { %v1194_v38 = vmul.f32 %v2034_v14, %v1162_v25 }
 0x3b0   : > { %v1203_v13 = vadd.f32 %v1202_v52, %v1201_v45  ;;  %v1479_v56 = vrot.slane %v1478_v35, 1 }
 0x3b1   : > { %v1220_v46 = vsel %vm455_vm0, %v1194_v38, 0.0  ;;  %v1503_v38 = vrot.slane %v1502_v17, 4 }
 0x3b2   : > { %v1221_v51 = vrot.slane %v1220_v46, 4  ;;  %v1204_v25 = vrot.slane %v1203_v13, 1 }
 0x3b3   : > { %v1504_v2 = vadd.f32 %v1503_v38, %v1502_v17 }
 0x3b4   : > { %v1222_v55 = vadd.f32 %v1221_v51, %v1220_v46 }
 0x3b5   : > { %v1505_v17 = vrot.slane %v1504_v2, 2 }
 0x3b6   : > { %v1458_v0 = vpop.permute.xlu2 %1457 }
 0x3b7   : > { %v1466_v18 = vmul.f32 %v2063_v30, %v1458_v0 }
 0x3b9   : > { %v1516_v62 = vsel %vm455_vm0, %v1466_v18, 0.0 }
 0x3bd   : > { %v1155_v40 = vpop.permute.xlu0 %1154  ;;  %v1148_v41 = vpop.permute.xlu1 %1147 }
 0x3be   : > { %v1193_v42 = vmul.f32 %v2024_v5, %v1155_v40  ;;  %v1192_v6 = vmul.f32 %v2032_v12, %v1148_v41  ;;  %v1482_v5 = vrot.slane %v1481_v44, 4  ;;  %v1489_v12 = vrot.slane %v1488_v43, 4 }
 0x3c0   : > { %v1213_v14 = vsel %vm455_vm0, %v1193_v42, 0.0  ;;  %v1206_v49 = vsel %vm455_vm0, %v1192_v6, 0.0  ;;  %v1483_v1 = vadd.f32 %v1482_v5, %v1481_v44  ;;  %v1490_v10 = vadd.f32 %v1489_v12, %v1488_v43 }
 0x3c1   : > { %v1214_v39 = vrot.slane %v1213_v14, 4  ;;  %v1207_v32 = vrot.slane %v1206_v49, 4 }
 0x3c2   : > { %v1484_v23 = vrot.slane %v1483_v1, 2  ;;  %v1491_v33 = vrot.slane %v1490_v10, 2 }
 0x3c3   : > { %v1215_v53 = vadd.f32 %v1214_v39, %v1213_v14  ;;  %v1208_v54 = vadd.f32 %v1207_v32, %v1206_v49  ;;  %v1205_v14 = vadd.f32 %v1204_v25, %v1203_v13  ;;  %v1517_v39 = vrot.slane %v1516_v62, 4 }
 0x3c4   : > { %v1485_v47 = vadd.f32 %v1484_v23, %v1483_v1  ;;  %v1492_v0 = vadd.f32 %v1491_v33, %v1490_v10 }
 0x3c5   : > { %v1216_v3 = vrot.slane %v1215_v53, 2  ;;  %v1209_v59 = vrot.slane %v1208_v54, 2  ;;  %v1176_v60 = vpop.permute.xlu0 %1175  ;;  %v1169_v63 = vpop.permute.xlu1 %1168 }
 0x3c6   : > { %v1196_v8 = vmul.f32 %v2036_v15, %v1176_v60  ;;  %v1195_v9 = vmul.f32 %v2027_v7, %v1169_v63  ;;  %v1223_v15 = vrot.slane %v1222_v55, 2  ;;  %v1497_v7 = vadd.f32 %v1496_v11, %v1495_v57 }
 0x3c7   : > { %v1210_v16 = vadd.f32 %v1209_v59, %v1208_v54  ;;  %v1217_v19 = vadd.f32 %v1216_v3, %v1215_v53  ;;  %v1486_v59 = vrot.slane %v1485_v47, 1 }
 0x3c8   : > { %v1234_v37 = vsel %vm455_vm0, %v1196_v8, 0.0  ;;  %v1227_v21 = vsel %vm455_vm0, %v1195_v9, 0.0  ;;  %v1224_v43 = vadd.f32 %v1223_v15, %v1222_v55  ;;  %v1498_v48 = vrot.slane %v1497_v7, 2 }
 0x3c9   : > { %v1235_v20 = vrot.slane %v1234_v37, 4  ;;  %v1228_v22 = vrot.slane %v1227_v21, 4  ;;  %v1211_v24 = vrot.slane %v1210_v16, 1  ;;  %v1218_v4 = vrot.slane %v1217_v19, 1 }
 0x3ca   : > { %v1225_v57 = vrot.slane %v1224_v43, 1  ;;  %v1499_v60 = vadd.f32 %v1498_v48, %v1497_v7  ;;  %v1473_v55 = vadd.f32 %v1472_v31, %v2388_v61  ;;  %v1518_v8 = vadd.f32 %v1517_v39, %v1516_v62 }
 0x3cb   : > { %v1236_v26 = vadd.f32 %v1235_v20, %v1234_v37  ;;  %v1229_v28 = vadd.f32 %v1228_v22, %v1227_v21  ;;  %v1212_v44 = vadd.f32 %v1211_v24, %v1210_v16  ;;  %v1219_v12 = vadd.f32 %v1218_v4, %v1217_v19 }
 0x3cc   : > { %v1480_v21 = vadd.f32 %v1479_v56, %v1478_v35  ;;  %v1226_v18 = vadd.f32 %v1225_v57, %v1224_v43  ;;  %v1487_v20 = vadd.f32 %v1486_v59, %v1485_v47  ;;  %v1500_v22 = vrot.slane %v1499_v60, 1 }
 0x3cd   : > { %v1237_v40 = vrot.slane %v1236_v26, 2  ;;  %v1230_v41 = vrot.slane %v1229_v28, 2  ;;  %v1183_v42 = vpop.permute.xlu0 %1182  ;;  %v1190_v6 = vpop.permute.xlu1 %1189  ;;  %v1577_v3 = vsel %vm507_vm3, %v1212_v44, %v1205_v14  ;;  %v1519_v61 = vrot.slane %v1518_v8, 2 }
 0x3ce   : > { %v1197_v45 = vmul.f32 %v2058_v27, %v1183_v42  ;;  %v1198_v46 = vmul.f32 %v2063_v30, %v1190_v6  ;;  %v1578_v37 = vsel %vm509_vm4, %v1219_v12, %v1577_v3  ;;  %v1493_v35 = vrot.slane %v1492_v0, 1 }
 0x3cf   : > { %v1231_v49 = vadd.f32 %v1230_v41, %v1229_v28  ;;  %v1131_v50 = vpop.f32.mrf.mxu3  ;;  %v1238_v32 = vadd.f32 %v1237_v40, %v1236_v26  ;;  %v1579_v25 = vsel %vm511_vm5, %v1226_v18, %v1578_v37  ;;  %v1595_v38 = vsel %vm507_vm3, %v1480_v21, %v1473_v55 }
 0x3d0   : > { %v1241_v5 = vsel %vm455_vm0, %v1197_v45, 0.0  ;;  %v1248_v51 = vsel %vm455_vm0, %v1198_v46, 0.0  ;;  %1528 = vrot.lane.b32.xlu2 %v1131_v50, %s1942_s19  ;;  %v1520_v41 = vadd.f32 %v1519_v61, %v1518_v8  ;;  %v1596_v6 = vsel %vm509_vm4, %v1487_v20, %v1595_v38 }
 0x3d1   : > { %v1232_v52 = vrot.slane %v1231_v49, 1  ;;  %v1242_v53 = vrot.slane %v1241_v5, 4  ;;  %v1249_v54 = vrot.slane %v1248_v51, 4  ;;  %v1239_v9 = vrot.slane %v1238_v32, 1 }
 0x3d2   : > { %v1501_v43 = vadd.f32 %v1500_v22, %v1499_v60  ;;  %v1494_v46 = vadd.f32 %v1493_v35, %v1492_v0  ;;  %vm1605_vm3 = vcmask 261120   ;;  %vm1607_vm4 = vcmask 523264  }
 0x3d3   : > { %v1243_v63 = vadd.f32 %v1242_v53, %v1241_v5  ;;  %v1250_v1 = vadd.f32 %v1249_v54, %v1248_v51  ;;  %v1233_v11 = vadd.f32 %v1232_v52, %v1231_v49  ;;  %v1240_v10 = vadd.f32 %v1239_v9, %v1238_v32 }
 0x3d4   : > { %v1521_v49 = vrot.slane %v1520_v41, 1  ;;  %v1597_v50 = vsel %vm511_vm5, %v1494_v46, %v1596_v6  ;;  %vm1609_vm5 = vcmask 785408  }
 0x3d5   : > { %v1244_v13 = vrot.slane %v1243_v63, 2  ;;  %v1251_v16 = vrot.slane %v1250_v1, 2  ;;  %v1451_v36 = vpop.permute.xlu0 %1450  ;;  %v1580_v33 = vsel %vm513_vm6, %v1233_v11, %v1579_v25  ;;  %v1598_v32 = vsel %vm513_vm6, %v1501_v43, %v1597_v50 }
 0x3d6   : > { %v1465_v19 = vmul.f32 %v2058_v27, %v1451_v36  ;;  %v1506_v27 = vadd.f32 %v1505_v17, %v1504_v2  ;;  %v1581_v42 = vsel %vm515_vm7, %v1240_v10, %v1580_v33  ;;  %v1522_v12 = vadd.f32 %v1521_v49, %v1520_v41  ;;  %v1525_v2 = vpop.permute.xlu1 %1524 }
 0x3d7   : > { %v1245_v23 = vadd.f32 %v1244_v13, %v1243_v63  ;;  %v1252_v15 = vadd.f32 %v1251_v16, %v1250_v1  ;;  %v1133_v24 = vpop.f32.mrf.mxu3  ;;  %v1606_v57 = vsel %vm1605_vm3, %v2263_v29, %v1525_v2  ;;  %v662_v1 = vmul.f32 %v2063_v30, %v2315_v34 }
 0x3d8   : > { %v1509_v7 = vsel %vm455_vm0, %v1465_v19, 0.0  ;;  %v1507_v47 = vrot.slane %v1506_v27, 1  ;;  %vm1613_vm6 = vcmask 392192  }
 0x3d9   : > { %v1246_v26 = vrot.slane %v1245_v23, 1  ;;  %v1253_v28 = vrot.slane %v1252_v15, 1  ;;  %v1510_v31 = vrot.slane %v1509_v7, 4  ;;  %v712_v55 = vsel %vm455_vm0, %v662_v1, 0.0 }
 0x3da   : > { %v1508_v5 = vadd.f32 %v1507_v47, %v1506_v27  ;;  %v713_v0 = vrot.slane %v712_v55, 4 }
 0x3db   : > { %v1247_v62 = vadd.f32 %v1246_v26, %v1245_v23  ;;  %v1511_v4 = vadd.f32 %v1510_v31, %v1509_v7  ;;  %v1254_v40 = vadd.f32 %v1253_v28, %v1252_v15 }
 0x3dc   : > { %v1599_v52 = vsel %vm515_vm7, %v1508_v5, %v1598_v32  ;;  %v714_v8 = vadd.f32 %v713_v0, %v712_v55 }
 0x3dd   : > { %v1512_v44 = vrot.slane %v1511_v4, 2  ;;  %v1582_v45 = vsel %vm517_vm8, %v1247_v62, %v1581_v42 }
 0x3de   : > { %v1583_v48 = vsel %vm519_vm9, %v1254_v40, %v1582_v45  ;;  %v715_v9 = vrot.slane %v714_v8, 2 }
 0x3df   : > { %v1513_v14 = vadd.f32 %v1512_v44, %v1511_v4  ;;  %1584 = vrot.lane.b32.xlu1 %v1583_v48, %s1939_s14 }
 0x3e0   : > { %v716_v11 = vadd.f32 %v715_v9, %v714_v8 }
 0x3e1   : > { %v1514_v39 = vrot.slane %v1513_v14, 1 }
 0x3e2   : > { %v1567_v56 = vpop.permute.xlu0 %1566  ;;  %v717_v29 = vrot.slane %v716_v11, 1 }
 0x3e3   : > { %v1515_v51 = vadd.f32 %v1514_v39, %v1513_v14 }
 0x3e4   : > { %v718_v13 = vadd.f32 %v717_v29, %v716_v11 }
 0x3e5   : > { %v1600_v53 = vsel %vm517_vm8, %v1515_v51, %v1599_v52 }
 0x3e6   : > { %v1601_v54 = vsel %vm519_vm9, %v1522_v12, %v1600_v53  ;;  %v1549_v16 = vsel %vm519_vm9, %v718_v13, %v2348_v58 }
 0x3e7   : > { %1602 = vrot.lane.b32.xlu2 %v1601_v54, %s1943_s20  ;;  %v1611_v36 = vsel %vm455_vm0, %v1549_v16, %v1567_v56 }
 0x3f3   : > { %v1533_v59 = vpop.permute.xlu0 %1532 }
 0x42a   : > { %v1529_v3 = vpop.permute.xlu2 %1528 }
 0x42b   : > { %v1608_v60 = vsel %vm1607_vm4, %v1606_v57, %v1529_v3 }
 0x42c   : > { %v1610_v63 = vsel %vm1609_vm5, %v1608_v60, %v1533_v59 }
 0x42d   : > { %1615 = vst [vmem:[%s418_s23] sm:$0xff] %v1610_v63 }
 0x441   : > { %v1603_v21 = vpop.permute.xlu2 %1602 }
 0x451   : > { %v1585_v37 = vpop.permute.xlu1 %1584 }
 0x452   : > { %v1612_v17 = vsel %vm1605_vm3, %v1611_v36, %v1585_v37 }
 0x453   : > { %v1614_v18 = vsel %vm1613_vm6, %v1612_v17, %v1603_v21 }
 0x454   : > { %1616 = vst.msk [vmem:[%s418_s23 + $0x8] sm:$0xff] %vm1607_vm4, %v1614_v18 }
 0x455 PF: > { %s17_s26 = sadd.s32 1, %s1937_s26   ;;  %s2452_s24 = smov %s1933_s25 }
 0x456   : > { %p14_p5 = scmp.ge.s32.totalorder %s17_s26, 4   ;;  %s2453_s25 = smov %s2455_s27 }
 0x458   :  { %16 = sbr.rel (!%p14_p5) target bundleno = 2 (0x2), region = 108 }

// kernel: _lambda_.19
= control target key start
LH: loop header
LB: loop body
LE: loop exit
PB: predicated region body
PF: predicated region fallthrough
CT: control target
= control target key end

     0   :  { %s1011_s18 = smov 0   ;;  %s1103_s0 = inlined_call_operand.vmem [shape: f32[16,32], index: 0, kind: input, shape index: {}]   ;;  %s1104_s1 = inlined_call_operand.vmem [shape: f32[16,32], index: 1, kind: input, shape index: {}]   ;;  %s1105_s2 = inlined_call_operand.vmem [shape: f32[1,32], index: 2, kind: input, shape index: {}]   ;;  %s1106_s3 = inlined_call_operand.vmem [shape: f32[1,32], index: 3, kind: input, shape index: {}]   ;;  %s1107_s4 = inlined_call_operand.vmem [shape: bf16[32,32], index: 4, kind: input, shape index: {}]   ;;  %s1108_s5 = inlined_call_operand.vmem [shape: f32[1,32], index: 5, kind: input, shape index: {}]   ;;  %s1109_s6 = inlined_call_operand.vmem [shape: bf16[32,32], index: 6, kind: input, shape index: {}]   ;;  %s1110_s7 = inlined_call_operand.vmem [shape: f32[1,32], index: 7, kind: input, shape index: {}]   ;;  %s1111_s8 = inlined_call_operand.vmem [shape: bf16[32,32], index: 8, kind: input, shape index: {}]   ;;  %s1112_s9 = inlined_call_operand.vmem [shape: f32[1,32], index: 9, kind: input, shape index: {}]   ;;  %s1113_s10 = inlined_call_operand.vmem [shape: f32[1,32], index: 10, kind: input, shape index: {}]   ;;  %s1114_s11 = inlined_call_operand.vmem [shape: f32[1,32], index: 11, kind: input, shape index: {}]   ;;  %s1115_s12 = inlined_call_operand.vmem [shape: bf16[32,6], index: 12, kind: input, shape index: {}]   ;;  %s1116_s13 = inlined_call_operand.vmem [shape: f32[1,6], index: 13, kind: input, shape index: {}]   ;;  %s1117_s14 = inlined_call_operand.vmem [shape: f32[16,32], index: 14, kind: output, shape index: {0}]   ;;  %s1118_s15 = inlined_call_operand.vmem [shape: f32[16,6], index: 15, kind: output, shape index: {1}]  }
   0x1 LB: > { %s844_s19 = sadd.s32 4294967295, %s928_s18   ;;  %p848_p0 = scmp.ge.s32.totalorder %s928_s18, 1  ;;  %s928_s18 = sphi %s1011_s18, %s26_s18  }
   0x2   : > { %p448_p1 = scmp.lt.s32.totalorder %s928_s18, 3 }
   0x4   : > { %p449_p2 = pnand %p848_p0, %p448_p1 }
   0x5   : > { %p502_p3 = scmp.lt.s32.totalorder (!%p449_p2), %s844_s19, 1 }
   0x6   : > { %452 = sbr.rel (%p449_p2) target bundleno = 1098 (0x44a), region = 76 }
   0xb   : > { %s1120_s19 = smov (!%p502_p3, %s844_s19), 1  ;;  %vm524_vm0 = vcmask 261120   ;;  %v930_v4 = vmov 32.0   ;;  %v892_v16 = vld [vmem:[%s1107_s4 + $0x8] sm:$0xff]  ;;  %v891_v17 = vld [vmem:[%s1107_s4] sm:$0xff]  ;;  %vm746_vm8 = vcmask 48128  }
   0xc   : > { %s1019_s20 = sshll.u32 %s1120_s19, 3  ;;  %916 = vrcp.f32 %v930_v4  ;;  %592 = vmatpush.bf16.msra.mxu0 %v892_v16  ;;  %v908_v27 = vld [vmem:[%s1105_s2] ss:$0 sm:$0xff]  ;;  %v894_v34 = vld [vmem:[%s1109_s6 + $0x8] sm:$0xff] }
   0xd   : > { %s505_s23 = scalar_lea.vmem %s1103_s0, %s1019_s20  ;;  %s509_s26 = scalar_lea.vmem %s1104_s1, %s1019_s20  ;;  %v909_v30 = vld [vmem:[%s1106_s3] ss:$0 sm:$0xff]  ;;  %630 = vmatpush.bf16.msra.mxu1 %v894_v34  ;;  %v896_v42 = vld [vmem:[%s1111_s8 + $0x8] sm:$0xff] }
   0xe   : > { %v519_v0 = vld [vmem:[%s505_s23] sm:$0xff]  ;;  %668 = vmatpush.bf16.msra.mxu2 %v896_v42  ;;  %v898_v61 = vld [vmem:[%s1115_s12 + $0x8] sm:$0xff]  ;;  %s513_s19 = scalar_lea.vmem %s1117_s14, %s1019_s20  ;;  %s517_s25 = scalar_lea.vmem %s1118_s15, %s1019_s20 }
   0xf   : > { %v520_v1 = vld [vmem:[%s509_s26] sm:$0xff]  ;;  %739 = vmatpush.bf16.msra.mxu3 %v898_v61 }
  0x10   : > { %v521_v2 = vadd.f32 %v520_v1, %v519_v0  ;;  %593 = vmatpush.bf16.msra.mxu0 %v891_v17  ;;  %v893_v35 = vld [vmem:[%s1109_s6] sm:$0xff] }
  0x11   : > { %631 = vmatpush.bf16.msra.mxu1 %v893_v35  ;;  %v910_v36 = vld [vmem:[%s1108_s5] ss:$0 sm:$0xff] }
  0x12   : > { %v525_v3 = vsel %vm524_vm0, %v521_v2, 0.0  ;;  %v917_v5 = vpop.eup %916  ;;  %v895_v43 = vld [vmem:[%s1111_s8] sm:$0xff] }
  0x13   : > { %526 = vadd.xlane.f32.xlu0 %v525_v3  ;;  %v529_v6 = vmul.f32 32.0, %v917_v5  ;;  %vm533_vm1 = vweird.f32 %v917_v5  ;;  %669 = vmatpush.bf16.msra.mxu2 %v895_v43  ;;  %v911_v44 = vld [vmem:[%s1110_s7] ss:$0 sm:$0xff] }
  0x14   : > { %v912_v50 = vld [vmem:[%s1112_s9] ss:$0 sm:$0xff] }
  0x15   : > { %v530_v7 = vsub.f32 1.0, %v529_v6  ;;  %v897_v62 = vld [vmem:[%s1115_s12] sm:$0xff] }
  0x16   : > { %740 = vmatpush.bf16.msra.mxu3 %v897_v62 }
  0x17   : > { %v531_v8 = vmul.f32 %v917_v5, %v530_v7 }
  0x19   : > { %v532_v9 = vadd.f32 %v917_v5, %v531_v8  ;;  %v913_v8 = vld [vmem:[%s1113_s10] ss:$0 sm:$0xff] }
  0x1b   : > { %v1030_v10 = vsel %vm533_vm1, %v917_v5, %v532_v9 }
  0x86   : > { %v527_v11 = vpop.xlane.xlu0 %526 }
  0x87   : > { %v535_v12 = vmul.f32 %v1030_v10, %v527_v11 }
  0x89   : > { %v536_v13 = vsub.f32 %v521_v2, %v535_v12 }
  0x8b   : > { %v537_v14 = vmul.f32 %v536_v13, %v536_v13 }
  0x8d   : > { %v538_v15 = vsel %vm524_vm0, %v537_v14, 0.0 }
  0x8e   : > { %539 = vadd.xlane.f32.xlu0 %v538_v15  ;;  %v915_v15 = vld [vmem:[%s1116_s13] ss:$0 sm:$0xff] }
 0x101   : > { %v540_v18 = vpop.xlane.xlu0 %539 }
 0x102   : > { %v541_v19 = vmul.f32 %v540_v18, %v1030_v10 }
 0x104   : > { %v542_v20 = vadd.f32 1e-05, %v541_v19 }
 0x106   : > { %918 = vrsqrt.f32 %v542_v20  ;;  %vm549_vm3 = vweird.f32 %v542_v20 }
 0x10c   : > { %v919_v21 = vpop.eup %918 }
 0x10d   : > { %v544_v22 = vmul.f32 %v919_v21, %v542_v20  ;;  %vm550_vm2 = vweird.f32 %v919_v21 }
 0x10e   : > { %vm551_vm4 = vmor %vm549_vm3, %vm550_vm2 }
 0x10f   : > { %v545_v23 = vmul.f32 %v919_v21, %v544_v22 }
 0x111   : > { %v546_v24 = vmul.f32 0.5, %v545_v23 }
 0x113   : > { %v547_v25 = vsub.f32 1.5, %v546_v24 }
 0x115   : > { %v548_v26 = vmul.f32 %v919_v21, %v547_v25 }
 0x117   : > { %v552_v28 = vsel %vm551_vm4, %v919_v21, %v548_v26 }
 0x118   : > { %v553_v29 = vmul.f32 %v552_v28, %v536_v13 }
 0x11a   : > { %v557_v31 = vmul.f32 %v908_v27, %v553_v29 }
 0x11c   : > { %v561_v32 = vadd.f32 %v909_v30, %v557_v31 }
 0x11e   : > { %v562_v33 = vpack.c.bf16 %v561_v32, %v561_v32 }
 0x120   : > { %861 = vmatmul.msk.bf16.vlgmr.msra.gmra.mxu0 %vm524_vm0, %v562_v33 }
 0x19d   : > { %v595_v37 = vpop.f32.mrf.mxu0 }
 0x19e   : > { %v596_v38 = vadd.f32 %v910_v36, %v595_v37 }
 0x1a0   : > { %v599_v39 = vmax.f32 %v596_v38, 0.0 }
 0x1a2   : > { %v600_v40 = vpack.c.bf16 %v599_v39, %v599_v39 }
 0x1a4   : > { %870 = vmatmul.msk.bf16.vlgmr.msra.gmra.mxu1 %vm524_vm0, %v600_v40 }
 0x1a5   : > { %v597_v41 = vpop.f32.mrf.mxu0 }
 0x221   : > { %v633_v45 = vpop.f32.mrf.mxu1 }
 0x222   : > { %v634_v46 = vadd.f32 %v911_v44, %v633_v45 }
 0x224   : > { %v637_v47 = vmax.f32 %v634_v46, 0.0 }
 0x226   : > { %v638_v48 = vpack.c.bf16 %v637_v47, %v637_v47 }
 0x228   : > { %879 = vmatmul.msk.bf16.vlgmr.msra.gmra.mxu2 %vm524_vm0, %v638_v48 }
 0x229   : > { %v635_v49 = vpop.f32.mrf.mxu1 }
 0x2ab   : > { %v671_v51 = vpop.f32.mrf.mxu2 }
 0x2ac   : > { %v672_v52 = vadd.f32 %v912_v50, %v671_v51 }
 0x2ae   : > { %v675_v53 = vadd.f32 %v672_v52, %v561_v32 }
 0x2b0   : > { %v678_v54 = vsel %vm524_vm0, %v675_v53, 0.0 }
 0x2b1   : > { %679 = vadd.xlane.f32.xlu1 %v678_v54 }
 0x2b3   : > { %v673_v55 = vpop.f32.mrf.mxu2 }
 0x324   : > { %v680_v56 = vpop.xlane.xlu1 %679 }
 0x325   : > { %v681_v57 = vmul.f32 %v680_v56, %v1030_v10 }
 0x327   : > { %v682_v58 = vsub.f32 %v675_v53, %v681_v57 }
 0x329   : > { %v683_v59 = vmul.f32 %v682_v58, %v682_v58 }
 0x32b   : > { %v684_v60 = vsel %vm524_vm0, %v683_v59, 0.0 }
 0x32c   : > { %685 = vadd.xlane.f32.xlu1 %v684_v60 }
 0x39f   : > { %v686_v63 = vpop.xlane.xlu1 %685 }
 0x3a0   : > { %v687_v0 = vmul.f32 %v686_v63, %v1030_v10  ;;  %v914_v10 = vld [vmem:[%s1114_s11] ss:$0 sm:$0xff] }
 0x3a2   : > { %v688_v1 = vadd.f32 1e-05, %v687_v0 }
 0x3a4   : > { %920 = vrsqrt.f32 %v688_v1  ;;  %vm695_vm6 = vweird.f32 %v688_v1 }
 0x3aa   : > { %v921_v2 = vpop.eup %920 }
 0x3ab   : > { %v690_v3 = vmul.f32 %v921_v2, %v688_v1  ;;  %vm696_vm5 = vweird.f32 %v921_v2 }
 0x3ac   : > { %vm697_vm7 = vmor %vm695_vm6, %vm696_vm5 }
 0x3ad   : > { %v691_v4 = vmul.f32 %v921_v2, %v690_v3 }
 0x3af   : > { %v692_v5 = vmul.f32 0.5, %v691_v4 }
 0x3b1   : > { %v693_v6 = vsub.f32 1.5, %v692_v5 }
 0x3b3   : > { %v694_v7 = vmul.f32 %v921_v2, %v693_v6 }
 0x3b5   : > { %v698_v9 = vsel %vm697_vm7, %v921_v2, %v694_v7 }
 0x3b6   : > { %v699_v11 = vmul.f32 %v698_v9, %v682_v58 }
 0x3b8   : > { %v703_v12 = vmul.f32 %v913_v8, %v699_v11 }
 0x3ba   : > { %v707_v13 = vadd.f32 %v914_v10, %v703_v12 }
 0x3bc   : > { %708 = vst.msk [vmem:[%s513_s19] sm:$0xff] %vm524_vm0, %v707_v13  ;;  %v709_v14 = vpack.c.bf16 %v707_v13, %v707_v13 }
 0x3be   : > { %888 = vmatmul.msk.bf16.vlgmr.msra.gmra.mxu3 %vm524_vm0, %v709_v14 }
 0x441   : > { %v742_v16 = vpop.f32.mrf.mxu3 }
 0x442   : > { %v743_v17 = vadd.f32 %v915_v15, %v742_v16 }
 0x444   : > { %747 = vst.msk [vmem:[%s517_s25] sm:$0xff] %vm746_vm8, %v743_v17 }
 0x449   : > { %v744_v18 = vpop.f32.mrf.mxu3 }
 0x44a PF: > { %s26_s18 = sadd.s32 1, %s928_s18  }
 0x44b   : > { %p23_p4 = scmp.ge.s32.totalorder %s26_s18, 4  }
 0x44d   :  { %25 = sbr.rel (!%p23_p4) target bundleno = 1 (0x1), region = 121 }

// kernel: _lambda_.31
= control target key start
LH: loop header
LB: loop body
LE: loop exit
PB: predicated region body
PF: predicated region fallthrough
CT: control target
= control target key end

     0   :  { %s1280_s0 = inlined_call_operand.vmem [shape: f32[16,32], index: 0, kind: input, shape index: {}]   ;;  %s1281_s1 = inlined_call_operand.vmem [shape: f32[16,32], index: 1, kind: input, shape index: {}]   ;;  %s1282_s2 = inlined_call_operand.vmem [shape: f32[1,32], index: 2, kind: input, shape index: {}]   ;;  %s1283_s3 = inlined_call_operand.vmem [shape: f32[1,32], index: 3, kind: input, shape index: {}]   ;;  %s1284_s4 = inlined_call_operand.vmem [shape: bf16[32,32], index: 4, kind: input, shape index: {}]   ;;  %s1285_s5 = inlined_call_operand.vmem [shape: f32[1,32], index: 5, kind: input, shape index: {}]   ;;  %s1286_s6 = inlined_call_operand.vmem [shape: bf16[32,32], index: 6, kind: input, shape index: {}]   ;;  %s1287_s7 = inlined_call_operand.vmem [shape: f32[1,32], index: 7, kind: input, shape index: {}]   ;;  %s1288_s8 = inlined_call_operand.vmem [shape: bf16[32,32], index: 8, kind: input, shape index: {}]   ;;  %s1289_s9 = inlined_call_operand.vmem [shape: f32[1,32], index: 9, kind: input, shape index: {}]   ;;  %s1290_s10 = inlined_call_operand.vmem [shape: f32[1,32], index: 10, kind: input, shape index: {}]   ;;  %s1291_s11 = inlined_call_operand.vmem [shape: f32[1,32], index: 11, kind: input, shape index: {}]   ;;  %s1292_s12 = inlined_call_operand.vmem [shape: bf16[32,6], index: 12, kind: input, shape index: {}]   ;;  %s1293_s13 = inlined_call_operand.vmem [shape: f32[1,6], index: 13, kind: input, shape index: {}]   ;;  %s1294_s14 = inlined_call_operand.hbm [shape: f32[16,32], index: 14, kind: output, shape index: {0}]   ;;  %s1295_s15 = inlined_call_operand.vmem [shape: f32[16,6], index: 15, kind: output, shape index: {1}]  }
   0x1   :  { %1297 = sst [smem:[#allocation7_spill]] %s1280_s0 }
   0x2   :  { %1298 = sst [smem:[#allocation8_spill]] %s1281_s1 }
   0x3   :  { %1299 = sst [smem:[#allocation9_spill]] %s1282_s2 }
   0x4   :  { %1300 = sst [smem:[#allocation10_spill]] %s1283_s3 }
   0x5   :  { %1301 = sst [smem:[#allocation11_spill]] %s1284_s4 }
   0x6   :  { %1302 = sst [smem:[#allocation12_spill]] %s1285_s5 }
   0x7   :  { %1303 = sst [smem:[#allocation13_spill]] %s1286_s6 }
   0x8   :  { %1304 = sst [smem:[#allocation14_spill]] %s1287_s7 }
   0x9   :  { %21 = vsyncpa [#allocation3], 0 }
   0xa   :  { %23 = vsyncpa [#allocation3 + $0x1], 0  ;;  %s1121_s18 = smov 0   ;;  %s1123_s19 = smov 0  }
   0xb   :  { %s1125_s20 = smov 0   ;;  %s1127_s21 = smov 0  }
   0xc LB: > { %1305 = sst [smem:[#allocation5_spill]] %s1034_s20  ;;  %s1142_s22 = sadd.s32 4294967295, %s1038_s21   ;;  %s1038_s21 = sphi %s1127_s21, %s1321_s21   ;;  %s1034_s20 = sphi %s1125_s20, %s1318_s20   ;;  %s1030_s19 = sphi %s1123_s19, %s1320_s19   ;;  %s1026_s18 = sphi %s1121_s18, %s1319_s18  }
   0xd   : > { %s866_s23 = sadd.s32 4294967294, %s1038_s21   ;;  %s1146_s24 = sadd.s32 1, %s1038_s21  }
   0xe   : > { %s340_s25 = sadd.s32 1, %s1034_s20  ;;  %s337_s26 = ssub.s32 %s1038_s21, %s1146_s24 }
   0xf   : > { %p350_p0 = scmp.ne.s32.totalorder %s1034_s20, %s1030_s19  ;;  %p338_p1 = scmp.eq.s32.totalorder %s337_s26, 0 }
  0x10   : > { %p351_p2 = scmp.eq.s32.totalorder %s1142_s22, 1  ;;  %p356_p3 = scmp.ne.s32.totalorder %s1030_s19, %s1026_s18 }
  0x11   : > { %p357_p4 = scmp.eq.s32.totalorder %s866_s23, 1  ;;  %p869_p7 = scmp.ge.s32.totalorder %s1038_s21, 1 }
  0x12   : > { %s1157_s27 = scalar_select %p338_p1, %s1034_s20, %s340_s25  }
  0x13   : > { %p1159_p5 = por %p351_p2, %p350_p0  ;;  %p1163_p6 = por %p357_p4, %p356_p3 }
  0x14   : > { %1306 = sst [smem:[#allocation6_spill]] %s1157_s27  ;;  %p451_p8 = scmp.lt.s32.totalorder %s1038_s21, 3 }
  0x16   : > { %p452_p9 = pnand %p869_p7, %p451_p8 }
  0x17   : > { %p506_p10 = scmp.lt.s32.totalorder (!%p452_p9), %s1142_s22, 1  ;;  %s1309_s0 = sld [smem:[#allocation7_spill]] (!%p452_p9) }
  0x18   : > { %455 = sbr.rel (%p452_p9) target bundleno = 1117 (0x45d), region = 76  ;;  %s1310_s1 = sld [smem:[#allocation8_spill]] (!%p452_p9) }
  0x19   : > { %s1311_s4 = sld [smem:[#allocation11_spill]] (!%p452_p9) }
  0x1a   : > { %s1312_s2 = sld [smem:[#allocation9_spill]] (!%p452_p9) }
  0x1b   : > { %s1313_s3 = sld [smem:[#allocation10_spill]] (!%p452_p9) }
  0x1c   : > { %s1314_s6 = sld [smem:[#allocation13_spill]] (!%p452_p9) }
  0x1d   : > { %s507_s30 = scalar_select %p506_p10, %s1142_s22, 1  ;;  %vm524_vm0 = vcmask 261120   ;;  %v1040_v4 = vmov 32.0   ;;  %v919_v42 = vld [vmem:[%s1288_s8 + $0x8] sm:$0xff]  ;;  %v918_v43 = vld [vmem:[%s1288_s8] sm:$0xff] }
  0x1e   : > { %970 = vrcp.f32 %v1040_v4  ;;  %s1315_s5 = sld [smem:[#allocation12_spill]]  ;;  %668 = vmatpush.bf16.msra.mxu2 %v919_v42  ;;  %v966_v50 = vld [vmem:[%s1289_s9] ss:$0 sm:$0xff]  ;;  %v921_v61 = vld [vmem:[%s1292_s12 + $0x8] sm:$0xff] }
  0x1f   : > { %s1171_s16 = sshll.u32 %s507_s30, 3  ;;  %v915_v16 = vld [vmem:[%s1311_s4 + $0x8] sm:$0xff]  ;;  %v914_v17 = vld [vmem:[%s1311_s4] sm:$0xff]  ;;  %s1316_s7 = sld [smem:[#allocation14_spill]]  ;;  %739 = vmatpush.bf16.msra.mxu3 %v921_v61 }
  0x20   : > { %s509_s25 = scalar_lea.vmem %s1309_s0, %s1171_s16  ;;  %s513_s20 = scalar_lea.vmem %s1310_s1, %s1171_s16  ;;  %592 = vmatpush.bf16.msra.mxu0 %v915_v16  ;;  %v962_v27 = vld [vmem:[%s1312_s2] ss:$0 sm:$0xff] }
  0x21   : > { %v519_v0 = vld [vmem:[%s509_s25] sm:$0xff]  ;;  %s497_s30 = sand.u32 1, %s1030_s19   ;;  %s911_s0 = sshll.u32 %s1142_s22, 3 }
  0x22   : > { %v520_v1 = vld [vmem:[%s513_s20] sm:$0xff]  ;;  %v917_v34 = vld [vmem:[%s1314_s6 + $0x8] sm:$0xff]  ;;  %669 = vmatpush.bf16.msra.mxu2 %v918_v43  ;;  %s870_s20 = sshll.u32 %s497_s30, 3  ;;  %s763_s23 = scalar_lea.hbm %s1294_s14, %s911_s0 }
  0x23   : > { %v521_v2 = vadd.f32 %v520_v1, %v519_v0  ;;  %v963_v30 = vld [vmem:[%s1313_s3] ss:$0 sm:$0xff]  ;;  %630 = vmatpush.bf16.msra.mxu1 %v917_v34  ;;  %s499_s27 = scalar_lea.vmem [#allocation2], %s870_s20  ;;  %s767_s3 = sshll.u32 %s763_s23, 4  ;;  %s768_s3 = int_to_ptr.hbm [resolvable:$true] %s767_s3 }
  0x24   : > { %v971_v5 = vpop.eup %970  ;;  %593 = vmatpush.bf16.msra.mxu0 %v914_v17  ;;  %v916_v35 = vld [vmem:[%s1314_s6] sm:$0xff]  ;;  %s765_s2 = sshll.u32 %s499_s27, 4  ;;  %s749_s25 = scalar_lea.sflag [#allocation3], %s497_s30  ;;  %s766_s2 = int_to_ptr.vmem [resolvable:$true] %s765_s2 }
  0x25   : > { %v525_v3 = vsel %vm524_vm0, %v521_v2, 0.0  ;;  %v529_v6 = vmul.f32 32.0, %v971_v5  ;;  %vm533_vm1 = vweird.f32 %v971_v5  ;;  %v964_v36 = vld [vmem:[%s1315_s5] ss:$0 sm:$0xff]  ;;  %s990_s26 = sshra.s32 %s768_s3, 4  ;;  %s996_s22 = scalar_lea.hbm %s1294_s14, 16  ;;  %s991_s26 = int_to_ptr.hbm [resolvable:$true] %s990_s26 }
  0x26   : > { %526 = vadd.xlane.f32.xlu0 %v525_v3  ;;  %v965_v44 = vld [vmem:[%s1316_s7] ss:$0 sm:$0xff]  ;;  %s992_s4 = scalar_lea.hbm %s991_s26, 8  ;;  %p997_p0 = scmp.lt.s32.totalorder %s991_s26, %s1294_s14 }
  0x27   : > { %v530_v7 = vsub.f32 1.0, %v529_v6  ;;  %631 = vmatpush.bf16.msra.mxu1 %v916_v35  ;;  %v920_v62 = vld [vmem:[%s1292_s12] sm:$0xff]  ;;  %p993_p11 = scmp.ne.s32.totalorder %s991_s26, %s992_s4  ;;  %p998_p1 = scmp.lt.s32.totalorder %s996_s22, %s992_s4 }
  0x28   : > { %740 = vmatpush.bf16.msra.mxu3 %v920_v62 }
  0x29   : > { %v531_v8 = vmul.f32 %v971_v5, %v530_v7  ;;  %p994_p12 = pnand %p993_p11, %p1159_p5  ;;  %p999_p2 = por %p998_p1, %p997_p0 }
  0x2b   : > { %v532_v9 = vadd.f32 %v971_v5, %v531_v8  ;;  %v967_v8 = vld [vmem:[%s1290_s10] ss:$0 sm:$0xff]  ;;  %p995_p13 = pneg %p994_p12 }
  0x2d   : > { %v1182_v10 = vsel %vm533_vm1, %v971_v5, %v532_v9  ;;  %p1000_p3 = pnand %p999_p2, %p995_p13 }
  0x99   : > { %v527_v11 = vpop.xlane.xlu0 %526 }
  0x9a   : > { %v535_v12 = vmul.f32 %v1182_v10, %v527_v11 }
  0x9c   : > { %v536_v13 = vsub.f32 %v521_v2, %v535_v12 }
  0x9e   : > { %v537_v14 = vmul.f32 %v536_v13, %v536_v13 }
  0xa0   : > { %v538_v15 = vsel %vm524_vm0, %v537_v14, 0.0 }
  0xa1   : > { %539 = vadd.xlane.f32.xlu0 %v538_v15 }
 0x114   : > { %v540_v18 = vpop.xlane.xlu0 %539 }
 0x115   : > { %v541_v19 = vmul.f32 %v540_v18, %v1182_v10 }
 0x117   : > { %v542_v20 = vadd.f32 1e-05, %v541_v19 }
 0x119   : > { %972 = vrsqrt.f32 %v542_v20  ;;  %vm549_vm3 = vweird.f32 %v542_v20 }
 0x11f   : > { %v973_v21 = vpop.eup %972 }
 0x120   : > { %v544_v22 = vmul.f32 %v973_v21, %v542_v20  ;;  %vm550_vm2 = vweird.f32 %v973_v21 }
 0x121   : > { %vm551_vm4 = vmor %vm549_vm3, %vm550_vm2 }
 0x122   : > { %v545_v23 = vmul.f32 %v973_v21, %v544_v22 }
 0x124   : > { %v546_v24 = vmul.f32 0.5, %v545_v23 }
 0x126   : > { %v547_v25 = vsub.f32 1.5, %v546_v24 }
 0x128   : > { %v548_v26 = vmul.f32 %v973_v21, %v547_v25 }
 0x12a   : > { %v552_v28 = vsel %vm551_vm4, %v973_v21, %v548_v26 }
 0x12b   : > { %v553_v29 = vmul.f32 %v552_v28, %v536_v13 }
 0x12d   : > { %v557_v31 = vmul.f32 %v962_v27, %v553_v29 }
 0x12f   : > { %v561_v32 = vadd.f32 %v963_v30, %v557_v31 }
 0x131   : > { %v562_v33 = vpack.c.bf16 %v561_v32, %v561_v32 }
 0x133   : > { %882 = vmatmul.msk.bf16.vlgmr.msra.gmra.mxu0 %vm524_vm0, %v562_v33 }
 0x1b0   : > { %v595_v37 = vpop.f32.mrf.mxu0 }
 0x1b1   : > { %v596_v38 = vadd.f32 %v964_v36, %v595_v37 }
 0x1b3   : > { %v599_v39 = vmax.f32 %v596_v38, 0.0 }
 0x1b5   : > { %v600_v40 = vpack.c.bf16 %v599_v39, %v599_v39 }
 0x1b7   : > { %891 = vmatmul.msk.bf16.vlgmr.msra.gmra.mxu1 %vm524_vm0, %v600_v40 }
 0x1b8   : > { %v597_v41 = vpop.f32.mrf.mxu0 }
 0x234   : > { %v633_v45 = vpop.f32.mrf.mxu1 }
 0x235   : > { %v634_v46 = vadd.f32 %v965_v44, %v633_v45 }
 0x237   : > { %v637_v47 = vmax.f32 %v634_v46, 0.0 }
 0x239   : > { %v638_v48 = vpack.c.bf16 %v637_v47, %v637_v47 }
 0x23b   : > { %900 = vmatmul.msk.bf16.vlgmr.msra.gmra.mxu2 %vm524_vm0, %v638_v48 }
 0x23c   : > { %v635_v49 = vpop.f32.mrf.mxu1 }
 0x2be   : > { %v671_v51 = vpop.f32.mrf.mxu2 }
 0x2bf   : > { %v672_v52 = vadd.f32 %v966_v50, %v671_v51 }
 0x2c1   : > { %v675_v53 = vadd.f32 %v672_v52, %v561_v32 }
 0x2c3   : > { %v678_v54 = vsel %vm524_vm0, %v675_v53, 0.0 }
 0x2c4   : > { %679 = vadd.xlane.f32.xlu1 %v678_v54 }
 0x2c6   : > { %v673_v55 = vpop.f32.mrf.mxu2 }
 0x337   : > { %v680_v56 = vpop.xlane.xlu1 %679 }
 0x338   : > { %v681_v57 = vmul.f32 %v680_v56, %v1182_v10 }
 0x33a   : > { %v682_v58 = vsub.f32 %v675_v53, %v681_v57 }
 0x33c   : > { %v683_v59 = vmul.f32 %v682_v58, %v682_v58 }
 0x33e   : > { %v684_v60 = vsel %vm524_vm0, %v683_v59, 0.0 }
 0x33f   : > { %685 = vadd.xlane.f32.xlu1 %v684_v60 }
 0x3b2   : > { %v686_v63 = vpop.xlane.xlu1 %685 }
 0x3b3   : > { %v687_v0 = vmul.f32 %v686_v63, %v1182_v10  ;;  %v968_v10 = vld [vmem:[%s1291_s11] ss:$0 sm:$0xff] }
 0x3b5   : > { %v688_v1 = vadd.f32 1e-05, %v687_v0 }
 0x3b7   : > { %974 = vrsqrt.f32 %v688_v1  ;;  %vm695_vm6 = vweird.f32 %v688_v1 }
 0x3bd   : > { %v975_v2 = vpop.eup %974 }
 0x3be   : > { %v690_v3 = vmul.f32 %v975_v2, %v688_v1  ;;  %vm696_vm5 = vweird.f32 %v975_v2 }
 0x3bf   : > { %vm697_vm7 = vmor %vm695_vm6, %vm696_vm5 }
 0x3c0   : > { %v691_v4 = vmul.f32 %v975_v2, %v690_v3 }
 0x3c2   : > { %v692_v5 = vmul.f32 0.5, %v691_v4 }
 0x3c4   : > { %v693_v6 = vsub.f32 1.5, %v692_v5 }
 0x3c6   : > { %v694_v7 = vmul.f32 %v975_v2, %v693_v6 }
 0x3c8   : > { %v698_v9 = vsel %vm697_vm7, %v975_v2, %v694_v7 }
 0x3c9   : > { %v699_v11 = vmul.f32 %v698_v9, %v682_v58 }
 0x3cb   : > { %v703_v12 = vmul.f32 %v967_v8, %v699_v11 }
 0x3cd   : > { %v707_v13 = vadd.f32 %v968_v10, %v703_v12 }
 0x3cf   : > { %v709_v14 = vpack.c.bf16 %v707_v13, %v707_v13  ;;  %708 = vst.msk [vmem:[%s499_s27] sm:$0xff] %vm524_vm0, %v707_v13 }
 0x3d1   : > { %909 = vmatmul.msk.bf16.vlgmr.msra.gmra.mxu3 %vm524_vm0, %v709_v14 }
 0x3d2   : > { %1003 = shalt.err (!%p1000_p3)
}
 0x3d3   : > { %922 = dma.vmem_to_hbm [thread:$0]  (%p1159_p5), %s766_s2, 128, %s768_s3, %s749_s25   ;;  %v969_v15 = vld [vmem:[%s1293_s13] ss:$0 sm:$0xff]  ;;  %vm746_vm8 = vcmask 48128  }
 0x3d4   : > { %s517_s5 = scalar_lea.vmem %s1295_s15, %s1171_s16 }
 0x454   : > { %v742_v16 = vpop.f32.mrf.mxu3 }
 0x455   : > { %v743_v17 = vadd.f32 %v969_v15, %v742_v16 }
 0x457   : > { %747 = vst.msk [vmem:[%s517_s5] sm:$0xff] %vm746_vm8, %v743_v17 }
 0x45c   : > { %v744_v18 = vpop.f32.mrf.mxu3 }
 0x45d PF: > { %p928_p4 = scmp.ge.s32.totalorder %s1038_s21, 2  ;;  %s782_s4 = sand.u32 1, %s1026_s18  }
 0x45e   : > { %s783_s2 = scalar_lea.sflag [#allocation3], %s782_s4 }
 0x45f   : > { %p925_p5 = pnand %p928_p4, %p1163_p6 }
 0x461   : > { %p926_p7 = pneg %p925_p5 }
 0x463   : > { %1021 = dma.done.wait (%p926_p7), %s783_s2, 128  }
 0x464   : > { %1023 = vsyncadd (%p926_p7), %s783_s2, 4294967168  ;;  %s1317_s3 = sld [smem:[#allocation5_spill]]  ;;  %p26_p8 = scmp.ge.s32.totalorder %s1146_s24, 4  }
 0x465   : > { %s1318_s20 = sld [smem:[#allocation6_spill]]  ;;  %s1319_s18 = smov %s1030_s19 }
 0x466   : > { %s1321_s21 = smov %s1146_s24  ;;  %28 = sbr.rel (!%p26_p8) target bundleno = 12 (0xc), region = 126 }
 0x46a   : > { %s1320_s19 = smov %s1317_s3 }
 0x46b   :  { %796 = vsyncpa [#allocation3], 1 }
 0x46c   :  { %798 = vsyncpa [#allocation3 + $0x1], 1 }

</bundles_post_ra>
